<compile_context>
chip_gen: v7x
topology: tpu7x:2x2x1
jax: 0.10.0
libtpu: 0.0.40
codegen_flags: <defaults>
</compile_context>

<pallas_src>
import jax
import jax.numpy as jnp
from jax.experimental import pallas as pl
from jax.experimental.pallas import tpu as pltpu

C_CHUNK = 8   # channels streamed per chunk in the reduction / multiply passes
N_ACC = 4     # independent conv accumulator chains (one per VALU slot)


def _make_kernel(C, H, W, ksize, pad):
    HW = H * W
    OFF = pad * W + pad          # flat offset of the map interior inside the padded scratch
    HWP = HW + 2 * OFF           # padded flat length

    def kernel(w_ref, colmask_ref, x_ref, o_ref, pad_ref):
        # w_ref       : SMEM (2*ksize*ksize,) f32   conv weight, layout [in_ch, ky, kx]
        # colmask_ref : VMEM (ksize, HW) f32        horizontal boundary mask per kx tap
        # x_ref       : VMEM (C, HW)                one batch element, lane-dense spatial axis
        # o_ref       : VMEM (C, HW)
        # pad_ref     : VMEM (2, HWP) f32 scratch   zero-padded flat (avg, max) pooled maps

        # ---- Pass 1: channel-wise mean / max, streamed chunk by chunk ----
        sum_hw = jnp.zeros((1, HW), jnp.float32)
        max_hw = jnp.full((1, HW), -jnp.inf, jnp.float32)
        for c0 in range(0, C, C_CHUNK):
            cs = min(C_CHUNK, C - c0)
            xc = x_ref[c0:c0 + cs, :].astype(jnp.float32)            # (cs, HW)
            sum_hw = sum_hw + jnp.sum(xc, axis=0, keepdims=True)
            max_hw = jnp.maximum(max_hw, jnp.max(xc, axis=0, keepdims=True))
        avg_hw = sum_hw * (1.0 / C)

        # ---- Pass 2: drop the pooled maps into the flat zero-padded scratch ----
        pad_ref[...] = jnp.zeros((2, HWP), jnp.float32)
        pad_ref[0:1, OFF:OFF + HW] = avg_hw
        pad_ref[1:2, OFF:OFF + HW] = max_hw

        # ---- Pass 3: 7x7 conv as 2*ksize*ksize statically shifted scratch reads ----
        col_masks = [colmask_ref[kx:kx + 1, :] for kx in range(ksize)]
        acc = [jnp.zeros((1, HW), jnp.float32) for _ in range(N_ACC)]
        tap = 0
        for ci in range(2):                       # 0 = avg map, 1 = max map
            for ky in range(ksize):
                for kx in range(ksize):
                    d = (ky - pad) * W + (kx - pad)
                    shifted = pad_ref[ci:ci + 1, OFF + d:OFF + d + HW]   # (1, HW)
                    wv = w_ref[ci * ksize * ksize + ky * ksize + kx]
                    acc[tap % N_ACC] = acc[tap % N_ACC] + wv * (shifted * col_masks[kx])
                    tap += 1
        conv = (acc[0] + acc[1]) + (acc[2] + acc[3])
        attn = jax.nn.sigmoid(conv)                                      # (1, HW) f32

        # ---- Pass 4: out = sigmoid(conv) * x, streamed, lane-dense stores ----
        for c0 in range(0, C, C_CHUNK):
            cs = min(C_CHUNK, C - c0)
            xc = x_ref[c0:c0 + cs, :].astype(jnp.float32)
            o_ref[c0:c0 + cs, :] = (attn * xc).astype(o_ref.dtype)

    return kernel


def spatial_attention(x, w, *, kernel_size=7):
    """x: (B, C, H, W) NCHW; w: (1, 2, k, k) conv weight (no bias)."""
    assert kernel_size in (3, 7), "kernel size must be 3 or 7"
    pad = 3 if kernel_size == 7 else 1
    B, C, H, W = x.shape
    HW = H * W

    # Lane-dense spatial axis: contiguous reshape, free outside the kernel.
    x_flat = x.reshape(B, C, HW)
    w_flat = w.reshape(-1).astype(jnp.float32)                     # (2*k*k,) [in_ch, ky, kx]

    # Horizontal boundary mask per kx tap, precomputed outside the kernel.
    col = jnp.arange(HW, dtype=jnp.int32) % W
    colmask = jnp.stack(
        [((col >= max(0, pad - kx)) & (col < min(W, W + pad - kx))).astype(jnp.float32)
         for kx in range(kernel_size)], axis=0)                    # (k, HW)

    OFF = pad * W + pad
    HWP = HW + 2 * OFF

    kernel = _make_kernel(C, H, W, kernel_size, pad)

    out_flat = pl.pallas_call(
        kernel,
        out_shape=jax.ShapeDtypeStruct((B, C, HW), x.dtype),
        grid_spec=pltpu.PrefetchScalarGridSpec(
            num_scalar_prefetch=0,
            grid=(B,),
            in_specs=[
                pl.BlockSpec(memory_space=pltpu.MemorySpace.SMEM),     # conv weights
                pl.BlockSpec((kernel_size, HW), lambda b: (0, 0)),     # column masks
                pl.BlockSpec((None, C, HW), lambda b: (b, 0, 0)),      # x (batch dim squeezed)
            ],
            out_specs=pl.BlockSpec((None, C, HW), lambda b: (b, 0, 0)),
            scratch_shapes=[pltpu.VMEM((2, HWP), jnp.float32)],
        ),
        # TODO(synk): for very large C*H*W slabs (v7x: 64 MiB VMEM) add an H-tile grid
        # axis with a `pad`-row halo plus a second "parallel" axis so both v7x
        # TensorCores stay busy even when B == 1; not needed at these block sizes.
        compiler_params=pltpu.CompilerParams(
            dimension_semantics=("parallel",)),
    )(w_flat, colmask, x_flat)

    return out_flat.reshape(B, C, H, W)


def reference(x, w, kernel_size=7):
    """Pure-JAX reference mirroring the PyTorch forward."""
    pad = 3 if kernel_size == 7 else 1
    avg = jnp.mean(x, axis=1, keepdims=True)
    mx = jnp.max(x, axis=1, keepdims=True)
    x1 = jnp.concatenate([avg, mx], axis=1)
    y = jax.lax.conv_general_dilated(
        x1, w, window_strides=(1, 1), padding=[(pad, pad), (pad, pad)],
        dimension_numbers=("NCHW", "OIHW", "NCHW"))
    return jax.nn.sigmoid(y) * x


if __name__ == "__main__":
    key = jax.random.PRNGKey(0)
    key_x, key_w = jax.random.split(key)
    B, C, H, W = 2, 4, 16, 16
    KS = 7
    x = jax.random.normal(key_x, (B, C, H, W), dtype=jnp.float32)

    # Deterministic conv weight init (uniform in +/- 1/sqrt(fan_in), like PyTorch default).
    fan_in = 2 * KS * KS
    bound = (1.0 / fan_in) ** 0.5
    w = jax.random.uniform(key_w, (1, 2, KS, KS), jnp.float32, -bound, bound)

    out = jax.block_until_ready(spatial_attention(x, w, kernel_size=KS))
    ref = reference(x, w, kernel_size=KS)

    assert out.shape == (B, C, H, W)
    assert jnp.allclose(out, ref, atol=1e-5, rtol=1e-5), "mismatch vs reference"
    print("KERNEL_OK")
</pallas_src>

<mosaic_0001>
module attributes {stable_mosaic.version = 11 : i64} {
  func.func @kernel(%arg0: i32, %arg1: memref<98xf32, #tpu.memory_space<smem>>, %arg2: memref<7x256xf32, #tpu.memory_space<vmem>>, %arg3: memref<1x4x256xf32, #tpu.memory_space<vmem>>, %arg4: memref<1x4x256xf32, #tpu.memory_space<vmem>>, %arg5: memref<2x358xf32, #tpu.memory_space<vmem>>) attributes {dimension_semantics = [#tpu.dimension_semantics<parallel>], iteration_bounds = array<i64: 2>, scalar_prefetch = 0 : i64, scratch_operands = 1 : i64, tpu.core_type = #tpu.core_type<tc>, window_params = [{transform_indices = @transform_0, window_bounds = array<i64: 98>}, {pipeline_mode = #tpu.pipeline_mode<synchronous>, transform_indices = @transform_1, window_bounds = array<i64: 7, 256>}, {transform_indices = @transform_2, window_bounds = array<i64: 1, 4, 256>}, {transform_indices = @transform_3, window_bounds = array<i64: 1, 4, 256>}]} {
    %cst = arith.constant 0.000000e+00 : f32
    %0 = vector.broadcast %cst : f32 to vector<1x256xf32>
    %cst_0 = arith.constant 0xFF800000 : f32
    %1 = vector.broadcast %cst_0 : f32 to vector<1x256xf32>
    %c0 = arith.constant 0 : index
    %c0_1 = arith.constant 0 : index
    %c0_2 = arith.constant 0 : index
    %2 = vector.load %arg3[%c0, %c0_1, %c0_2] : memref<1x4x256xf32, #tpu.memory_space<vmem>>, vector<1x4x256xf32>
    %3 = vector.shape_cast %2 : vector<1x4x256xf32> to vector<4x256xf32>
    %cst_3 = arith.constant dense<0.000000e+00> : vector<256xf32>
    %4 = vector.multi_reduction <add>, %3, %cst_3 [0] : vector<4x256xf32> to vector<256xf32>
    %5 = vector.shape_cast %4 : vector<256xf32> to vector<1x256xf32>
    %6 = arith.addf %0, %5 : vector<1x256xf32>
    %cst_4 = arith.constant dense<0xFF800000> : vector<256xf32>
    %7 = vector.multi_reduction <maximumf>, %3, %cst_4 [0] : vector<4x256xf32> to vector<256xf32>
    %8 = vector.shape_cast %7 : vector<256xf32> to vector<1x256xf32>
    %9 = arith.maximumf %1, %8 : vector<1x256xf32>
    %cst_5 = arith.constant 2.500000e-01 : f32
    %10 = vector.broadcast %cst_5 : f32 to vector<1x256xf32>
    %11 = arith.mulf %6, %10 : vector<1x256xf32>
    %cst_6 = arith.constant 0.000000e+00 : f32
    %12 = vector.broadcast %cst_6 : f32 to vector<2x358xf32>
    %c0_7 = arith.constant 0 : index
    %c0_8 = arith.constant 0 : index
    %13 = vector.load %arg5[%c0_7, %c0_8] : memref<2x358xf32, #tpu.memory_space<vmem>>, vector<2x358xf32>
    tpu.vector_store %arg5[%c0_7, %c0_8], %12 {strides = array<i32>} : memref<2x358xf32, #tpu.memory_space<vmem>>, vector<2x358xf32>,
    %c0_9 = arith.constant 0 : index
    %c51 = arith.constant 51 : index
    %14 = vector.load %arg5[%c0_9, %c51] : memref<2x358xf32, #tpu.memory_space<vmem>>, vector<1x256xf32>
    tpu.vector_store %arg5[%c0_9, %c51], %11 {strides = array<i32>} : memref<2x358xf32, #tpu.memory_space<vmem>>, vector<1x256xf32>,
    %c1 = arith.constant 1 : index
    %c51_10 = arith.constant 51 : index
    %15 = vector.load %arg5[%c1, %c51_10] : memref<2x358xf32, #tpu.memory_space<vmem>>, vector<1x256xf32>
    tpu.vector_store %arg5[%c1, %c51_10], %9 {strides = array<i32>} : memref<2x358xf32, #tpu.memory_space<vmem>>, vector<1x256xf32>,
    %c0_11 = arith.constant 0 : index
    %c0_12 = arith.constant 0 : index
    %16 = vector.load %arg2[%c0_11, %c0_12] : memref<7x256xf32, #tpu.memory_space<vmem>>, vector<1x256xf32>
    %c1_13 = arith.constant 1 : index
    %c0_14 = arith.constant 0 : index
    %17 = vector.load %arg2[%c1_13, %c0_14] : memref<7x256xf32, #tpu.memory_space<vmem>>, vector<1x256xf32>
    %c2 = arith.constant 2 : index
    %c0_15 = arith.constant 0 : index
    %18 = vector.load %arg2[%c2, %c0_15] : memref<7x256xf32, #tpu.memory_space<vmem>>, vector<1x256xf32>
    %c3 = arith.constant 3 : index
    %c0_16 = arith.constant 0 : index
    %19 = vector.load %arg2[%c3, %c0_16] : memref<7x256xf32, #tpu.memory_space<vmem>>, vector<1x256xf32>
    %c4 = arith.constant 4 : index
    %c0_17 = arith.constant 0 : index
    %20 = vector.load %arg2[%c4, %c0_17] : memref<7x256xf32, #tpu.memory_space<vmem>>, vector<1x256xf32>
    %c5 = arith.constant 5 : index
    %c0_18 = arith.constant 0 : index
    %21 = vector.load %arg2[%c5, %c0_18] : memref<7x256xf32, #tpu.memory_space<vmem>>, vector<1x256xf32>
    %c6 = arith.constant 6 : index
    %c0_19 = arith.constant 0 : index
    %22 = vector.load %arg2[%c6, %c0_19] : memref<7x256xf32, #tpu.memory_space<vmem>>, vector<1x256xf32>
    %cst_20 = arith.constant 0.000000e+00 : f32
    %23 = vector.broadcast %cst_20 : f32 to vector<1x256xf32>
    %cst_21 = arith.constant 0.000000e+00 : f32
    %24 = vector.broadcast %cst_21 : f32 to vector<1x256xf32>
    %cst_22 = arith.constant 0.000000e+00 : f32
    %25 = vector.broadcast %cst_22 : f32 to vector<1x256xf32>
    %cst_23 = arith.constant 0.000000e+00 : f32
    %26 = vector.broadcast %cst_23 : f32 to vector<1x256xf32>
    %c0_24 = arith.constant 0 : index
    %c0_25 = arith.constant 0 : index
    %27 = vector.load %arg5[%c0_24, %c0_25] : memref<2x358xf32, #tpu.memory_space<vmem>>, vector<1x256xf32>
    %c0_26 = arith.constant 0 : index
    %28 = memref.load %arg1[%c0_26] : memref<98xf32, #tpu.memory_space<smem>>
    %29 = arith.mulf %27, %16 : vector<1x256xf32>
    %30 = vector.broadcast %28 : f32 to vector<1x256xf32>
    %31 = arith.mulf %30, %29 : vector<1x256xf32>
    %32 = arith.addf %23, %31 : vector<1x256xf32>
    %c0_27 = arith.constant 0 : index
    %c1_28 = arith.constant 1 : index
    %33 = vector.load %arg5[%c0_27, %c1_28] : memref<2x358xf32, #tpu.memory_space<vmem>>, vector<1x256xf32>
    %c1_29 = arith.constant 1 : index
    %34 = memref.load %arg1[%c1_29] : memref<98xf32, #tpu.memory_space<smem>>
    %35 = arith.mulf %33, %17 : vector<1x256xf32>
    %36 = vector.broadcast %34 : f32 to vector<1x256xf32>
    %37 = arith.mulf %36, %35 : vector<1x256xf32>
    %38 = arith.addf %24, %37 : vector<1x256xf32>
    %c0_30 = arith.constant 0 : index
    %c2_31 = arith.constant 2 : index
    %39 = vector.load %arg5[%c0_30, %c2_31] : memref<2x358xf32, #tpu.memory_space<vmem>>, vector<1x256xf32>
    %c2_32 = arith.constant 2 : index
    %40 = memref.load %arg1[%c2_32] : memref<98xf32, #tpu.memory_space<smem>>
    %41 = arith.mulf %39, %18 : vector<1x256xf32>
    %42 = vector.broadcast %40 : f32 to vector<1x256xf32>
    %43 = arith.mulf %42, %41 : vector<1x256xf32>
    %44 = arith.addf %25, %43 : vector<1x256xf32>
    %c0_33 = arith.constant 0 : index
    %c3_34 = arith.constant 3 : index
    %45 = vector.load %arg5[%c0_33, %c3_34] : memref<2x358xf32, #tpu.memory_space<vmem>>, vector<1x256xf32>
    %c3_35 = arith.constant 3 : index
    %46 = memref.load %arg1[%c3_35] : memref<98xf32, #tpu.memory_space<smem>>
    %47 = arith.mulf %45, %19 : vector<1x256xf32>
    %48 = vector.broadcast %46 : f32 to vector<1x256xf32>
    %49 = arith.mulf %48, %47 : vector<1x256xf32>
    %50 = arith.addf %26, %49 : vector<1x256xf32>
    %c0_36 = arith.constant 0 : index
    %c4_37 = arith.constant 4 : index
    %51 = vector.load %arg5[%c0_36, %c4_37] : memref<2x358xf32, #tpu.memory_space<vmem>>, vector<1x256xf32>
    %c4_38 = arith.constant 4 : index
    %52 = memref.load %arg1[%c4_38] : memref<98xf32, #tpu.memory_space<smem>>
    %53 = arith.mulf %51, %20 : vector<1x256xf32>
    %54 = vector.broadcast %52 : f32 to vector<1x256xf32>
    %55 = arith.mulf %54, %53 : vector<1x256xf32>
    %56 = arith.addf %32, %55 : vector<1x256xf32>
    %c0_39 = arith.constant 0 : index
    %c5_40 = arith.constant 5 : index
    %57 = vector.load %arg5[%c0_39, %c5_40] : memref<2x358xf32, #tpu.memory_space<vmem>>, vector<1x256xf32>
    %c5_41 = arith.constant 5 : index
    %58 = memref.load %arg1[%c5_41] : memref<98xf32, #tpu.memory_space<smem>>
    %59 = arith.mulf %57, %21 : vector<1x256xf32>
    %60 = vector.broadcast %58 : f32 to vector<1x256xf32>
    %61 = arith.mulf %60, %59 : vector<1x256xf32>
    %62 = arith.addf %38, %61 : vector<1x256xf32>
    %c0_42 = arith.constant 0 : index
    %c6_43 = arith.constant 6 : index
    %63 = vector.load %arg5[%c0_42, %c6_43] : memref<2x358xf32, #tpu.memory_space<vmem>>, vector<1x256xf32>
    %c6_44 = arith.constant 6 : index
    %64 = memref.load %arg1[%c6_44] : memref<98xf32, #tpu.memory_space<smem>>
    %65 = arith.mulf %63, %22 : vector<1x256xf32>
    %66 = vector.broadcast %64 : f32 to vector<1x256xf32>
    %67 = arith.mulf %66, %65 : vector<1x256xf32>
    %68 = arith.addf %44, %67 : vector<1x256xf32>
    %c0_45 = arith.constant 0 : index
    %c16 = arith.constant 16 : index
    %69 = vector.load %arg5[%c0_45, %c16] : memref<2x358xf32, #tpu.memory_space<vmem>>, vector<1x256xf32>
    %c7 = arith.constant 7 : index
    %70 = memref.load %arg1[%c7] : memref<98xf32, #tpu.memory_space<smem>>
    %71 = arith.mulf %69, %16 : vector<1x256xf32>
    %72 = vector.broadcast %70 : f32 to vector<1x256xf32>
    %73 = arith.mulf %72, %71 : vector<1x256xf32>
    %74 = arith.addf %50, %73 : vector<1x256xf32>
    %c0_46 = arith.constant 0 : index
    %c17 = arith.constant 17 : index
    %75 = vector.load %arg5[%c0_46, %c17] : memref<2x358xf32, #tpu.memory_space<vmem>>, vector<1x256xf32>
    %c8 = arith.constant 8 : index
    %76 = memref.load %arg1[%c8] : memref<98xf32, #tpu.memory_space<smem>>
    %77 = arith.mulf %75, %17 : vector<1x256xf32>
    %78 = vector.broadcast %76 : f32 to vector<1x256xf32>
    %79 = arith.mulf %78, %77 : vector<1x256xf32>
    %80 = arith.addf %56, %79 : vector<1x256xf32>
    %c0_47 = arith.constant 0 : index
    %c18 = arith.constant 18 : index
    %81 = vector.load %arg5[%c0_47, %c18] : memref<2x358xf32, #tpu.memory_space<vmem>>, vector<1x256xf32>
    %c9 = arith.constant 9 : index
    %82 = memref.load %arg1[%c9] : memref<98xf32, #tpu.memory_space<smem>>
    %83 = arith.mulf %81, %18 : vector<1x256xf32>
    %84 = vector.broadcast %82 : f32 to vector<1x256xf32>
    %85 = arith.mulf %84, %83 : vector<1x256xf32>
    %86 = arith.addf %62, %85 : vector<1x256xf32>
    %c0_48 = arith.constant 0 : index
    %c19 = arith.constant 19 : index
    %87 = vector.load %arg5[%c0_48, %c19] : memref<2x358xf32, #tpu.memory_space<vmem>>, vector<1x256xf32>
    %c10 = arith.constant 10 : index
    %88 = memref.load %arg1[%c10] : memref<98xf32, #tpu.memory_space<smem>>
    %89 = arith.mulf %87, %19 : vector<1x256xf32>
    %90 = vector.broadcast %88 : f32 to vector<1x256xf32>
    %91 = arith.mulf %90, %89 : vector<1x256xf32>
    %92 = arith.addf %68, %91 : vector<1x256xf32>
    %c0_49 = arith.constant 0 : index
    %c20 = arith.constant 20 : index
    %93 = vector.load %arg5[%c0_49, %c20] : memref<2x358xf32, #tpu.memory_space<vmem>>, vector<1x256xf32>
    %c11 = arith.constant 11 : index
    %94 = memref.load %arg1[%c11] : memref<98xf32, #tpu.memory_space<smem>>
    %95 = arith.mulf %93, %20 : vector<1x256xf32>
    %96 = vector.broadcast %94 : f32 to vector<1x256xf32>
    %97 = arith.mulf %96, %95 : vector<1x256xf32>
    %98 = arith.addf %74, %97 : vector<1x256xf32>
    %c0_50 = arith.constant 0 : index
    %c21 = arith.constant 21 : index
    %99 = vector.load %arg5[%c0_50, %c21] : memref<2x358xf32, #tpu.memory_space<vmem>>, vector<1x256xf32>
    %c12 = arith.constant 12 : index
    %100 = memref.load %arg1[%c12] : memref<98xf32, #tpu.memory_space<smem>>
    %101 = arith.mulf %99, %21 : vector<1x256xf32>
    %102 = vector.broadcast %100 : f32 to vector<1x256xf32>
    %103 = arith.mulf %102, %101 : vector<1x256xf32>
    %104 = arith.addf %80, %103 : vector<1x256xf32>
    %c0_51 = arith.constant 0 : index
    %c22 = arith.constant 22 : index
    %105 = vector.load %arg5[%c0_51, %c22] : memref<2x358xf32, #tpu.memory_space<vmem>>, vector<1x256xf32>
    %c13 = arith.constant 13 : index
    %106 = memref.load %arg1[%c13] : memref<98xf32, #tpu.memory_space<smem>>
    %107 = arith.mulf %105, %22 : vector<1x256xf32>
    %108 = vector.broadcast %106 : f32 to vector<1x256xf32>
    %109 = arith.mulf %108, %107 : vector<1x256xf32>
    %110 = arith.addf %86, %109 : vector<1x256xf32>
    %c0_52 = arith.constant 0 : index
    %c32 = arith.constant 32 : index
    %111 = vector.load %arg5[%c0_52, %c32] : memref<2x358xf32, #tpu.memory_space<vmem>>, vector<1x256xf32>
    %c14 = arith.constant 14 : index
    %112 = memref.load %arg1[%c14] : memref<98xf32, #tpu.memory_space<smem>>
    %113 = arith.mulf %111, %16 : vector<1x256xf32>
    %114 = vector.broadcast %112 : f32 to vector<1x256xf32>
    %115 = arith.mulf %114, %113 : vector<1x256xf32>
    %116 = arith.addf %92, %115 : vector<1x256xf32>
    %c0_53 = arith.constant 0 : index
    %c33 = arith.constant 33 : index
    %117 = vector.load %arg5[%c0_53, %c33] : memref<2x358xf32, #tpu.memory_space<vmem>>, vector<1x256xf32>
    %c15 = arith.constant 15 : index
    %118 = memref.load %arg1[%c15] : memref<98xf32, #tpu.memory_space<smem>>
    %119 = arith.mulf %117, %17 : vector<1x256xf32>
    %120 = vector.broadcast %118 : f32 to vector<1x256xf32>
    %121 = arith.mulf %120, %119 : vector<1x256xf32>
    %122 = arith.addf %98, %121 : vector<1x256xf32>
    %c0_54 = arith.constant 0 : index
    %c34 = arith.constant 34 : index
    %123 = vector.load %arg5[%c0_54, %c34] : memref<2x358xf32, #tpu.memory_space<vmem>>, vector<1x256xf32>
    %c16_55 = arith.constant 16 : index
    %124 = memref.load %arg1[%c16_55] : memref<98xf32, #tpu.memory_space<smem>>
    %125 = arith.mulf %123, %18 : vector<1x256xf32>
    %126 = vector.broadcast %124 : f32 to vector<1x256xf32>
    %127 = arith.mulf %126, %125 : vector<1x256xf32>
    %128 = arith.addf %104, %127 : vector<1x256xf32>
    %c0_56 = arith.constant 0 : index
    %c35 = arith.constant 35 : index
    %129 = vector.load %arg5[%c0_56, %c35] : memref<2x358xf32, #tpu.memory_space<vmem>>, vector<1x256xf32>
    %c17_57 = arith.constant 17 : index
    %130 = memref.load %arg1[%c17_57] : memref<98xf32, #tpu.memory_space<smem>>
    %131 = arith.mulf %129, %19 : vector<1x256xf32>
    %132 = vector.broadcast %130 : f32 to vector<1x256xf32>
    %133 = arith.mulf %132, %131 : vector<1x256xf32>
    %134 = arith.addf %110, %133 : vector<1x256xf32>
    %c0_58 = arith.constant 0 : index
    %c36 = arith.constant 36 : index
    %135 = vector.load %arg5[%c0_58, %c36] : memref<2x358xf32, #tpu.memory_space<vmem>>, vector<1x256xf32>
    %c18_59 = arith.constant 18 : index
    %136 = memref.load %arg1[%c18_59] : memref<98xf32, #tpu.memory_space<smem>>
    %137 = arith.mulf %135, %20 : vector<1x256xf32>
    %138 = vector.broadcast %136 : f32 to vector<1x256xf32>
    %139 = arith.mulf %138, %137 : vector<1x256xf32>
    %140 = arith.addf %116, %139 : vector<1x256xf32>
    %c0_60 = arith.constant 0 : index
    %c37 = arith.constant 37 : index
    %141 = vector.load %arg5[%c0_60, %c37] : memref<2x358xf32, #tpu.memory_space<vmem>>, vector<1x256xf32>
    %c19_61 = arith.constant 19 : index
    %142 = memref.load %arg1[%c19_61] : memref<98xf32, #tpu.memory_space<smem>>
    %143 = arith.mulf %141, %21 : vector<1x256xf32>
    %144 = vector.broadcast %142 : f32 to vector<1x256xf32>
    %145 = arith.mulf %144, %143 : vector<1x256xf32>
    %146 = arith.addf %122, %145 : vector<1x256xf32>
    %c0_62 = arith.constant 0 : index
    %c38 = arith.constant 38 : index
    %147 = vector.load %arg5[%c0_62, %c38] : memref<2x358xf32, #tpu.memory_space<vmem>>, vector<1x256xf32>
    %c20_63 = arith.constant 20 : index
    %148 = memref.load %arg1[%c20_63] : memref<98xf32, #tpu.memory_space<smem>>
    %149 = arith.mulf %147, %22 : vector<1x256xf32>
    %150 = vector.broadcast %148 : f32 to vector<1x256xf32>
    %151 = arith.mulf %150, %149 : vector<1x256xf32>
    %152 = arith.addf %128, %151 : vector<1x256xf32>
    %c0_64 = arith.constant 0 : index
    %c48 = arith.constant 48 : index
    %153 = vector.load %arg5[%c0_64, %c48] : memref<2x358xf32, #tpu.memory_space<vmem>>, vector<1x256xf32>
    %c21_65 = arith.constant 21 : index
    %154 = memref.load %arg1[%c21_65] : memref<98xf32, #tpu.memory_space<smem>>
    %155 = arith.mulf %153, %16 : vector<1x256xf32>
    %156 = vector.broadcast %154 : f32 to vector<1x256xf32>
    %157 = arith.mulf %156, %155 : vector<1x256xf32>
    %158 = arith.addf %134, %157 : vector<1x256xf32>
    %c0_66 = arith.constant 0 : index
    %c49 = arith.constant 49 : index
    %159 = vector.load %arg5[%c0_66, %c49] : memref<2x358xf32, #tpu.memory_space<vmem>>, vector<1x256xf32>
    %c22_67 = arith.constant 22 : index
    %160 = memref.load %arg1[%c22_67] : memref<98xf32, #tpu.memory_space<smem>>
    %161 = arith.mulf %159, %17 : vector<1x256xf32>
    %162 = vector.broadcast %160 : f32 to vector<1x256xf32>
    %163 = arith.mulf %162, %161 : vector<1x256xf32>
    %164 = arith.addf %140, %163 : vector<1x256xf32>
    %c0_68 = arith.constant 0 : index
    %c50 = arith.constant 50 : index
    %165 = vector.load %arg5[%c0_68, %c50] : memref<2x358xf32, #tpu.memory_space<vmem>>, vector<1x256xf32>
    %c23 = arith.constant 23 : index
    %166 = memref.load %arg1[%c23] : memref<98xf32, #tpu.memory_space<smem>>
    %167 = arith.mulf %165, %18 : vector<1x256xf32>
    %168 = vector.broadcast %166 : f32 to vector<1x256xf32>
    %169 = arith.mulf %168, %167 : vector<1x256xf32>
    %170 = arith.addf %146, %169 : vector<1x256xf32>
    %c0_69 = arith.constant 0 : index
    %c51_70 = arith.constant 51 : index
    %171 = vector.load %arg5[%c0_69, %c51_70] : memref<2x358xf32, #tpu.memory_space<vmem>>, vector<1x256xf32>
    %c24 = arith.constant 24 : index
    %172 = memref.load %arg1[%c24] : memref<98xf32, #tpu.memory_space<smem>>
    %173 = arith.mulf %171, %19 : vector<1x256xf32>
    %174 = vector.broadcast %172 : f32 to vector<1x256xf32>
    %175 = arith.mulf %174, %173 : vector<1x256xf32>
    %176 = arith.addf %152, %175 : vector<1x256xf32>
    %c0_71 = arith.constant 0 : index
    %c52 = arith.constant 52 : index
    %177 = vector.load %arg5[%c0_71, %c52] : memref<2x358xf32, #tpu.memory_space<vmem>>, vector<1x256xf32>
    %c25 = arith.constant 25 : index
    %178 = memref.load %arg1[%c25] : memref<98xf32, #tpu.memory_space<smem>>
    %179 = arith.mulf %177, %20 : vector<1x256xf32>
    %180 = vector.broadcast %178 : f32 to vector<1x256xf32>
    %181 = arith.mulf %180, %179 : vector<1x256xf32>
    %182 = arith.addf %158, %181 : vector<1x256xf32>
    %c0_72 = arith.constant 0 : index
    %c53 = arith.constant 53 : index
    %183 = vector.load %arg5[%c0_72, %c53] : memref<2x358xf32, #tpu.memory_space<vmem>>, vector<1x256xf32>
    %c26 = arith.constant 26 : index
    %184 = memref.load %arg1[%c26] : memref<98xf32, #tpu.memory_space<smem>>
    %185 = arith.mulf %183, %21 : vector<1x256xf32>
    %186 = vector.broadcast %184 : f32 to vector<1x256xf32>
    %187 = arith.mulf %186, %185 : vector<1x256xf32>
    %188 = arith.addf %164, %187 : vector<1x256xf32>
    %c0_73 = arith.constant 0 : index
    %c54 = arith.constant 54 : index
    %189 = vector.load %arg5[%c0_73, %c54] : memref<2x358xf32, #tpu.memory_space<vmem>>, vector<1x256xf32>
    %c27 = arith.constant 27 : index
    %190 = memref.load %arg1[%c27] : memref<98xf32, #tpu.memory_space<smem>>
    %191 = arith.mulf %189, %22 : vector<1x256xf32>
    %192 = vector.broadcast %190 : f32 to vector<1x256xf32>
    %193 = arith.mulf %192, %191 : vector<1x256xf32>
    %194 = arith.addf %170, %193 : vector<1x256xf32>
    %c0_74 = arith.constant 0 : index
    %c64 = arith.constant 64 : index
    %195 = vector.load %arg5[%c0_74, %c64] : memref<2x358xf32, #tpu.memory_space<vmem>>, vector<1x256xf32>
    %c28 = arith.constant 28 : index
    %196 = memref.load %arg1[%c28] : memref<98xf32, #tpu.memory_space<smem>>
    %197 = arith.mulf %195, %16 : vector<1x256xf32>
    %198 = vector.broadcast %196 : f32 to vector<1x256xf32>
    %199 = arith.mulf %198, %197 : vector<1x256xf32>
    %200 = arith.addf %176, %199 : vector<1x256xf32>
    %c0_75 = arith.constant 0 : index
    %c65 = arith.constant 65 : index
    %201 = vector.load %arg5[%c0_75, %c65] : memref<2x358xf32, #tpu.memory_space<vmem>>, vector<1x256xf32>
    %c29 = arith.constant 29 : index
    %202 = memref.load %arg1[%c29] : memref<98xf32, #tpu.memory_space<smem>>
    %203 = arith.mulf %201, %17 : vector<1x256xf32>
    %204 = vector.broadcast %202 : f32 to vector<1x256xf32>
    %205 = arith.mulf %204, %203 : vector<1x256xf32>
    %206 = arith.addf %182, %205 : vector<1x256xf32>
    %c0_76 = arith.constant 0 : index
    %c66 = arith.constant 66 : index
    %207 = vector.load %arg5[%c0_76, %c66] : memref<2x358xf32, #tpu.memory_space<vmem>>, vector<1x256xf32>
    %c30 = arith.constant 30 : index
    %208 = memref.load %arg1[%c30] : memref<98xf32, #tpu.memory_space<smem>>
    %209 = arith.mulf %207, %18 : vector<1x256xf32>
    %210 = vector.broadcast %208 : f32 to vector<1x256xf32>
    %211 = arith.mulf %210, %209 : vector<1x256xf32>
    %212 = arith.addf %188, %211 : vector<1x256xf32>
    %c0_77 = arith.constant 0 : index
    %c67 = arith.constant 67 : index
    %213 = vector.load %arg5[%c0_77, %c67] : memref<2x358xf32, #tpu.memory_space<vmem>>, vector<1x256xf32>
    %c31 = arith.constant 31 : index
    %214 = memref.load %arg1[%c31] : memref<98xf32, #tpu.memory_space<smem>>
    %215 = arith.mulf %213, %19 : vector<1x256xf32>
    %216 = vector.broadcast %214 : f32 to vector<1x256xf32>
    %217 = arith.mulf %216, %215 : vector<1x256xf32>
    %218 = arith.addf %194, %217 : vector<1x256xf32>
    %c0_78 = arith.constant 0 : index
    %c68 = arith.constant 68 : index
    %219 = vector.load %arg5[%c0_78, %c68] : memref<2x358xf32, #tpu.memory_space<vmem>>, vector<1x256xf32>
    %c32_79 = arith.constant 32 : index
    %220 = memref.load %arg1[%c32_79] : memref<98xf32, #tpu.memory_space<smem>>
    %221 = arith.mulf %219, %20 : vector<1x256xf32>
    %222 = vector.broadcast %220 : f32 to vector<1x256xf32>
    %223 = arith.mulf %222, %221 : vector<1x256xf32>
    %224 = arith.addf %200, %223 : vector<1x256xf32>
    %c0_80 = arith.constant 0 : index
    %c69 = arith.constant 69 : index
    %225 = vector.load %arg5[%c0_80, %c69] : memref<2x358xf32, #tpu.memory_space<vmem>>, vector<1x256xf32>
    %c33_81 = arith.constant 33 : index
    %226 = memref.load %arg1[%c33_81] : memref<98xf32, #tpu.memory_space<smem>>
    %227 = arith.mulf %225, %21 : vector<1x256xf32>
    %228 = vector.broadcast %226 : f32 to vector<1x256xf32>
    %229 = arith.mulf %228, %227 : vector<1x256xf32>
    %230 = arith.addf %206, %229 : vector<1x256xf32>
    %c0_82 = arith.constant 0 : index
    %c70 = arith.constant 70 : index
    %231 = vector.load %arg5[%c0_82, %c70] : memref<2x358xf32, #tpu.memory_space<vmem>>, vector<1x256xf32>
    %c34_83 = arith.constant 34 : index
    %232 = memref.load %arg1[%c34_83] : memref<98xf32, #tpu.memory_space<smem>>
    %233 = arith.mulf %231, %22 : vector<1x256xf32>
    %234 = vector.broadcast %232 : f32 to vector<1x256xf32>
    %235 = arith.mulf %234, %233 : vector<1x256xf32>
    %236 = arith.addf %212, %235 : vector<1x256xf32>
    %c0_84 = arith.constant 0 : index
    %c80 = arith.constant 80 : index
    %237 = vector.load %arg5[%c0_84, %c80] : memref<2x358xf32, #tpu.memory_space<vmem>>, vector<1x256xf32>
    %c35_85 = arith.constant 35 : index
    %238 = memref.load %arg1[%c35_85] : memref<98xf32, #tpu.memory_space<smem>>
    %239 = arith.mulf %237, %16 : vector<1x256xf32>
    %240 = vector.broadcast %238 : f32 to vector<1x256xf32>
    %241 = arith.mulf %240, %239 : vector<1x256xf32>
    %242 = arith.addf %218, %241 : vector<1x256xf32>
    %c0_86 = arith.constant 0 : index
    %c81 = arith.constant 81 : index
    %243 = vector.load %arg5[%c0_86, %c81] : memref<2x358xf32, #tpu.memory_space<vmem>>, vector<1x256xf32>
    %c36_87 = arith.constant 36 : index
    %244 = memref.load %arg1[%c36_87] : memref<98xf32, #tpu.memory_space<smem>>
    %245 = arith.mulf %243, %17 : vector<1x256xf32>
    %246 = vector.broadcast %244 : f32 to vector<1x256xf32>
    %247 = arith.mulf %246, %245 : vector<1x256xf32>
    %248 = arith.addf %224, %247 : vector<1x256xf32>
    %c0_88 = arith.constant 0 : index
    %c82 = arith.constant 82 : index
    %249 = vector.load %arg5[%c0_88, %c82] : memref<2x358xf32, #tpu.memory_space<vmem>>, vector<1x256xf32>
    %c37_89 = arith.constant 37 : index
    %250 = memref.load %arg1[%c37_89] : memref<98xf32, #tpu.memory_space<smem>>
    %251 = arith.mulf %249, %18 : vector<1x256xf32>
    %252 = vector.broadcast %250 : f32 to vector<1x256xf32>
    %253 = arith.mulf %252, %251 : vector<1x256xf32>
    %254 = arith.addf %230, %253 : vector<1x256xf32>
    %c0_90 = arith.constant 0 : index
    %c83 = arith.constant 83 : index
    %255 = vector.load %arg5[%c0_90, %c83] : memref<2x358xf32, #tpu.memory_space<vmem>>, vector<1x256xf32>
    %c38_91 = arith.constant 38 : index
    %256 = memref.load %arg1[%c38_91] : memref<98xf32, #tpu.memory_space<smem>>
    %257 = arith.mulf %255, %19 : vector<1x256xf32>
    %258 = vector.broadcast %256 : f32 to vector<1x256xf32>
    %259 = arith.mulf %258, %257 : vector<1x256xf32>
    %260 = arith.addf %236, %259 : vector<1x256xf32>
    %c0_92 = arith.constant 0 : index
    %c84 = arith.constant 84 : index
    %261 = vector.load %arg5[%c0_92, %c84] : memref<2x358xf32, #tpu.memory_space<vmem>>, vector<1x256xf32>
    %c39 = arith.constant 39 : index
    %262 = memref.load %arg1[%c39] : memref<98xf32, #tpu.memory_space<smem>>
    %263 = arith.mulf %261, %20 : vector<1x256xf32>
    %264 = vector.broadcast %262 : f32 to vector<1x256xf32>
    %265 = arith.mulf %264, %263 : vector<1x256xf32>
    %266 = arith.addf %242, %265 : vector<1x256xf32>
    %c0_93 = arith.constant 0 : index
    %c85 = arith.constant 85 : index
    %267 = vector.load %arg5[%c0_93, %c85] : memref<2x358xf32, #tpu.memory_space<vmem>>, vector<1x256xf32>
    %c40 = arith.constant 40 : index
    %268 = memref.load %arg1[%c40] : memref<98xf32, #tpu.memory_space<smem>>
    %269 = arith.mulf %267, %21 : vector<1x256xf32>
    %270 = vector.broadcast %268 : f32 to vector<1x256xf32>
    %271 = arith.mulf %270, %269 : vector<1x256xf32>
    %272 = arith.addf %248, %271 : vector<1x256xf32>
    %c0_94 = arith.constant 0 : index
    %c86 = arith.constant 86 : index
    %273 = vector.load %arg5[%c0_94, %c86] : memref<2x358xf32, #tpu.memory_space<vmem>>, vector<1x256xf32>
    %c41 = arith.constant 41 : index
    %274 = memref.load %arg1[%c41] : memref<98xf32, #tpu.memory_space<smem>>
    %275 = arith.mulf %273, %22 : vector<1x256xf32>
    %276 = vector.broadcast %274 : f32 to vector<1x256xf32>
    %277 = arith.mulf %276, %275 : vector<1x256xf32>
    %278 = arith.addf %254, %277 : vector<1x256xf32>
    %c0_95 = arith.constant 0 : index
    %c96 = arith.constant 96 : index
    %279 = vector.load %arg5[%c0_95, %c96] : memref<2x358xf32, #tpu.memory_space<vmem>>, vector<1x256xf32>
    %c42 = arith.constant 42 : index
    %280 = memref.load %arg1[%c42] : memref<98xf32, #tpu.memory_space<smem>>
    %281 = arith.mulf %279, %16 : vector<1x256xf32>
    %282 = vector.broadcast %280 : f32 to vector<1x256xf32>
    %283 = arith.mulf %282, %281 : vector<1x256xf32>
    %284 = arith.addf %260, %283 : vector<1x256xf32>
    %c0_96 = arith.constant 0 : index
    %c97 = arith.constant 97 : index
    %285 = vector.load %arg5[%c0_96, %c97] : memref<2x358xf32, #tpu.memory_space<vmem>>, vector<1x256xf32>
    %c43 = arith.constant 43 : index
    %286 = memref.load %arg1[%c43] : memref<98xf32, #tpu.memory_space<smem>>
    %287 = arith.mulf %285, %17 : vector<1x256xf32>
    %288 = vector.broadcast %286 : f32 to vector<1x256xf32>
    %289 = arith.mulf %288, %287 : vector<1x256xf32>
    %290 = arith.addf %266, %289 : vector<1x256xf32>
    %c0_97 = arith.constant 0 : index
    %c98 = arith.constant 98 : index
    %291 = vector.load %arg5[%c0_97, %c98] : memref<2x358xf32, #tpu.memory_space<vmem>>, vector<1x256xf32>
    %c44 = arith.constant 44 : index
    %292 = memref.load %arg1[%c44] : memref<98xf32, #tpu.memory_space<smem>>
    %293 = arith.mulf %291, %18 : vector<1x256xf32>
    %294 = vector.broadcast %292 : f32 to vector<1x256xf32>
    %295 = arith.mulf %294, %293 : vector<1x256xf32>
    %296 = arith.addf %272, %295 : vector<1x256xf32>
    %c0_98 = arith.constant 0 : index
    %c99 = arith.constant 99 : index
    %297 = vector.load %arg5[%c0_98, %c99] : memref<2x358xf32, #tpu.memory_space<vmem>>, vector<1x256xf32>
    %c45 = arith.constant 45 : index
    %298 = memref.load %arg1[%c45] : memref<98xf32, #tpu.memory_space<smem>>
    %299 = arith.mulf %297, %19 : vector<1x256xf32>
    %300 = vector.broadcast %298 : f32 to vector<1x256xf32>
    %301 = arith.mulf %300, %299 : vector<1x256xf32>
    %302 = arith.addf %278, %301 : vector<1x256xf32>
    %c0_99 = arith.constant 0 : index
    %c100 = arith.constant 100 : index
    %303 = vector.load %arg5[%c0_99, %c100] : memref<2x358xf32, #tpu.memory_space<vmem>>, vector<1x256xf32>
    %c46 = arith.constant 46 : index
    %304 = memref.load %arg1[%c46] : memref<98xf32, #tpu.memory_space<smem>>
    %305 = arith.mulf %303, %20 : vector<1x256xf32>
    %306 = vector.broadcast %304 : f32 to vector<1x256xf32>
    %307 = arith.mulf %306, %305 : vector<1x256xf32>
    %308 = arith.addf %284, %307 : vector<1x256xf32>
    %c0_100 = arith.constant 0 : index
    %c101 = arith.constant 101 : index
    %309 = vector.load %arg5[%c0_100, %c101] : memref<2x358xf32, #tpu.memory_space<vmem>>, vector<1x256xf32>
    %c47 = arith.constant 47 : index
    %310 = memref.load %arg1[%c47] : memref<98xf32, #tpu.memory_space<smem>>
    %311 = arith.mulf %309, %21 : vector<1x256xf32>
    %312 = vector.broadcast %310 : f32 to vector<1x256xf32>
    %313 = arith.mulf %312, %311 : vector<1x256xf32>
    %314 = arith.addf %290, %313 : vector<1x256xf32>
    %c0_101 = arith.constant 0 : index
    %c102 = arith.constant 102 : index
    %315 = vector.load %arg5[%c0_101, %c102] : memref<2x358xf32, #tpu.memory_space<vmem>>, vector<1x256xf32>
    %c48_102 = arith.constant 48 : index
    %316 = memref.load %arg1[%c48_102] : memref<98xf32, #tpu.memory_space<smem>>
    %317 = arith.mulf %315, %22 : vector<1x256xf32>
    %318 = vector.broadcast %316 : f32 to vector<1x256xf32>
    %319 = arith.mulf %318, %317 : vector<1x256xf32>
    %320 = arith.addf %296, %319 : vector<1x256xf32>
    %c1_103 = arith.constant 1 : index
    %c0_104 = arith.constant 0 : index
    %321 = vector.load %arg5[%c1_103, %c0_104] : memref<2x358xf32, #tpu.memory_space<vmem>>, vector<1x256xf32>
    %c49_105 = arith.constant 49 : index
    %322 = memref.load %arg1[%c49_105] : memref<98xf32, #tpu.memory_space<smem>>
    %323 = arith.mulf %321, %16 : vector<1x256xf32>
    %324 = vector.broadcast %322 : f32 to vector<1x256xf32>
    %325 = arith.mulf %324, %323 : vector<1x256xf32>
    %326 = arith.addf %302, %325 : vector<1x256xf32>
    %c1_106 = arith.constant 1 : index
    %c1_107 = arith.constant 1 : index
    %327 = vector.load %arg5[%c1_106, %c1_107] : memref<2x358xf32, #tpu.memory_space<vmem>>, vector<1x256xf32>
    %c50_108 = arith.constant 50 : index
    %328 = memref.load %arg1[%c50_108] : memref<98xf32, #tpu.memory_space<smem>>
    %329 = arith.mulf %327, %17 : vector<1x256xf32>
    %330 = vector.broadcast %328 : f32 to vector<1x256xf32>
    %331 = arith.mulf %330, %329 : vector<1x256xf32>
    %332 = arith.addf %308, %331 : vector<1x256xf32>
    %c1_109 = arith.constant 1 : index
    %c2_110 = arith.constant 2 : index
    %333 = vector.load %arg5[%c1_109, %c2_110] : memref<2x358xf32, #tpu.memory_space<vmem>>, vector<1x256xf32>
    %c51_111 = arith.constant 51 : index
    %334 = memref.load %arg1[%c51_111] : memref<98xf32, #tpu.memory_space<smem>>
    %335 = arith.mulf %333, %18 : vector<1x256xf32>
    %336 = vector.broadcast %334 : f32 to vector<1x256xf32>
    %337 = arith.mulf %336, %335 : vector<1x256xf32>
    %338 = arith.addf %314, %337 : vector<1x256xf32>
    %c1_112 = arith.constant 1 : index
    %c3_113 = arith.constant 3 : index
    %339 = vector.load %arg5[%c1_112, %c3_113] : memref<2x358xf32, #tpu.memory_space<vmem>>, vector<1x256xf32>
    %c52_114 = arith.constant 52 : index
    %340 = memref.load %arg1[%c52_114] : memref<98xf32, #tpu.memory_space<smem>>
    %341 = arith.mulf %339, %19 : vector<1x256xf32>
    %342 = vector.broadcast %340 : f32 to vector<1x256xf32>
    %343 = arith.mulf %342, %341 : vector<1x256xf32>
    %344 = arith.addf %320, %343 : vector<1x256xf32>
    %c1_115 = arith.constant 1 : index
    %c4_116 = arith.constant 4 : index
    %345 = vector.load %arg5[%c1_115, %c4_116] : memref<2x358xf32, #tpu.memory_space<vmem>>, vector<1x256xf32>
    %c53_117 = arith.constant 53 : index
    %346 = memref.load %arg1[%c53_117] : memref<98xf32, #tpu.memory_space<smem>>
    %347 = arith.mulf %345, %20 : vector<1x256xf32>
    %348 = vector.broadcast %346 : f32 to vector<1x256xf32>
    %349 = arith.mulf %348, %347 : vector<1x256xf32>
    %350 = arith.addf %326, %349 : vector<1x256xf32>
    %c1_118 = arith.constant 1 : index
    %c5_119 = arith.constant 5 : index
    %351 = vector.load %arg5[%c1_118, %c5_119] : memref<2x358xf32, #tpu.memory_space<vmem>>, vector<1x256xf32>
    %c54_120 = arith.constant 54 : index
    %352 = memref.load %arg1[%c54_120] : memref<98xf32, #tpu.memory_space<smem>>
    %353 = arith.mulf %351, %21 : vector<1x256xf32>
    %354 = vector.broadcast %352 : f32 to vector<1x256xf32>
    %355 = arith.mulf %354, %353 : vector<1x256xf32>
    %356 = arith.addf %332, %355 : vector<1x256xf32>
    %c1_121 = arith.constant 1 : index
    %c6_122 = arith.constant 6 : index
    %357 = vector.load %arg5[%c1_121, %c6_122] : memref<2x358xf32, #tpu.memory_space<vmem>>, vector<1x256xf32>
    %c55 = arith.constant 55 : index
    %358 = memref.load %arg1[%c55] : memref<98xf32, #tpu.memory_space<smem>>
    %359 = arith.mulf %357, %22 : vector<1x256xf32>
    %360 = vector.broadcast %358 : f32 to vector<1x256xf32>
    %361 = arith.mulf %360, %359 : vector<1x256xf32>
    %362 = arith.addf %338, %361 : vector<1x256xf32>
    %c1_123 = arith.constant 1 : index
    %c16_124 = arith.constant 16 : index
    %363 = vector.load %arg5[%c1_123, %c16_124] : memref<2x358xf32, #tpu.memory_space<vmem>>, vector<1x256xf32>
    %c56 = arith.constant 56 : index
    %364 = memref.load %arg1[%c56] : memref<98xf32, #tpu.memory_space<smem>>
    %365 = arith.mulf %363, %16 : vector<1x256xf32>
    %366 = vector.broadcast %364 : f32 to vector<1x256xf32>
    %367 = arith.mulf %366, %365 : vector<1x256xf32>
    %368 = arith.addf %344, %367 : vector<1x256xf32>
    %c1_125 = arith.constant 1 : index
    %c17_126 = arith.constant 17 : index
    %369 = vector.load %arg5[%c1_125, %c17_126] : memref<2x358xf32, #tpu.memory_space<vmem>>, vector<1x256xf32>
    %c57 = arith.constant 57 : index
    %370 = memref.load %arg1[%c57] : memref<98xf32, #tpu.memory_space<smem>>
    %371 = arith.mulf %369, %17 : vector<1x256xf32>
    %372 = vector.broadcast %370 : f32 to vector<1x256xf32>
    %373 = arith.mulf %372, %371 : vector<1x256xf32>
    %374 = arith.addf %350, %373 : vector<1x256xf32>
    %c1_127 = arith.constant 1 : index
    %c18_128 = arith.constant 18 : index
    %375 = vector.load %arg5[%c1_127, %c18_128] : memref<2x358xf32, #tpu.memory_space<vmem>>, vector<1x256xf32>
    %c58 = arith.constant 58 : index
    %376 = memref.load %arg1[%c58] : memref<98xf32, #tpu.memory_space<smem>>
    %377 = arith.mulf %375, %18 : vector<1x256xf32>
    %378 = vector.broadcast %376 : f32 to vector<1x256xf32>
    %379 = arith.mulf %378, %377 : vector<1x256xf32>
    %380 = arith.addf %356, %379 : vector<1x256xf32>
    %c1_129 = arith.constant 1 : index
    %c19_130 = arith.constant 19 : index
    %381 = vector.load %arg5[%c1_129, %c19_130] : memref<2x358xf32, #tpu.memory_space<vmem>>, vector<1x256xf32>
    %c59 = arith.constant 59 : index
    %382 = memref.load %arg1[%c59] : memref<98xf32, #tpu.memory_space<smem>>
    %383 = arith.mulf %381, %19 : vector<1x256xf32>
    %384 = vector.broadcast %382 : f32 to vector<1x256xf32>
    %385 = arith.mulf %384, %383 : vector<1x256xf32>
    %386 = arith.addf %362, %385 : vector<1x256xf32>
    %c1_131 = arith.constant 1 : index
    %c20_132 = arith.constant 20 : index
    %387 = vector.load %arg5[%c1_131, %c20_132] : memref<2x358xf32, #tpu.memory_space<vmem>>, vector<1x256xf32>
    %c60 = arith.constant 60 : index
    %388 = memref.load %arg1[%c60] : memref<98xf32, #tpu.memory_space<smem>>
    %389 = arith.mulf %387, %20 : vector<1x256xf32>
    %390 = vector.broadcast %388 : f32 to vector<1x256xf32>
    %391 = arith.mulf %390, %389 : vector<1x256xf32>
    %392 = arith.addf %368, %391 : vector<1x256xf32>
    %c1_133 = arith.constant 1 : index
    %c21_134 = arith.constant 21 : index
    %393 = vector.load %arg5[%c1_133, %c21_134] : memref<2x358xf32, #tpu.memory_space<vmem>>, vector<1x256xf32>
    %c61 = arith.constant 61 : index
    %394 = memref.load %arg1[%c61] : memref<98xf32, #tpu.memory_space<smem>>
    %395 = arith.mulf %393, %21 : vector<1x256xf32>
    %396 = vector.broadcast %394 : f32 to vector<1x256xf32>
    %397 = arith.mulf %396, %395 : vector<1x256xf32>
    %398 = arith.addf %374, %397 : vector<1x256xf32>
    %c1_135 = arith.constant 1 : index
    %c22_136 = arith.constant 22 : index
    %399 = vector.load %arg5[%c1_135, %c22_136] : memref<2x358xf32, #tpu.memory_space<vmem>>, vector<1x256xf32>
    %c62 = arith.constant 62 : index
    %400 = memref.load %arg1[%c62] : memref<98xf32, #tpu.memory_space<smem>>
    %401 = arith.mulf %399, %22 : vector<1x256xf32>
    %402 = vector.broadcast %400 : f32 to vector<1x256xf32>
    %403 = arith.mulf %402, %401 : vector<1x256xf32>
    %404 = arith.addf %380, %403 : vector<1x256xf32>
    %c1_137 = arith.constant 1 : index
    %c32_138 = arith.constant 32 : index
    %405 = vector.load %arg5[%c1_137, %c32_138] : memref<2x358xf32, #tpu.memory_space<vmem>>, vector<1x256xf32>
    %c63 = arith.constant 63 : index
    %406 = memref.load %arg1[%c63] : memref<98xf32, #tpu.memory_space<smem>>
    %407 = arith.mulf %405, %16 : vector<1x256xf32>
    %408 = vector.broadcast %406 : f32 to vector<1x256xf32>
    %409 = arith.mulf %408, %407 : vector<1x256xf32>
    %410 = arith.addf %386, %409 : vector<1x256xf32>
    %c1_139 = arith.constant 1 : index
    %c33_140 = arith.constant 33 : index
    %411 = vector.load %arg5[%c1_139, %c33_140] : memref<2x358xf32, #tpu.memory_space<vmem>>, vector<1x256xf32>
    %c64_141 = arith.constant 64 : index
    %412 = memref.load %arg1[%c64_141] : memref<98xf32, #tpu.memory_space<smem>>
    %413 = arith.mulf %411, %17 : vector<1x256xf32>
    %414 = vector.broadcast %412 : f32 to vector<1x256xf32>
    %415 = arith.mulf %414, %413 : vector<1x256xf32>
    %416 = arith.addf %392, %415 : vector<1x256xf32>
    %c1_142 = arith.constant 1 : index
    %c34_143 = arith.constant 34 : index
    %417 = vector.load %arg5[%c1_142, %c34_143] : memref<2x358xf32, #tpu.memory_space<vmem>>, vector<1x256xf32>
    %c65_144 = arith.constant 65 : index
    %418 = memref.load %arg1[%c65_144] : memref<98xf32, #tpu.memory_space<smem>>
    %419 = arith.mulf %417, %18 : vector<1x256xf32>
    %420 = vector.broadcast %418 : f32 to vector<1x256xf32>
    %421 = arith.mulf %420, %419 : vector<1x256xf32>
    %422 = arith.addf %398, %421 : vector<1x256xf32>
    %c1_145 = arith.constant 1 : index
    %c35_146 = arith.constant 35 : index
    %423 = vector.load %arg5[%c1_145, %c35_146] : memref<2x358xf32, #tpu.memory_space<vmem>>, vector<1x256xf32>
    %c66_147 = arith.constant 66 : index
    %424 = memref.load %arg1[%c66_147] : memref<98xf32, #tpu.memory_space<smem>>
    %425 = arith.mulf %423, %19 : vector<1x256xf32>
    %426 = vector.broadcast %424 : f32 to vector<1x256xf32>
    %427 = arith.mulf %426, %425 : vector<1x256xf32>
    %428 = arith.addf %404, %427 : vector<1x256xf32>
    %c1_148 = arith.constant 1 : index
    %c36_149 = arith.constant 36 : index
    %429 = vector.load %arg5[%c1_148, %c36_149] : memref<2x358xf32, #tpu.memory_space<vmem>>, vector<1x256xf32>
    %c67_150 = arith.constant 67 : index
    %430 = memref.load %arg1[%c67_150] : memref<98xf32, #tpu.memory_space<smem>>
    %431 = arith.mulf %429, %20 : vector<1x256xf32>
    %432 = vector.broadcast %430 : f32 to vector<1x256xf32>
    %433 = arith.mulf %432, %431 : vector<1x256xf32>
    %434 = arith.addf %410, %433 : vector<1x256xf32>
    %c1_151 = arith.constant 1 : index
    %c37_152 = arith.constant 37 : index
    %435 = vector.load %arg5[%c1_151, %c37_152] : memref<2x358xf32, #tpu.memory_space<vmem>>, vector<1x256xf32>
    %c68_153 = arith.constant 68 : index
    %436 = memref.load %arg1[%c68_153] : memref<98xf32, #tpu.memory_space<smem>>
    %437 = arith.mulf %435, %21 : vector<1x256xf32>
    %438 = vector.broadcast %436 : f32 to vector<1x256xf32>
    %439 = arith.mulf %438, %437 : vector<1x256xf32>
    %440 = arith.addf %416, %439 : vector<1x256xf32>
    %c1_154 = arith.constant 1 : index
    %c38_155 = arith.constant 38 : index
    %441 = vector.load %arg5[%c1_154, %c38_155] : memref<2x358xf32, #tpu.memory_space<vmem>>, vector<1x256xf32>
    %c69_156 = arith.constant 69 : index
    %442 = memref.load %arg1[%c69_156] : memref<98xf32, #tpu.memory_space<smem>>
    %443 = arith.mulf %441, %22 : vector<1x256xf32>
    %444 = vector.broadcast %442 : f32 to vector<1x256xf32>
    %445 = arith.mulf %444, %443 : vector<1x256xf32>
    %446 = arith.addf %422, %445 : vector<1x256xf32>
    %c1_157 = arith.constant 1 : index
    %c48_158 = arith.constant 48 : index
    %447 = vector.load %arg5[%c1_157, %c48_158] : memref<2x358xf32, #tpu.memory_space<vmem>>, vector<1x256xf32>
    %c70_159 = arith.constant 70 : index
    %448 = memref.load %arg1[%c70_159] : memref<98xf32, #tpu.memory_space<smem>>
    %449 = arith.mulf %447, %16 : vector<1x256xf32>
    %450 = vector.broadcast %448 : f32 to vector<1x256xf32>
    %451 = arith.mulf %450, %449 : vector<1x256xf32>
    %452 = arith.addf %428, %451 : vector<1x256xf32>
    %c1_160 = arith.constant 1 : index
    %c49_161 = arith.constant 49 : index
    %453 = vector.load %arg5[%c1_160, %c49_161] : memref<2x358xf32, #tpu.memory_space<vmem>>, vector<1x256xf32>
    %c71 = arith.constant 71 : index
    %454 = memref.load %arg1[%c71] : memref<98xf32, #tpu.memory_space<smem>>
    %455 = arith.mulf %453, %17 : vector<1x256xf32>
    %456 = vector.broadcast %454 : f32 to vector<1x256xf32>
    %457 = arith.mulf %456, %455 : vector<1x256xf32>
    %458 = arith.addf %434, %457 : vector<1x256xf32>
    %c1_162 = arith.constant 1 : index
    %c50_163 = arith.constant 50 : index
    %459 = vector.load %arg5[%c1_162, %c50_163] : memref<2x358xf32, #tpu.memory_space<vmem>>, vector<1x256xf32>
    %c72 = arith.constant 72 : index
    %460 = memref.load %arg1[%c72] : memref<98xf32, #tpu.memory_space<smem>>
    %461 = arith.mulf %459, %18 : vector<1x256xf32>
    %462 = vector.broadcast %460 : f32 to vector<1x256xf32>
    %463 = arith.mulf %462, %461 : vector<1x256xf32>
    %464 = arith.addf %440, %463 : vector<1x256xf32>
    %c1_164 = arith.constant 1 : index
    %c51_165 = arith.constant 51 : index
    %465 = vector.load %arg5[%c1_164, %c51_165] : memref<2x358xf32, #tpu.memory_space<vmem>>, vector<1x256xf32>
    %c73 = arith.constant 73 : index
    %466 = memref.load %arg1[%c73] : memref<98xf32, #tpu.memory_space<smem>>
    %467 = arith.mulf %465, %19 : vector<1x256xf32>
    %468 = vector.broadcast %466 : f32 to vector<1x256xf32>
    %469 = arith.mulf %468, %467 : vector<1x256xf32>
    %470 = arith.addf %446, %469 : vector<1x256xf32>
    %c1_166 = arith.constant 1 : index
    %c52_167 = arith.constant 52 : index
    %471 = vector.load %arg5[%c1_166, %c52_167] : memref<2x358xf32, #tpu.memory_space<vmem>>, vector<1x256xf32>
    %c74 = arith.constant 74 : index
    %472 = memref.load %arg1[%c74] : memref<98xf32, #tpu.memory_space<smem>>
    %473 = arith.mulf %471, %20 : vector<1x256xf32>
    %474 = vector.broadcast %472 : f32 to vector<1x256xf32>
    %475 = arith.mulf %474, %473 : vector<1x256xf32>
    %476 = arith.addf %452, %475 : vector<1x256xf32>
    %c1_168 = arith.constant 1 : index
    %c53_169 = arith.constant 53 : index
    %477 = vector.load %arg5[%c1_168, %c53_169] : memref<2x358xf32, #tpu.memory_space<vmem>>, vector<1x256xf32>
    %c75 = arith.constant 75 : index
    %478 = memref.load %arg1[%c75] : memref<98xf32, #tpu.memory_space<smem>>
    %479 = arith.mulf %477, %21 : vector<1x256xf32>
    %480 = vector.broadcast %478 : f32 to vector<1x256xf32>
    %481 = arith.mulf %480, %479 : vector<1x256xf32>
    %482 = arith.addf %458, %481 : vector<1x256xf32>
    %c1_170 = arith.constant 1 : index
    %c54_171 = arith.constant 54 : index
    %483 = vector.load %arg5[%c1_170, %c54_171] : memref<2x358xf32, #tpu.memory_space<vmem>>, vector<1x256xf32>
    %c76 = arith.constant 76 : index
    %484 = memref.load %arg1[%c76] : memref<98xf32, #tpu.memory_space<smem>>
    %485 = arith.mulf %483, %22 : vector<1x256xf32>
    %486 = vector.broadcast %484 : f32 to vector<1x256xf32>
    %487 = arith.mulf %486, %485 : vector<1x256xf32>
    %488 = arith.addf %464, %487 : vector<1x256xf32>
    %c1_172 = arith.constant 1 : index
    %c64_173 = arith.constant 64 : index
    %489 = vector.load %arg5[%c1_172, %c64_173] : memref<2x358xf32, #tpu.memory_space<vmem>>, vector<1x256xf32>
    %c77 = arith.constant 77 : index
    %490 = memref.load %arg1[%c77] : memref<98xf32, #tpu.memory_space<smem>>
    %491 = arith.mulf %489, %16 : vector<1x256xf32>
    %492 = vector.broadcast %490 : f32 to vector<1x256xf32>
    %493 = arith.mulf %492, %491 : vector<1x256xf32>
    %494 = arith.addf %470, %493 : vector<1x256xf32>
    %c1_174 = arith.constant 1 : index
    %c65_175 = arith.constant 65 : index
    %495 = vector.load %arg5[%c1_174, %c65_175] : memref<2x358xf32, #tpu.memory_space<vmem>>, vector<1x256xf32>
    %c78 = arith.constant 78 : index
    %496 = memref.load %arg1[%c78] : memref<98xf32, #tpu.memory_space<smem>>
    %497 = arith.mulf %495, %17 : vector<1x256xf32>
    %498 = vector.broadcast %496 : f32 to vector<1x256xf32>
    %499 = arith.mulf %498, %497 : vector<1x256xf32>
    %500 = arith.addf %476, %499 : vector<1x256xf32>
    %c1_176 = arith.constant 1 : index
    %c66_177 = arith.constant 66 : index
    %501 = vector.load %arg5[%c1_176, %c66_177] : memref<2x358xf32, #tpu.memory_space<vmem>>, vector<1x256xf32>
    %c79 = arith.constant 79 : index
    %502 = memref.load %arg1[%c79] : memref<98xf32, #tpu.memory_space<smem>>
    %503 = arith.mulf %501, %18 : vector<1x256xf32>
    %504 = vector.broadcast %502 : f32 to vector<1x256xf32>
    %505 = arith.mulf %504, %503 : vector<1x256xf32>
    %506 = arith.addf %482, %505 : vector<1x256xf32>
    %c1_178 = arith.constant 1 : index
    %c67_179 = arith.constant 67 : index
    %507 = vector.load %arg5[%c1_178, %c67_179] : memref<2x358xf32, #tpu.memory_space<vmem>>, vector<1x256xf32>
    %c80_180 = arith.constant 80 : index
    %508 = memref.load %arg1[%c80_180] : memref<98xf32, #tpu.memory_space<smem>>
    %509 = arith.mulf %507, %19 : vector<1x256xf32>
    %510 = vector.broadcast %508 : f32 to vector<1x256xf32>
    %511 = arith.mulf %510, %509 : vector<1x256xf32>
    %512 = arith.addf %488, %511 : vector<1x256xf32>
    %c1_181 = arith.constant 1 : index
    %c68_182 = arith.constant 68 : index
    %513 = vector.load %arg5[%c1_181, %c68_182] : memref<2x358xf32, #tpu.memory_space<vmem>>, vector<1x256xf32>
    %c81_183 = arith.constant 81 : index
    %514 = memref.load %arg1[%c81_183] : memref<98xf32, #tpu.memory_space<smem>>
    %515 = arith.mulf %513, %20 : vector<1x256xf32>
    %516 = vector.broadcast %514 : f32 to vector<1x256xf32>
    %517 = arith.mulf %516, %515 : vector<1x256xf32>
    %518 = arith.addf %494, %517 : vector<1x256xf32>
    %c1_184 = arith.constant 1 : index
    %c69_185 = arith.constant 69 : index
    %519 = vector.load %arg5[%c1_184, %c69_185] : memref<2x358xf32, #tpu.memory_space<vmem>>, vector<1x256xf32>
    %c82_186 = arith.constant 82 : index
    %520 = memref.load %arg1[%c82_186] : memref<98xf32, #tpu.memory_space<smem>>
    %521 = arith.mulf %519, %21 : vector<1x256xf32>
    %522 = vector.broadcast %520 : f32 to vector<1x256xf32>
    %523 = arith.mulf %522, %521 : vector<1x256xf32>
    %524 = arith.addf %500, %523 : vector<1x256xf32>
    %c1_187 = arith.constant 1 : index
    %c70_188 = arith.constant 70 : index
    %525 = vector.load %arg5[%c1_187, %c70_188] : memref<2x358xf32, #tpu.memory_space<vmem>>, vector<1x256xf32>
    %c83_189 = arith.constant 83 : index
    %526 = memref.load %arg1[%c83_189] : memref<98xf32, #tpu.memory_space<smem>>
    %527 = arith.mulf %525, %22 : vector<1x256xf32>
    %528 = vector.broadcast %526 : f32 to vector<1x256xf32>
    %529 = arith.mulf %528, %527 : vector<1x256xf32>
    %530 = arith.addf %506, %529 : vector<1x256xf32>
    %c1_190 = arith.constant 1 : index
    %c80_191 = arith.constant 80 : index
    %531 = vector.load %arg5[%c1_190, %c80_191] : memref<2x358xf32, #tpu.memory_space<vmem>>, vector<1x256xf32>
    %c84_192 = arith.constant 84 : index
    %532 = memref.load %arg1[%c84_192] : memref<98xf32, #tpu.memory_space<smem>>
    %533 = arith.mulf %531, %16 : vector<1x256xf32>
    %534 = vector.broadcast %532 : f32 to vector<1x256xf32>
    %535 = arith.mulf %534, %533 : vector<1x256xf32>
    %536 = arith.addf %512, %535 : vector<1x256xf32>
    %c1_193 = arith.constant 1 : index
    %c81_194 = arith.constant 81 : index
    %537 = vector.load %arg5[%c1_193, %c81_194] : memref<2x358xf32, #tpu.memory_space<vmem>>, vector<1x256xf32>
    %c85_195 = arith.constant 85 : index
    %538 = memref.load %arg1[%c85_195] : memref<98xf32, #tpu.memory_space<smem>>
    %539 = arith.mulf %537, %17 : vector<1x256xf32>
    %540 = vector.broadcast %538 : f32 to vector<1x256xf32>
    %541 = arith.mulf %540, %539 : vector<1x256xf32>
    %542 = arith.addf %518, %541 : vector<1x256xf32>
    %c1_196 = arith.constant 1 : index
    %c82_197 = arith.constant 82 : index
    %543 = vector.load %arg5[%c1_196, %c82_197] : memref<2x358xf32, #tpu.memory_space<vmem>>, vector<1x256xf32>
    %c86_198 = arith.constant 86 : index
    %544 = memref.load %arg1[%c86_198] : memref<98xf32, #tpu.memory_space<smem>>
    %545 = arith.mulf %543, %18 : vector<1x256xf32>
    %546 = vector.broadcast %544 : f32 to vector<1x256xf32>
    %547 = arith.mulf %546, %545 : vector<1x256xf32>
    %548 = arith.addf %524, %547 : vector<1x256xf32>
    %c1_199 = arith.constant 1 : index
    %c83_200 = arith.constant 83 : index
    %549 = vector.load %arg5[%c1_199, %c83_200] : memref<2x358xf32, #tpu.memory_space<vmem>>, vector<1x256xf32>
    %c87 = arith.constant 87 : index
    %550 = memref.load %arg1[%c87] : memref<98xf32, #tpu.memory_space<smem>>
    %551 = arith.mulf %549, %19 : vector<1x256xf32>
    %552 = vector.broadcast %550 : f32 to vector<1x256xf32>
    %553 = arith.mulf %552, %551 : vector<1x256xf32>
    %554 = arith.addf %530, %553 : vector<1x256xf32>
    %c1_201 = arith.constant 1 : index
    %c84_202 = arith.constant 84 : index
    %555 = vector.load %arg5[%c1_201, %c84_202] : memref<2x358xf32, #tpu.memory_space<vmem>>, vector<1x256xf32>
    %c88 = arith.constant 88 : index
    %556 = memref.load %arg1[%c88] : memref<98xf32, #tpu.memory_space<smem>>
    %557 = arith.mulf %555, %20 : vector<1x256xf32>
    %558 = vector.broadcast %556 : f32 to vector<1x256xf32>
    %559 = arith.mulf %558, %557 : vector<1x256xf32>
    %560 = arith.addf %536, %559 : vector<1x256xf32>
    %c1_203 = arith.constant 1 : index
    %c85_204 = arith.constant 85 : index
    %561 = vector.load %arg5[%c1_203, %c85_204] : memref<2x358xf32, #tpu.memory_space<vmem>>, vector<1x256xf32>
    %c89 = arith.constant 89 : index
    %562 = memref.load %arg1[%c89] : memref<98xf32, #tpu.memory_space<smem>>
    %563 = arith.mulf %561, %21 : vector<1x256xf32>
    %564 = vector.broadcast %562 : f32 to vector<1x256xf32>
    %565 = arith.mulf %564, %563 : vector<1x256xf32>
    %566 = arith.addf %542, %565 : vector<1x256xf32>
    %c1_205 = arith.constant 1 : index
    %c86_206 = arith.constant 86 : index
    %567 = vector.load %arg5[%c1_205, %c86_206] : memref<2x358xf32, #tpu.memory_space<vmem>>, vector<1x256xf32>
    %c90 = arith.constant 90 : index
    %568 = memref.load %arg1[%c90] : memref<98xf32, #tpu.memory_space<smem>>
    %569 = arith.mulf %567, %22 : vector<1x256xf32>
    %570 = vector.broadcast %568 : f32 to vector<1x256xf32>
    %571 = arith.mulf %570, %569 : vector<1x256xf32>
    %572 = arith.addf %548, %571 : vector<1x256xf32>
    %c1_207 = arith.constant 1 : index
    %c96_208 = arith.constant 96 : index
    %573 = vector.load %arg5[%c1_207, %c96_208] : memref<2x358xf32, #tpu.memory_space<vmem>>, vector<1x256xf32>
    %c91 = arith.constant 91 : index
    %574 = memref.load %arg1[%c91] : memref<98xf32, #tpu.memory_space<smem>>
    %575 = arith.mulf %573, %16 : vector<1x256xf32>
    %576 = vector.broadcast %574 : f32 to vector<1x256xf32>
    %577 = arith.mulf %576, %575 : vector<1x256xf32>
    %578 = arith.addf %554, %577 : vector<1x256xf32>
    %c1_209 = arith.constant 1 : index
    %c97_210 = arith.constant 97 : index
    %579 = vector.load %arg5[%c1_209, %c97_210] : memref<2x358xf32, #tpu.memory_space<vmem>>, vector<1x256xf32>
    %c92 = arith.constant 92 : index
    %580 = memref.load %arg1[%c92] : memref<98xf32, #tpu.memory_space<smem>>
    %581 = arith.mulf %579, %17 : vector<1x256xf32>
    %582 = vector.broadcast %580 : f32 to vector<1x256xf32>
    %583 = arith.mulf %582, %581 : vector<1x256xf32>
    %584 = arith.addf %560, %583 : vector<1x256xf32>
    %c1_211 = arith.constant 1 : index
    %c98_212 = arith.constant 98 : index
    %585 = vector.load %arg5[%c1_211, %c98_212] : memref<2x358xf32, #tpu.memory_space<vmem>>, vector<1x256xf32>
    %c93 = arith.constant 93 : index
    %586 = memref.load %arg1[%c93] : memref<98xf32, #tpu.memory_space<smem>>
    %587 = arith.mulf %585, %18 : vector<1x256xf32>
    %588 = vector.broadcast %586 : f32 to vector<1x256xf32>
    %589 = arith.mulf %588, %587 : vector<1x256xf32>
    %590 = arith.addf %566, %589 : vector<1x256xf32>
    %c1_213 = arith.constant 1 : index
    %c99_214 = arith.constant 99 : index
    %591 = vector.load %arg5[%c1_213, %c99_214] : memref<2x358xf32, #tpu.memory_space<vmem>>, vector<1x256xf32>
    %c94 = arith.constant 94 : index
    %592 = memref.load %arg1[%c94] : memref<98xf32, #tpu.memory_space<smem>>
    %593 = arith.mulf %591, %19 : vector<1x256xf32>
    %594 = vector.broadcast %592 : f32 to vector<1x256xf32>
    %595 = arith.mulf %594, %593 : vector<1x256xf32>
    %596 = arith.addf %572, %595 : vector<1x256xf32>
    %c1_215 = arith.constant 1 : index
    %c100_216 = arith.constant 100 : index
    %597 = vector.load %arg5[%c1_215, %c100_216] : memref<2x358xf32, #tpu.memory_space<vmem>>, vector<1x256xf32>
    %c95 = arith.constant 95 : index
    %598 = memref.load %arg1[%c95] : memref<98xf32, #tpu.memory_space<smem>>
    %599 = arith.mulf %597, %20 : vector<1x256xf32>
    %600 = vector.broadcast %598 : f32 to vector<1x256xf32>
    %601 = arith.mulf %600, %599 : vector<1x256xf32>
    %602 = arith.addf %578, %601 : vector<1x256xf32>
    %c1_217 = arith.constant 1 : index
    %c101_218 = arith.constant 101 : index
    %603 = vector.load %arg5[%c1_217, %c101_218] : memref<2x358xf32, #tpu.memory_space<vmem>>, vector<1x256xf32>
    %c96_219 = arith.constant 96 : index
    %604 = memref.load %arg1[%c96_219] : memref<98xf32, #tpu.memory_space<smem>>
    %605 = arith.mulf %603, %21 : vector<1x256xf32>
    %606 = vector.broadcast %604 : f32 to vector<1x256xf32>
    %607 = arith.mulf %606, %605 : vector<1x256xf32>
    %608 = arith.addf %584, %607 : vector<1x256xf32>
    %c1_220 = arith.constant 1 : index
    %c102_221 = arith.constant 102 : index
    %609 = vector.load %arg5[%c1_220, %c102_221] : memref<2x358xf32, #tpu.memory_space<vmem>>, vector<1x256xf32>
    %c97_222 = arith.constant 97 : index
    %610 = memref.load %arg1[%c97_222] : memref<98xf32, #tpu.memory_space<smem>>
    %611 = arith.mulf %609, %22 : vector<1x256xf32>
    %612 = vector.broadcast %610 : f32 to vector<1x256xf32>
    %613 = arith.mulf %612, %611 : vector<1x256xf32>
    %614 = arith.addf %590, %613 : vector<1x256xf32>
    %615 = arith.addf %608, %614 : vector<1x256xf32>
    %616 = arith.addf %596, %602 : vector<1x256xf32>
    %617 = arith.addf %615, %616 : vector<1x256xf32>
    %618 = arith.negf %617 : vector<1x256xf32>
    %619 = math.exp %618 : vector<1x256xf32>
    %cst_223 = arith.constant 1.000000e+00 : f32
    %620 = vector.broadcast %cst_223 : f32 to vector<1x256xf32>
    %621 = arith.addf %620, %619 : vector<1x256xf32>
    %622 = arith.divf %620, %621 : vector<1x256xf32>
    %c0_224 = arith.constant 0 : index
    %c0_225 = arith.constant 0 : index
    %c0_226 = arith.constant 0 : index
    %623 = vector.load %arg3[%c0_224, %c0_225, %c0_226] : memref<1x4x256xf32, #tpu.memory_space<vmem>>, vector<1x4x256xf32>
    %624 = vector.shape_cast %623 : vector<1x4x256xf32> to vector<4x256xf32>
    %625 = vector.broadcast %622 : vector<1x256xf32> to vector<4x256xf32>
    %626 = arith.mulf %625, %624 : vector<4x256xf32>
    %c0_227 = arith.constant 0 : index
    %c0_228 = arith.constant 0 : index
    %c0_229 = arith.constant 0 : index
    %627 = vector.load %arg4[%c0_227, %c0_228, %c0_229] : memref<1x4x256xf32, #tpu.memory_space<vmem>>, vector<1x4x256xf32>
    %628 = vector.shape_cast %627 : vector<1x4x256xf32> to vector<4x256xf32>
    %629 = vector.shape_cast %626 : vector<4x256xf32> to vector<1x4x256xf32>
    tpu.vector_store %arg4[%c0_227, %c0_228, %c0_229], %629 {strides = array<i32>} : memref<1x4x256xf32, #tpu.memory_space<vmem>>, vector<1x4x256xf32>,
    return
  }
  func.func @transform_0(%arg0: i32) -> i32 {
    %c0_i32 = arith.constant 0 : i32
    %c0_i32_0 = arith.constant 0 : i32
    return %c0_i32 : i32
  }
  func.func @transform_1(%arg0: i32) -> (i32, i32) {
    %c0_i32 = arith.constant 0 : i32
    %c0_i32_0 = arith.constant 0 : i32
    %c0_i32_1 = arith.constant 0 : i32
    return %c0_i32, %c0_i32_0 : i32, i32
  }
  func.func @transform_2(%arg0: i32) -> (i32, i32, i32) {
    %c0_i32 = arith.constant 0 : i32
    %c0_i32_0 = arith.constant 0 : i32
    %c0_i32_1 = arith.constant 0 : i32
    return %arg0, %c0_i32, %c0_i32_0 : i32, i32, i32
  }
  func.func @transform_3(%arg0: i32) -> (i32, i32, i32) {
    %c0_i32 = arith.constant 0 : i32
    %c0_i32_0 = arith.constant 0 : i32
    %c0_i32_1 = arith.constant 0 : i32
    return %arg0, %c0_i32, %c0_i32_0 : i32, i32, i32
  }
}

</mosaic_0001>

<bundles_post_ra>
// kernel: tpu_custom_call.1
= control target key start
LH: loop header
LB: loop body
LE: loop exit
PB: predicated region body
PF: predicated region fallthrough
CT: control target
= control target key end

     0   :  { %8 = vsyncpa [#allocation6], 0  ;;  %s3783_s0 = inlined_call_operand.hbm [shape: f32[98], index: 0, kind: input, shape index: {}]   ;;  %s3784_s1 = inlined_call_operand.hbm [shape: f32[7,256], index: 1, kind: input, shape index: {}]   ;;  %s3785_s2 = inlined_call_operand.hbm [shape: f32[2,4,256], index: 2, kind: input, shape index: {}]   ;;  %s3786_s3 = inlined_call_operand.hbm [shape: f32[2,4,256], index: 3, kind: output, shape index: {}]  }
   0x1   :  { %9 = vsyncpa [#allocation4], 0 }
   0x2   :  { %10 = vsyncpa [#allocation9], 0 }
   0x3   :  { %12 = vsyncpa [#allocation9 + $0x1], 0 }
   0x4   :  { %13 = vsyncpa [#allocation5], 0 }
   0x5   :  { %15 = vsyncpa [#allocation5 + $0x1], 0  ;;  %s2371_s12 = smov 0   ;;  %s2373_s13 = smov 0  }
   0x6   :  { %s2375_s14 = smov 0   ;;  %s2377_s15 = smov 0  }
   0x7 LB: > { %s2392_s16 = sadd.s32 4294967295, %s2270_s15   ;;  %s1855_s17 = sadd.s32 4294967294, %s2270_s15   ;;  %s2270_s15 = sphi %s2377_s15, %s3911_s15   ;;  %s2266_s14 = sphi %s2375_s14, %s3910_s14   ;;  %s2262_s13 = sphi %s2373_s13, %s3909_s13   ;;  %s2258_s12 = sphi %s2371_s12, %s3908_s12  }
   0x8   : > { %p83_p0 = scmp.ne.s32.totalorder %s2262_s13, %s2258_s12  ;;  %p3787_p1 = scmp.eq.s32.totalorder %s2392_s16, 0 }
   0x9   : > { %p113_p3 = scmp.eq.s32.totalorder %s1855_s17, 1  ;;  %p1856_p5 = scmp.ge.s32.totalorder %s2270_s15, 1 }
   0xa   : > { %p2401_p4 = por %p3787_p1, %p83_p0  ;;  %p120_p7 = scmp.lt.s32.totalorder %s2270_s15, 3 }
   0xb   : > { %p2406_p6 = por %p113_p3, %p83_p0  ;;  %s2272_s21 = smov [#allocation7]  }
   0xc   : > { %s3837_s18 = scalar_select %p2401_p4, 1, 0 }
   0xd   : > { %s3838_s19 = scalar_select %p2406_p6, 1, 0 }
   0xe   : > { %p2411_p8 = pnand %p1856_p5, %p120_p7  ;;  %s142_s22 = sshll.u32 %s2272_s21, 4  ;;  %s2418_s22 = int_to_ptr.vmem [resolvable:$true] %s142_s22 }
   0xf   : > { %s2427_s24 = sadd.s32 1, %s2270_s15   ;;  %s70_s26 = sadd.s32 1, %s2266_s14 }
  0x10   : > { %p1985_p10 = pneg %p2411_p8  ;;  %s67_s25 = ssub.s32 %s2270_s15, %s2427_s24 }
  0x11   : > { %p2432_p12 = scmp.eq.s32.totalorder %s67_s25, 0  ;;  %s2125_s30 = scalar_lea.hbm %s3783_s0, 16 }
  0x12   : > { %p2422_p11 = pnand %p1985_p10, %p3787_p1  ;;  %p2126_p13 = scmp.ne.s32.totalorder %s3783_s0, %s2125_s30 }
  0x13   : > { %p2132_p7 = scmp.lt.u32.totalorder %s2125_s30, %s3783_s0 }
  0x14   : > { %p2127_p0 = pneg %p2422_p11 }
  0x16   : > { %p2128_p3 = pnand %p2127_p0, %p2126_p13 }
  0x18   : > { %p2129_p5 = pneg %p2128_p3 }
  0x1a   : > { %p2134_p10 = pnand %p2132_p7, %p2129_p5 }
  0x1c   : > { %2137 = shalt.err (!%p2134_p10)
}
  0x1d   : > { %s2273_s8 = smov [#allocation3]   ;;  %s2138_s21 = scalar_lea.hbm %s3784_s1, 256 }
  0x1e   : > { %1988 = dma.hbm_to_smem (!%p2422_p11), %s3783_s0, 16, %s2273_s8, [#allocation6]  }
  0x1f   : > { %p2139_p13 = scmp.ne.s32.totalorder %s3784_s1, %s2138_s21  ;;  %p2145_p7 = scmp.lt.u32.totalorder %s2138_s21, %s3784_s1 }
  0x21   : > { %p2141_p3 = pnand %p2139_p13, %p2127_p0 }
  0x23   : > { %p2142_p5 = pneg %p2141_p3 }
  0x25   : > { %p2147_p10 = pnand %p2145_p7, %p2142_p5 }
  0x27   : > { %2150 = shalt.err (!%p2147_p10)
}
  0x28   : > { %s2151_s4 = scalar_lea.vmem %s2418_s22, 256  ;;  %p2159_p6 = scmp.lt.s32.totalorder %s2418_s22, %s2418_s22 }
  0x29   : > { %p2152_p9 = scmp.ne.s32.totalorder %s2418_s22, %s2151_s4  ;;  %p2160_p13 = scmp.lt.s32.totalorder %s2151_s4, %s2151_s4 }
  0x2b   : > { %p2154_p1 = pnand %p2152_p9, %p2127_p0  ;;  %p2161_p3 = por %p2160_p13, %p2159_p6 }
  0x2d   : > { %p2155_p2 = pneg %p2154_p1 }
  0x2f   : > { %p2162_p4 = pnand %p2161_p3, %p2155_p2 }
  0x31   : > { %2165 = shalt.err (!%p2162_p4)
}
  0x32   : > { %1991 = dma.hbm_to_vmem [thread:$0]  (!%p2422_p11), %s3784_s1, 256, %s2418_s22, [#allocation4]  }
  0x33   : > { %s2485_s7 = scalar_select %p2432_p12, %s2266_s14, %s70_s26  }
  0x34   : > { %p77_p1 = scmp.ne.s32.totalorder %s2266_s14, %s2262_s13  ;;  %p78_p2 = scmp.eq.s32.totalorder %s2270_s15, 0 }
  0x35   : > { %p2002_p4 = scmp.lt.s32.totalorder %s2270_s15, 2  ;;  %s153_s23 = sand.u32 1, %s2266_s14  }
  0x36   : > { %p79_p6 = por %p78_p2, %p77_p1  ;;  %p3842_p9 = scmp.eq.s32.totalorder %s2392_s16, 1 }
  0x37   : > { %s1860_s9 = sshll.u32 %s153_s23, 3  ;;  %s1971_s10 = sshll.u32 %s2270_s15, 7 }
  0x38   : > { %p2494_p0 = por %p3842_p9, %p77_p1  ;;  %s2502_s22 = scalar_lea.hbm %s3785_s2, %s1971_s10 }
  0x39   : > { %s157_s26 = scalar_lea.vmem [#allocation8], %s1860_s9  ;;  %p2506_p11 = pnand %p2002_p4, %p79_p6 }
  0x3a   : > { %s3843_s8 = scalar_select %p2494_p0, 1, 0 }
  0x3b   : > { %s165_s27 = sshll.u32 %s157_s26, 4  ;;  %s154_s25 = scalar_lea.sflag [#allocation9], %s153_s23  ;;  %s2504_s27 = int_to_ptr.vmem [resolvable:$true] %s165_s27 }
  0x3c   : > { %s2166_s28 = scalar_lea.hbm %s2502_s22, 128  ;;  %p2168_p5 = pneg %p2506_p11 }
  0x3d   : > { %p2167_p12 = scmp.ne.s32.totalorder %s2502_s22, %s2166_s28  ;;  %s2171_s4 = scalar_lea.hbm %s3785_s2, 256 }
  0x3e   : > { %p2172_p13 = scmp.lt.u32.totalorder %s2502_s22, %s3785_s2  ;;  %p2173_p3 = scmp.lt.u32.totalorder %s2171_s4, %s2166_s28 }
  0x3f   : > { %p2169_p7 = pnand %p2168_p5, %p2167_p12  ;;  %p2175_p2 = scmp.lt.u32.totalorder %s2166_s28, %s2502_s22 }
  0x40   : > { %p2174_p1 = por %p2173_p3, %p2172_p13 }
  0x41   : > { %p2170_p10 = pneg %p2169_p7 }
  0x42   : > { %p2176_p4 = por %p2175_p2, %p2174_p1 }
  0x44   : > { %p2177_p6 = pnand %p2176_p4, %p2170_p10 }
  0x46   : > { %2180 = shalt.err (!%p2177_p6)
}
  0x47   : > { %s2181_s23 = scalar_lea.vmem %s2504_s27, 128  ;;  %s2274_s9 = smov [#allocation8]  }
  0x48   : > { %p2182_p9 = scmp.ne.s32.totalorder %s2504_s27, %s2181_s23  ;;  %s2186_s10 = sshll.u32 %s2274_s9, 4  ;;  %s2187_s10 = int_to_ptr.vmem [resolvable:$false] %s2186_s10 }
  0x49   : > { %s2188_s11 = scalar_lea.vmem %s2187_s10, 256  ;;  %p2189_p0 = scmp.lt.s32.totalorder %s2504_s27, %s2187_s10 }
  0x4a   : > { %p2184_p12 = pnand %p2182_p9, %p2168_p5  ;;  %p2190_p13 = scmp.lt.s32.totalorder %s2188_s11, %s2181_s23 }
  0x4c   : > { %p2185_p7 = pneg %p2184_p12  ;;  %p2191_p3 = por %p2190_p13, %p2189_p0 }
  0x4e   : > { %p2192_p1 = pnand %p2191_p3, %p2185_p7 }
  0x50   : > { %2195 = shalt.err (!%p2192_p1)
}
  0x51   : > { %1995 = dma.hbm_to_vmem [thread:$0]  (!%p2506_p11), %s2502_s22, 128, %s2504_s27, %s154_s25  }
  0x52   : > { %174 = sbr.rel (%p2411_p8) target bundleno = 738 (0x2e2), region = 32 }
  0x59   : > { %p3845_p5 = scmp.eq.s32.totalorder %s2392_s16, 0 }
  0x5b   : > { %2241 = dma.done.wait (%p3845_p5), [#allocation6], 16   ;;  %p3846_p10 = pmov %p3845_p5 }
  0x5c   : > { %p3847_p2 = pmov %p3845_p5 }
  0x5d   : > { %2243 = vsyncadd (%p3846_p10), [#allocation6], 4294967280 }
  0x5e   : > { %2245 = dma.done.wait (%p3847_p2), [#allocation4], 256   ;;  %p3848_p0 = pmov %p3847_p2 }
  0x5f   : > { %s2546_s17 = sand.u32 1, %s2262_s13   ;;  %p3849_p8 = scmp.ne.s32.totalorder %s3837_s18, 0 }
  0x60   : > { %2247 = vsyncadd (%p3848_p0), [#allocation4], 4294967040  ;;  %s3790_s20 = sshll.u32 %s2546_s17, 3  ;;  %s185_s22 = scalar_lea.sflag [#allocation9], %s2546_s17 }
  0x61   : > { %s2552_s26 = scalar_lea.vmem [#allocation8], %s3790_s20 }
  0x62   : > { %2249 = dma.done.wait (%p3849_p8), %s185_s22, 128  }
  0x63   : > { %2251 = vsyncadd (%p3849_p8), %s185_s22, 4294967168 }
  0x64   : > { %193 = sfence }
  0x65   : > { %v2558_v0 = vld [vmem:[#allocation7 + $0x4] ss:$8 sm:$0x3]  ;;  %v212_v1 = vld [vmem:[%s2552_s26] sm:$0xff]  ;;  %s2275_s27 = smov 20   ;;  %vm216_vm0 = vcmask 1043456   ;;  %v261_v19 = vlaneseq }
  0x66   : > { %490 = vrot.lane.b32.xlu1 %v2558_v0, %s2275_s27  ;;  %v2562_v2 = vld [vmem:[#allocation7] ss:$8 sm:$0x3]  ;;  %v214_v3 = vcombine.high %v212_v1, %v212_v1  ;;  %v2564_v4 = vld [vmem:[#allocation7 + $0x1] ss:$8 sm:$0x3] }
  0x67   : > { %s2276_s21 = smov 16   ;;  %v233_v5 = vsel %vm216_vm0, %v212_v1, -inf  ;;  %v2568_v6 = vld [vmem:[#allocation7 + $0x5] ss:$8 sm:$0x3]  ;;  %s2277_s18 = smov 33  }
  0x68   : > { %420 = vrot.lane.b32.xlu0 %v2562_v2, %s2276_s21  ;;  %v234_v7 = vrot.slane %v233_v5, 4  ;;  %v240_v8 = vsel %vm216_vm0, %v214_v3, -inf  ;;  %v2572_v9 = vld [vmem:[#allocation7 + $0x2] ss:$8 sm:$0x3]  ;;  %v217_v11 = vsel %vm216_vm0, %v212_v1, 0.0 }
  0x69   : > { %v241_v10 = vrot.slane %v240_v8, 4  ;;  %s2278_s25 = smov 37   ;;  %v218_v13 = vrot.slane %v217_v11, 4  ;;  %v224_v14 = vsel %vm216_vm0, %v214_v3, 0.0  ;;  %v2279_v17 = vmov 1966171168  }
  0x6a   : > { %560 = vrot.lane.b32.xlu1 %v2564_v4, %s2277_s18  ;;  %v235_v12 = vmax.f32 %v233_v5, %v234_v7  ;;  %v2577_v15 = vld [vmem:[#allocation7 + $0x6] ss:$8 sm:$0x3]  ;;  %v259_v18 = vunpack.c.l.s4 %v2279_v17  ;;  %v225_v20 = vrot.slane %v224_v14, 4  ;;  %s2280_s28 = smov 50   ;;  %s2281_s29 = smov 54  }
  0x6b   : > { %v242_v16 = vmax.f32 %v240_v8, %v241_v10  ;;  %v219_v22 = vadd.f32 %v218_v13, %v217_v11  ;;  %v2580_v23 = vld [vmem:[#allocation7 + $0x3] ss:$8 sm:$0x3]  ;;  %v2584_v30 = vshrl.u32 %v261_v19, 7  ;;  %s2282_s30 = smov 67   ;;  %vm249_vm1 = vcmask 1041408  }
  0x6c   : > { %629 = vrot.lane.b32.xlu0 %v2568_v6, %s2278_s25  ;;  %v236_v21 = vrot.slane %v235_v12, 2  ;;  %v226_v25 = vadd.f32 %v225_v20, %v224_v14  ;;  %v260_v29 = vunpack.c.0.s8 %v259_v18  ;;  %vm250_vm2 = vcmask 1043458   ;;  %s2283_s4 = smov 84   ;;  %s2284_s5 = smov 80  }
  0x6d   : > { %v243_v24 = vrot.slane %v242_v16, 2  ;;  %v220_v27 = vrot.slane %v219_v22, 2  ;;  %3850 = vst [vmem:[#allocation15_spill] sm:$0xff] %v2584_v30  ;;  %vm252_vm3 = vcmask 832516   ;;  %vm251_vm4 = vmor %vm250_vm2, %vm249_vm1  ;;  %v2285_v42 = vmov 0.0   ;;  %s2286_s6 = smov 97  }
  0x6e   : > { %699 = vrot.lane.b32.xlu1 %v2572_v9, %s2280_s28  ;;  %v237_v26 = vmax.f32 %v235_v12, %v236_v21  ;;  %v227_v31 = vrot.slane %v226_v25, 2  ;;  %v263_v39 = vsub.s32 %v260_v29, %v2584_v30  ;;  %vm253_vm5 = vmor %vm252_vm3, %vm251_vm4  ;;  %s2287_s23 = smov 51   ;;  %s2288_s9 = smov 2   ;;  %vm2663_vm6 = vcmp.ge.s32.totalorder %v261_v19, 51 }
  0x6f   : > { %v244_v28 = vmax.f32 %v242_v16, %v243_v24  ;;  %v221_v33 = vadd.f32 %v220_v27, %v219_v22  ;;  %254 = vst.msk [vmem:[#allocation2] sm:$0x3f] %vm253_vm5, %v2285_v42  ;;  %s2289_s10 = smov 101   ;;  %s2290_s11 = smov 19   ;;  %vm2668_vm7 = vcmp.lt.s32.totalorder %v261_v19, 307  ;;  %vm275_vm8 = vcmask 416768  }
  0x70   : > { %767 = vrot.lane.b32.xlu0 %v2577_v15, %s2281_s29  ;;  %v238_v32 = vrot.slane %v237_v26, 1  ;;  %v228_v35 = vadd.f32 %v227_v31, %v226_v25  ;;  %s2291_s22 = smov 36   ;;  %s2292_s27 = smov 6   ;;  %vm281_vm9 = vmand %vm2663_vm6, %vm2668_vm7  ;;  %vm344_vm10 = vcmask 15360   ;;  %vm405_vm11 = vcmask 48128  }
  0x71   : > { %v245_v34 = vrot.slane %v244_v28, 1  ;;  %v222_v37 = vrot.slane %v221_v33, 1  ;;  %s2293_s21 = smov 53   ;;  %s2294_s18 = smov 32   ;;  %vm476_vm12 = vcmask 154624   ;;  %vm1027_vm13 = vcmask 785408  }
  0x72   : > { %835 = vrot.lane.b32.xlu1 %v2580_v23, %s2282_s30  ;;  %v239_v36 = vmax.f32 %v237_v26, %v238_v32  ;;  %v229_v40 = vrot.slane %v228_v35, 1  ;;  %s2295_s25 = smov 70   ;;  %s2296_s28 = smov 49   ;;  %vm545_vm14 = vcmask 261120   ;;  %vm423_vm15 = vcmask 130048  }
  0x73   : > { %v246_v38 = vmax.f32 %v244_v28, %v245_v34  ;;  %v223_v41 = vadd.f32 %v222_v37, %v221_v33  ;;  %s2297_s29 = smov 96   ;;  %s2298_s30 = smov 66   ;;  %vm615_vm0 = vcmask 293888   ;;  %vm493_vm1 = vcmask 162816  }
  0x74   : > { %972 = vrot.lane.b32.xlu0 %v2558_v0, %s2283_s4  ;;  %v230_v44 = vadd.f32 %v229_v40, %v228_v35  ;;  %s2299_s4 = smov 5   ;;  %s2714_s20 = sld [smem:[#allocation3 + $0x3f]]  ;;  %vm685_vm2 = vcmask 400384   ;;  %vm563_vm3 = vcmask 269312   ;;  %vm753_vm4 = vcmask 433152  }
  0x75   : > { %v285_v43 = vcombine.low %v239_v36, %v246_v38  ;;  %v247_v45 = vmul.f32 0.25, %v223_v41  ;;  %vm441_vm5 = vcmask 138240   ;;  %vm632_vm6 = vcmask 302080   ;;  %p3905_p4 = scmp.ne.s32.totalorder %s3843_s8, 0 }
  0x76   : > { %904 = vrot.lane.b32.xlu1 %v2562_v2, %s2284_s5  ;;  %v248_v47 = vmul.f32 0.25, %v230_v44  ;;  %s2300_s5 = smov 83   ;;  %vm821_vm7 = vcmask 539648  }
  0x77   : > { %v292_v46 = vrot.slane %v285_v43, %v263_v39 }
  0x78   : > { %v257_v49 = vcombine.low %v247_v45, %v248_v47 }
  0x79   : > { %v299_v48 = vrot.slane %v292_v46, %v263_v39 }
  0x7a   : > { %1041 = vrot.lane.b32.xlu1 %v2564_v4, %s2286_s6  ;;  %v264_v50 = vrot.slane %v257_v49, %v263_v39  ;;  %s2301_s6 = smov 18  }
  0x7b   : > { %300 = vrot.lane.b32.xlu0 %v299_v48, %s2287_s23 }
  0x7c   : > { %v271_v51 = vrot.slane %v264_v50, %v263_v39 }
  0x7e   : > { %341 = vrot.lane.b32.xlu1 %v2572_v9, %s2288_s9  ;;  %s2302_s9 = smov 100  }
  0x7f   : > { %1109 = vrot.lane.b32.xlu0 %v2568_v6, %s2289_s10  ;;  %s2303_s10 = smov 4  }
  0x82   : > { %473 = vrot.lane.b32.xlu1 %v2580_v23, %s2290_s11  ;;  %s2304_s11 = smov 3  }
  0x83   : > { %272 = vrot.lane.b32.xlu0 %v271_v51, %s2287_s23 }
  0x86   : > { %612 = vrot.lane.b32.xlu1 %v2558_v0, %s2291_s22  ;;  %s2305_s22 = smov 17  }
  0x87   : > { %402 = vrot.lane.b32.xlu0 %v2577_v15, %s2292_s27  ;;  %s2306_s27 = smov 22  }
  0x8a   : > { %750 = vrot.lane.b32.xlu1 %v2568_v6, %s2293_s21  ;;  %s2307_s21 = smov 21  }
  0x8b   : > { %542 = vrot.lane.b32.xlu0 %v2562_v2, %s2294_s18  ;;  %s2308_s18 = smov 35  }
  0x8e   : > { %887 = vrot.lane.b32.xlu1 %v2577_v15, %s2295_s25  ;;  %s2309_s25 = smov 34  }
  0x8f   : > { %682 = vrot.lane.b32.xlu0 %v2564_v4, %s2296_s28  ;;  %s3808_s28 = smov 48  }
  0x92   : > { %1024 = vrot.lane.b32.xlu1 %v2562_v2, %s2297_s29  ;;  %s2311_s29 = smov 38  }
  0x93   : > { %818 = vrot.lane.b32.xlu0 %v2572_v9, %s2298_s30  ;;  %s2312_s30 = smov 52  }
  0x96   : > { %384 = vrot.lane.b32.xlu1 %v2568_v6, %s2299_s4  ;;  %s3800_s4 = smov 65  }
  0x97   : > { %955 = vrot.lane.b32.xlu0 %v2580_v23, %s2300_s5  ;;  %s2314_s5 = smov 64  }
  0x9a   : > { %456 = vrot.lane.b32.xlu1 %v2572_v9, %s2301_s6  ;;  %s2315_s6 = smov 69  }
  0x9b   : > { %1092 = vrot.lane.b32.xlu0 %v2558_v0, %s2302_s9  ;;  %s2316_s9 = smov 68  }
  0x9e   : > { %365 = vrot.lane.b32.xlu1 %v2558_v0, %s2303_s10  ;;  %s3797_s10 = smov 82  }
  0x9f   : > { %353 = vrot.lane.b32.xlu0 %v2580_v23, %s2304_s11  ;;  %s2318_s11 = smov 81  }
  0xa2   : > { %438 = vrot.lane.b32.xlu1 %v2564_v4, %s2305_s22  ;;  %s2319_s22 = smov 86  }
  0xa3   : > { %525 = vrot.lane.b32.xlu0 %v2577_v15, %s2306_s27  ;;  %s2320_s27 = smov 85  }
  0xa6   : > { %507 = vrot.lane.b32.xlu1 %v2568_v6, %s2307_s21  ;;  %s2321_s21 = smov 99  }
  0xa7   : > { %595 = vrot.lane.b32.xlu0 %v2580_v23, %s2308_s18 }
  0xaa   : > { %577 = vrot.lane.b32.xlu1 %v2572_v9, %s2309_s25 }
  0xab   : > { %664 = vrot.lane.b32.xlu0 %v2562_v2, %s3808_s28 }
  0xae   : > { %646 = vrot.lane.b32.xlu1 %v2577_v15, %s2311_s29  ;;  %s2322_s29 = smov 98  }
  0xaf   : > { %733 = vrot.lane.b32.xlu0 %v2558_v0, %s2312_s30  ;;  %s3791_s30 = smov 1  }
  0xb2   : > { %716 = vrot.lane.b32.xlu1 %v2580_v23, %s2287_s23 }
  0xb3   : > { %801 = vrot.lane.b32.xlu0 %v2564_v4, %s3800_s4 }
  0xb6   : > { %784 = vrot.lane.b32.xlu1 %v2562_v2, %s2314_s5 }
  0xb7   : > { %870 = vrot.lane.b32.xlu0 %v2568_v6, %s2315_s6  ;;  %s2324_s6 = smov 102  }
  0xba   : > { %852 = vrot.lane.b32.xlu1 %v2558_v0, %s2316_s9  ;;  %s1918_s9 = sld [smem:[#allocation3 + $0x33]] }
  0xbb   : > { %938 = vrot.lane.b32.xlu0 %v2572_v9, %s3797_s10 }
  0xbe   : > { %921 = vrot.lane.b32.xlu1 %v2564_v4, %s2318_s11 }
  0xbf   : > { %1007 = vrot.lane.b32.xlu0 %v2577_v15, %s2319_s22  ;;  %s2687_s22 = sld [smem:[#allocation3 + $0x37]] }
  0xc0   : > { %v1169_v16 = vstv %s1918_s9  ;;  %s2706_s9 = sld [smem:[#allocation3 + $0x7]] }
  0xc2   : > { %989 = vrot.lane.b32.xlu1 %v2568_v6, %s2320_s27  ;;  %s2691_s27 = sld [smem:[#allocation3 + $0x3b]] }
  0xc3   : > { %1075 = vrot.lane.b32.xlu0 %v2580_v23, %s2321_s21 }
  0xc5   : > { %v1214_v27 = vstv %s2687_s22  ;;  %s2723_s22 = sld [smem:[#allocation3 + $0xb]] }
  0xc6   : > { %1058 = vrot.lane.b32.xlu1 %v2572_v9, %s2322_s29  ;;  %v427_v63 = vstv %s2706_s9  ;;  %s3795_s9 = smov 112  }
  0xc7   : > { %329 = vrot.lane.b32.xlu0 %v2564_v4, %s3791_s30 }
  0xc8   : > { %v1259_v36 = vstv %s2691_s27  ;;  %s2734_s27 = sld [smem:[#allocation3 + $0x43]] }
  0xca   : > { %1126 = vrot.lane.b32.xlu1 %v2577_v15, %s2324_s6  ;;  %s2695_s6 = sld [smem:[#allocation3 + $0x5b]] }
  0xd0   : > { %v1618_v40 = vstv %s2695_s6  ;;  %s3793_s6 = smov 125  }
  0xd8   : > { %v2642_v52 = vpop.permute.xlu1 %490 }
  0xd9   : > { %v492_v46 = vrot.slane %v2642_v52, 7 }
  0xda   : > { %v2644_v53 = vpop.permute.xlu0 %420 }
  0xdb   : > { %v422_v33 = vrot.slane %v2644_v53, 7 }
  0xdc   : > { %v2646_v54 = vpop.permute.xlu1 %560 }
  0xdd   : > { %v2738_v47 = vsel %vm423_vm15, %v422_v33, %v2644_v53  ;;  %vm1095_vm15 = vcmask 818176  }
  0xde   : > { %v2648_v55 = vpop.permute.xlu0 %629 }
  0xe0   : > { %v2650_v56 = vpop.permute.xlu1 %699 }
  0xe2   : > { %v2652_v57 = vpop.permute.xlu0 %767 }
  0xe4   : > { %v2654_v58 = vpop.permute.xlu1 %835 }
  0xe6   : > { %v2658_v60 = vpop.permute.xlu0 %972 }
  0xe8   : > { %v2656_v59 = vpop.permute.xlu1 %904 }
  0xec   : > { %v2660_v61 = vpop.permute.xlu1 %1041 }
  0xed   : > { %v301_v0 = vpop.permute.xlu0 %300 }
  0xee   : > { %v302_v1 = vrot.slane %v301_v0, 7 }
  0xf0   : > { %v342_v2 = vpop.permute.xlu1 %341  ;;  %v303_v3 = vsel %vm275_vm8, %v302_v1, %v301_v0  ;;  %v1304_v1 = vstv %s2714_s20  ;;  %s2772_s20 = sld [smem:[#allocation3 + $0x13]] }
  0xf1   : > { %306 = vst.msk [vmem:[#allocation2 + $0x1] ss:$2 sm:$0x7] %vm281_vm9, %v303_v3  ;;  %v2677_v4 = vpop.permute.xlu0 %1109  ;;  %v343_v7 = vrot.slane %v342_v2, 7  ;;  %v2761_v3 = vsel %vm493_vm1, %v492_v46, %v2642_v52  ;;  %vm975_vm1 = vcmask 687104  }
  0xf3   : > { %v345_v13 = vsel %vm344_vm10, %v343_v7, %v342_v2  ;;  %vm890_vm10 = vcmask 572416  }
  0xf4   : > { %v474_v5 = vpop.permute.xlu1 %473 }
  0xf5   : > { %v273_v6 = vpop.permute.xlu0 %272  ;;  %v475_v22 = vrot.slane %v474_v5, 7 }
  0xf6   : > { %v274_v8 = vrot.slane %v273_v6, 7 }
  0xf7   : > { %v2708_v28 = vsel %vm476_vm12, %v475_v22, %v474_v5  ;;  %v562_v5 = vrot.slane %v2646_v54, 7  ;;  %vm770_vm12 = vcmask 441344  }
  0xf8   : > { %v2679_v9 = vpop.permute.xlu1 %612  ;;  %v2681_v10 = vld [vmem:[#allocation2 + $0x1] ss:$2 sm:$0x7]  ;;  %v276_v11 = vsel %vm275_vm8, %v274_v8, %v273_v6 }
  0xf9   : > { %282 = vst.msk [vmem:[#allocation2] ss:$2 sm:$0x7] %vm281_vm9, %v276_v11  ;;  %v403_v12 = vpop.permute.xlu0 %402  ;;  %v1168_v15 = vmul.f32 %v2681_v10, %v345_v13  ;;  %v1258_v37 = vmul.f32 %v2681_v10, %v2708_v28  ;;  %v614_v41 = vrot.slane %v2679_v9, 7  ;;  %vm702_vm9 = vcmask 408576  }
  0xfa   : > { %v404_v21 = vrot.slane %v403_v12, 7 }
  0xfb   : > { %v1170_v19 = vmul.f32 %v1169_v16, %v1168_v15  ;;  %v1260_v62 = vmul.f32 %v1259_v36, %v1258_v37  ;;  %v2751_v53 = vsel %vm615_vm0, %v614_v41, %v2679_v9  ;;  %v1349_v15 = vstv %s2734_s27  ;;  %s2805_s27 = sld [smem:[#allocation3 + $0x4f]] }
  0xfc   : > { %v2684_v14 = vpop.permute.xlu1 %750  ;;  %v2703_v26 = vsel %vm405_vm11, %v404_v21, %v403_v12  ;;  %v1348_v9 = vmul.f32 %v2681_v10, %v2751_v53  ;;  %v497_v12 = vstv %s2723_s22  ;;  %s2793_s22 = sld [smem:[#allocation3 + $0x17]]  ;;  %vm3824_vm11 = vcmask 277504  }
  0xfd   : > { %v543_v17 = vpop.permute.xlu0 %542  ;;  %1172 = vrot.lane.b32.xlu0 %v1170_v19, %s3791_s30  ;;  %v1213_v29 = vmul.f32 %v2681_v10, %v2703_v26  ;;  %s2748_s30 = sld [smem:[#allocation3 + $0xf]]  ;;  %v752_v52 = vrot.slane %v2684_v14, 7  ;;  %v631_v19 = vrot.slane %v2648_v55, 7  ;;  %vm907_vm0 = vcmask 654336  }
  0xfe   : > { %v544_v31 = vrot.slane %v543_v17, 7 }
  0xff   : > { %v1215_v38 = vmul.f32 %v1214_v27, %v1213_v29  ;;  %v1350_v29 = vmul.f32 %v1349_v15, %v1348_v9 }
 0x100   : > { %v2689_v18 = vpop.permute.xlu1 %887  ;;  %v2693_v20 = vld [vmem:[#allocation2] ss:$2 sm:$0x7]  ;;  %v2726_v42 = vsel %vm545_vm14, %v544_v31, %v543_v17  ;;  %v2784_v17 = vsel %vm563_vm3, %v562_v5, %v2646_v54  ;;  %v2796_v31 = vsel %vm753_vm4, %v752_v52, %v2684_v14  ;;  %v2810_v14 = vsel %vm632_vm6, %v631_v19, %v2648_v55 }
 0x101   : > { %v2698_v23 = vmul.f32 %v345_v13, %v2693_v20  ;;  %v2701_v24 = vpop.permute.xlu0 %682  ;;  %1217 = vrot.lane.b32.xlu0 %v1215_v38, %s3793_s6  ;;  %v426_v49 = vmul.f32 %v2738_v47, %v2693_v20  ;;  %v1303_v51 = vmul.f32 %v2681_v10, %v2726_v42  ;;  %s2758_s6 = sld [smem:[#allocation3 + $0x47]]  ;;  %v496_v7 = vmul.f32 %v2761_v3, %v2693_v20 }
 0x102   : > { %v684_v0 = vrot.slane %v2701_v24, 7  ;;  %v566_v22 = vmul.f32 %v2784_v17, %v2693_v20  ;;  %v701_v38 = vrot.slane %v2650_v56, 7  ;;  %v635_v41 = vmul.f32 %v2810_v14, %v2693_v20 }
 0x103   : > { %3855 = vst [vmem:[#allocation16_spill] sm:$0xff] %v2698_v23  ;;  %v428_v8 = vmul.f32 %v427_v63, %v426_v49  ;;  %v1305_v11 = vmul.f32 %v1304_v1, %v1303_v51  ;;  %v567_v54 = vstv %s2748_s30  ;;  %s3819_s30 = smov 95   ;;  %v1438_v46 = vmul.f32 %v2681_v10, %v2796_v31 }
 0x104   : > { %v1025_v25 = vpop.permute.xlu1 %1024  ;;  %v2776_v13 = vsel %vm685_vm2, %v684_v0, %v2701_v24  ;;  %v636_v49 = vstv %s2772_s20  ;;  %v2837_v0 = vsel %vm702_vm9, %v701_v38, %v2650_v56  ;;  %v769_v1 = vrot.slane %v2652_v57, 7  ;;  %s3820_s20 = smov 94  }
 0x105   : > { %v2712_v32 = vpop.permute.xlu0 %818  ;;  %v1026_v34 = vrot.slane %v1025_v25, 7  ;;  %1262 = vrot.lane.b32.xlu0 %v1260_v62, %s3795_s9  ;;  %s2781_s9 = sld [smem:[#allocation3 + $0x4b]]  ;;  %v1393_v27 = vmul.f32 %v2681_v10, %v2776_v13  ;;  %3856 = vst [vmem:[#allocation17_spill] sm:$0xff] %v2837_v0  ;;  %v705_v5 = vmul.f32 %v2837_v0, %v2693_v20  ;;  %v706_v56 = vstv %s2793_s22  ;;  %s3798_s22 = smov 78  }
 0x106   : > { %v820_v33 = vrot.slane %v2712_v32, 7  ;;  %v1484_v15 = vstv %s2805_s27  ;;  %vm838_vm14 = vcmask 547840   ;;  %s2878_s27 = sld [smem:[#allocation3 + $0x23]]  ;;  %vm1044_vm2 = vcmask 793600  }
 0x107   : > { %v1028_v39 = vsel %vm1027_vm13, %v1026_v34, %v1025_v25  ;;  %v498_v25 = vmul.f32 %v497_v12, %v496_v7  ;;  %v1394_v34 = vstv %s2758_s6  ;;  %s2824_s6 = sld [smem:[#allocation3 + $0x1b]]  ;;  %vm958_vm13 = vcmask 678912  }
 0x108   : > { %v2717_v35 = vpop.permute.xlu1 %384  ;;  %v2729_v43 = vmul.f32 %v1028_v39, %v2693_v20  ;;  %v1617_v44 = vmul.f32 %v2681_v10, %v1028_v39  ;;  %v1395_v55 = vmul.f32 %v1394_v34, %v1393_v27  ;;  %v2828_v51 = vsel %vm821_vm7, %v820_v33, %v2712_v32 }
 0x109   : > { %v2732_v45 = vpop.permute.xlu0 %955  ;;  %1307 = vrot.lane.b32.xlu0 %v1305_v11, %s2321_s21  ;;  %s3815_s21 = smov 111   ;;  %v1483_v9 = vmul.f32 %v2681_v10, %v2828_v51  ;;  %vm1112_vm3 = vcmask 826368   ;;  %vm387_vm4 = vcmask 39936   ;;  %vm459_vm6 = vcmask 146432  }
 0x10a   : > { %v1619_v50 = vmul.f32 %v1618_v40, %v1617_v44  ;;  %v568_v44 = vmul.f32 %v567_v54, %v566_v22  ;;  %v957_v52 = vrot.slane %v2732_v45, 7  ;;  %v837_v22 = vrot.slane %v2654_v58, 7 }
 0x10b   : > { %v1439_v62 = vstv %s2781_s9  ;;  %s2846_s9 = sld [smem:[#allocation3 + $0x1f]]  ;;  %vm528_vm7 = vcmask 179200   ;;  %vm992_vm9 = vcmask 695296  }
 0x10c   : > { %v2741_v48 = vpop.permute.xlu1 %456  ;;  %1621 = vrot.lane.b32.xlu1 %v1619_v50, %s2308_s18  ;;  %s2327_s18 = smov 115   ;;  %v889_v50 = vrot.slane %v2689_v18, 7  ;;  %v1440_v11 = vmul.f32 %v1439_v62, %v1438_v46  ;;  %v2881_v34 = vsel %vm958_vm13, %v957_v52, %v2732_v45  ;;  %v2891_v46 = vsel %vm838_vm14, %v837_v22, %v2654_v58 }
 0x10d   : > { %v2756_v2 = vpop.permute.xlu0 %1092  ;;  %1352 = vrot.lane.b32.xlu0 %v1350_v29, %s3819_s30  ;;  %v707_v29 = vmul.f32 %v706_v56, %v705_v5  ;;  %v774_v33 = vstv %s2824_s6  ;;  %3857 = vst [vmem:[#allocation18_spill] sm:$0xff] %v2891_v46  ;;  %s2895_s6 = sld [smem:[#allocation3 + $0x27]]  ;;  %v974_v56 = vrot.slane %v2658_v60, 7  ;;  %vm3832_vm13 = vcmask 7168  }
 0x10e   : > { %v2849_v12 = vsel %vm890_vm10, %v889_v50, %v2689_v18  ;;  %v2864_v18 = vsel %vm770_vm12, %v769_v1, %v2652_v57  ;;  %v1485_v57 = vmul.f32 %v1484_v15, %v1483_v9  ;;  %v1094_v38 = vrot.slane %v2756_v2, 7 }
 0x10f   : > { %v773_v27 = vmul.f32 %v2864_v18, %v2693_v20  ;;  %v1528_v54 = vmul.f32 %v2681_v10, %v2849_v12  ;;  %v1572_v1 = vmul.f32 %v2681_v10, %v2881_v34  ;;  %vm598_vm10 = vcmask 285696  }
 0x110   : > { %v2765_v6 = vpop.permute.xlu1 %365  ;;  %430 = vrot.lane.b32.xlu1 %v428_v8, %s2327_s18  ;;  %s2834_s18 = sld [smem:[#allocation3 + $0x53]]  ;;  %v637_v8 = vmul.f32 %v636_v49, %v635_v41  ;;  %v841_v49 = vmul.f32 %v2891_v46, %v2693_v20  ;;  %v2903_v5 = vsel %vm1095_vm15, %v1094_v38, %v2756_v2  ;;  %v1043_v2 = vrot.slane %v2660_v61, 7 }
 0x111   : > { %v2779_v16 = vpop.permute.xlu0 %353  ;;  %1397 = vrot.lane.b32.xlu0 %v1395_v55, %s3797_s10  ;;  %s2859_s10 = sld [smem:[#allocation3 + $0x57]]  ;;  %v906_v55 = vrot.slane %v2656_v59, 7  ;;  %v775_v62 = vmul.f32 %v774_v33, %v773_v27  ;;  %v842_v58 = vstv %s2846_s9  ;;  %s2928_s9 = sld [smem:[#allocation3 + $0x5]]  ;;  %v386_v27 = vrot.slane %v2717_v35, 7 }
 0x112   : > { %v843_v22 = vmul.f32 %v842_v58, %v841_v49  ;;  %v458_v58 = vrot.slane %v2741_v48, 7  ;;  %vm667_vm12 = vcmask 392192   ;;  %vm1129_vm14 = vcmask 834560  }
 0x113   : > { %v979_v49 = vstv %s2895_s6  ;;  %s3804_s6 = smov 31   ;;  %vm736_vm15 = vcmask 424960  }
 0x114   : > { %v439_v21 = vpop.permute.xlu1 %438  ;;  %500 = vrot.lane.b32.xlu1 %v498_v25, %s3815_s21 }
 0x115   : > { %v440_v24 = vrot.slane %v439_v21, 7  ;;  %v2803_v37 = vpop.permute.xlu0 %525  ;;  %1442 = vrot.lane.b32.xlu0 %v1440_v11, %s3798_s22  ;;  %s2888_s22 = sld [smem:[#allocation3 + $0x5f]]  ;;  %v2915_v11 = vsel %vm907_vm0, %v906_v55, %v2656_v59  ;;  %v2944_v55 = vsel %vm1044_vm2, %v1043_v2, %v2660_v61  ;;  %v2957_v61 = vsel %vm387_vm4, %v386_v27, %v2717_v35 }
 0x116   : > { %v1529_v41 = vstv %s2834_s18  ;;  %s3818_s18 = smov 77   ;;  %v910_v59 = vmul.f32 %v2915_v11, %v2693_v20  ;;  %vm3835_vm0 = vcmask 531456   ;;  %vm3827_vm2 = vcmask 670720  }
 0x117   : > { %v2800_v36 = vsel %vm441_vm5, %v440_v24, %v439_v21  ;;  %vm855_vm5 = vcmask 556032   ;;  %vm1078_vm4 = vcmask 809984  }
 0x118   : > { %v2815_v39 = vmul.f32 %v2800_v36, %v2693_v20  ;;  %v2817_v40 = vpop.permute.xlu1 %507  ;;  %570 = vrot.lane.b32.xlu1 %v568_v44, %s2322_s29 }
 0x119   : > { %v2832_v63 = vpop.permute.xlu0 %595  ;;  %1487 = vrot.lane.b32.xlu0 %v1485_v57, %s3800_s4  ;;  %s2912_s4 = sld [smem:[#allocation3 + $0x2b]]  ;;  %v911_v57 = vstv %s2878_s27  ;;  %s2966_s27 = sld [smem:[#allocation3 + $0x6]] }
 0x11b   : > { %v1663_v33 = vstv %s2888_s22  ;;  %s2951_s22 = sld [smem:[#allocation3 + $0x9]] }
 0x11c   : > { %v578_v32 = vpop.permute.xlu1 %577  ;;  %639 = vrot.lane.b32.xlu1 %v637_v8, %s3820_s20 }
 0x11d   : > { %v579_v7 = vrot.slane %v578_v32, 7  ;;  %v2857_v21 = vpop.permute.xlu0 %664 }
 0x11f   : > { %v2854_v19 = vsel %vm3824_vm11, %v579_v7, %v578_v32  ;;  %v1530_v32 = vmul.f32 %v1529_v41, %v1528_v54  ;;  %v1573_v7 = vstv %s2859_s10  ;;  %s3802_s10 = smov 61   ;;  %v2941_v41 = vsel %vm975_vm1, %v974_v56, %v2658_v60 }
 0x120   : > { %v2869_v24 = vmul.f32 %v2854_v19, %v2693_v20  ;;  %v2871_v25 = vpop.permute.xlu1 %646  ;;  %709 = vrot.lane.b32.xlu1 %v707_v29, %s2318_s11  ;;  %v1662_v29 = vmul.f32 %v2681_v10, %v2903_v5  ;;  %v1574_v54 = vmul.f32 %v1573_v7, %v1572_v1  ;;  %3858 = vst [vmem:[#allocation19_spill] sm:$0xff] %v2941_v41  ;;  %v1048_v56 = vstv %s2912_s4  ;;  %s2335_s4 = smov 47  }
 0x121   : > { %v2886_v44 = vpop.permute.xlu0 %733  ;;  %1532 = vrot.lane.b32.xlu0 %v1530_v32, %s3802_s10  ;;  %s2938_s10 = sld [smem:[#allocation3 + $0x2f]]  ;;  %v912_v32 = vmul.f32 %v911_v57, %v910_v59  ;;  %v1047_v60 = vmul.f32 %v2944_v55, %v2693_v20  ;;  %v391_v57 = vstv %s2928_s9  ;;  %s2995_s9 = sld [smem:[#allocation3 + $0xa]]  ;;  %v409_v30 = vstv %s2966_s27 }
 0x122   : > { %v1664_v7 = vmul.f32 %v1663_v33, %v1662_v29  ;;  %v390_v29 = vmul.f32 %v2957_v61, %v2693_v20  ;;  %s3027_s27 = sld [smem:[#allocation3 + $0x15]]  ;;  %vm873_vm1 = vcmask 564224  }
 0x124   : > { %v717_v45 = vpop.permute.xlu1 %716  ;;  %777 = vrot.lane.b32.xlu1 %v775_v62, %s3818_s18  ;;  %v978_v62 = vmul.f32 %v2941_v41, %v2693_v20 }
 0x125   : > { %v718_v50 = vrot.slane %v717_v45, 7  ;;  %v2910_v9 = vpop.permute.xlu0 %801  ;;  %1576 = vrot.lane.b32.xlu0 %v1574_v54, %s3808_s28  ;;  %s2337_s28 = smov 30  }
 0x126   : > { %v980_v54 = vmul.f32 %v979_v49, %v978_v62 }
 0x127   : > { %v2907_v8 = vsel %vm275_vm8, %v718_v50, %v717_v45  ;;  %v1111_v50 = vrot.slane %v2677_v4, 7 }
 0x128   : > { %v2922_v52 = vmul.f32 %v2907_v8, %v2693_v20  ;;  %v2924_v15 = vpop.permute.xlu1 %784  ;;  %845 = vrot.lane.b32.xlu1 %v843_v22, %s2314_s5 }
 0x129   : > { %v2936_v38 = vpop.permute.xlu0 %870  ;;  %1666 = vrot.lane.b32.xlu0 %v1664_v7, %s3804_s6  ;;  %v2977_v27 = vsel %vm1112_vm3, %v1111_v50, %v2677_v4  ;;  %v1116_v4 = vstv %s2938_s10  ;;  %s2998_s6 = sld [smem:[#allocation3 + $0x11]]  ;;  %v408_v7 = vmul.f32 %v2703_v26, %v2693_v20  ;;  %s3814_s10 = smov 124   ;;  %vm1010_vm3 = vcmask 703488  }
 0x12a   : > { %3859 = vst [vmem:[#allocation20_spill] sm:$0xff] %v2977_v27  ;;  %v1115_v33 = vmul.f32 %v2977_v27, %v2693_v20 }
 0x12c   : > { %v853_v45 = vpop.permute.xlu1 %852  ;;  %914 = vrot.lane.b32.xlu1 %v912_v32, %s2287_s23  ;;  %s2982_s23 = sld [smem:[#allocation3 + $0xd]]  ;;  %v1049_v32 = vmul.f32 %v1048_v56, %v1047_v60  ;;  %v392_v60 = vmul.f32 %v391_v57, %v390_v29 }
 0x12d   : > { %v854_v1 = vrot.slane %v853_v45, 7  ;;  %v2964_v59 = vpop.permute.xlu0 %938 }
 0x12e   : > { %1051 = vrot.lane.b32.xlu0 %v1049_v32, %s2309_s25  ;;  %v1117_v32 = vmul.f32 %v1116_v4, %v1115_v33  ;;  %v479_v4 = vmul.f32 %v2708_v28, %v2693_v20 }
 0x12f   : > { %v2961_v2 = vsel %vm855_vm5, %v854_v1, %v853_v45  ;;  %v2988_v45 = vsel %vm459_vm6, %v458_v58, %v2741_v48  ;;  %v527_v1 = vrot.slane %v2803_v37, 7  ;;  %v463_v58 = vstv %s2951_s22  ;;  %s3015_s22 = sld [smem:[#allocation3 + $0xe]] }
 0x130   : > { %v2971_v35 = vmul.f32 %v2961_v2, %v2693_v20  ;;  %v2973_v22 = vpop.permute.xlu1 %921  ;;  %982 = vrot.lane.b32.xlu1 %v980_v54, %s2335_s4  ;;  %v462_v48 = vmul.f32 %v2988_v45, %v2693_v20  ;;  %v597_v54 = vrot.slane %v2832_v63, 7  ;;  %v602_v27 = vstv %s2998_s6  ;;  %s2338_s6 = smov 107  }
 0x131   : > { %v2993_v49 = vpop.permute.xlu0 %1007  ;;  %v3006_v56 = vsel %vm528_vm7, %v527_v1, %v2803_v37  ;;  %vm368_vm5 = vcmask 31744   ;;  %vm510_vm6 = vcmask 171008   ;;  %vm649_vm7 = vcmask 310272  }
 0x132   : > { %1119 = vrot.lane.b32.xlu0 %v1117_v32, %s2337_s28  ;;  %v531_v57 = vmul.f32 %v3006_v56, %v2693_v20  ;;  %v464_v33 = vmul.f32 %v463_v58, %v462_v48  ;;  %v532_v1 = vstv %s2982_s23  ;;  %v480_v32 = vstv %s2995_s9  ;;  %s3038_s23 = sld [smem:[#allocation3 + $0x12]]  ;;  %s3046_s9 = sld [smem:[#allocation3 + $0x19]] }
 0x133   : > { %v481_v41 = vmul.f32 %v480_v32, %v479_v4  ;;  %v618_v32 = vmul.f32 %v2751_v53, %v2693_v20 }
 0x134   : > { %v990_v50 = vpop.permute.xlu1 %989  ;;  %394 = vrot.lane.b32.xlu1 %v392_v60, %s3814_s10  ;;  %v410_v60 = vmul.f32 %v409_v30, %v408_v7 }
 0x135   : > { %v991_v62 = vrot.slane %v990_v50, 7  ;;  %v3013_v29 = vpop.permute.xlu0 %1075 }
 0x136   : > { %412 = vrot.lane.b32.xlu0 %v410_v60, %s3814_s10  ;;  %v735_v60 = vrot.slane %v2886_v44, 7  ;;  %s3064_s10 = sld [smem:[#allocation3 + $0x16]] }
 0x137   : > { %v3010_v23 = vsel %vm992_vm9, %v991_v62, %v990_v50  ;;  %v3033_v50 = vsel %vm598_vm10, %v597_v54, %v2832_v63  ;;  %v666_v62 = vrot.slane %v2857_v21, 7  ;;  %v548_v63 = vmul.f32 %v2726_v42, %v2693_v20 }
 0x138   : > { %v3020_v26 = vmul.f32 %v3010_v23, %v2693_v20  ;;  %v3022_v37 = vpop.permute.xlu1 %1058  ;;  %466 = vrot.lane.b32.xlu1 %v464_v33, %s3815_s21  ;;  %v601_v30 = vmul.f32 %v3033_v50, %v2693_v20  ;;  %v533_v54 = vmul.f32 %v532_v1, %v531_v57  ;;  %v549_v42 = vstv %s3015_s22  ;;  %s3074_s22 = sld [smem:[#allocation3 + $0x1d]] }
 0x139   : > { %v330_v48 = vpop.permute.xlu0 %329  ;;  %v3050_v33 = vsel %vm667_vm12, %v666_v62, %v2857_v21  ;;  %v671_v62 = vstv %s3027_s27  ;;  %s3090_s27 = sld [smem:[#allocation3 + $0x21]]  ;;  %vm3830_vm9 = vcmask 523264  }
 0x13a   : > { %v331_v58 = vrot.slane %v330_v48, 7  ;;  %483 = vrot.lane.b32.xlu0 %v481_v41, %s3815_s21  ;;  %v670_v1 = vmul.f32 %v3050_v33, %v2693_v20  ;;  %v603_v4 = vmul.f32 %v602_v27, %v601_v30  ;;  %v803_v41 = vrot.slane %v2910_v9, 7  ;;  %s3084_s21 = sld [smem:[#allocation3 + $0x1a]] }
 0x13b   : > { %v740_v30 = vstv %s3046_s9  ;;  %s3144_s9 = sld [smem:[#allocation3 + $0x2d]] }
 0x13c   : > { %v1127_v28 = vpop.permute.xlu1 %1126  ;;  %v3054_v46 = vsel %vm3832_vm13, %v331_v58, %v330_v48  ;;  %535 = vrot.lane.b32.xlu1 %v533_v54, %s2338_s6  ;;  %v3079_v48 = vsel %vm736_vm15, %v735_v60, %v2886_v44  ;;  %v550_v58 = vmul.f32 %v549_v42, %v548_v63  ;;  %v672_v53 = vmul.f32 %v671_v62, %v670_v1 }
 0x13d   : > { %v1128_v7 = vrot.slane %v1127_v28, 7  ;;  %v3059_v0 = vmul.f32 %v3054_v46, %v2693_v20  ;;  %v739_v27 = vmul.f32 %v3079_v48, %v2693_v20  ;;  %v688_v44 = vmul.f32 %v2776_v13, %v2693_v20 }
 0x13e   : > { %552 = vrot.lane.b32.xlu0 %v550_v58, %s2322_s29  ;;  %v3096_v63 = vsel %vm3835_vm0, %v803_v41, %v2910_v9  ;;  %v689_v60 = vstv %s3064_s10  ;;  %s3101_s29 = sld [smem:[#allocation3 + $0x1e]]  ;;  %v808_v1 = vstv %s3074_s22  ;;  %v756_v9 = vmul.f32 %v2796_v31, %v2693_v20  ;;  %s3117_s10 = sld [smem:[#allocation3 + $0x22]] }
 0x13f   : > { %v3061_v57 = vsel %vm1129_vm14, %v1128_v7, %v1127_v28  ;;  %v619_v28 = vstv %s3038_s23  ;;  %v872_v7 = vrot.slane %v2936_v38, 7  ;;  %v807_v13 = vmul.f32 %v3096_v63, %v2693_v20  ;;  %s3107_s23 = sld [smem:[#allocation3 + $0x25]]  ;;  %s3817_s22 = smov 60  }
 0x140   : > { %v3069_v21 = vmul.f32 %v3061_v57, %v2693_v20  ;;  %605 = vrot.lane.b32.xlu1 %v603_v4, %s3820_s20  ;;  %v620_v54 = vmul.f32 %v619_v28, %v618_v32  ;;  %v741_v42 = vmul.f32 %v740_v30, %v739_v27  ;;  %v940_v62 = vrot.slane %v2964_v59, 7 }
 0x141   : > { %v3112_v4 = vsel %vm873_vm1, %v872_v7, %v2936_v38  ;;  %v690_v32 = vmul.f32 %v689_v60, %v688_v44  ;;  %v757_v41 = vstv %s3084_s21  ;;  %v809_v31 = vmul.f32 %v808_v1, %v807_v13  ;;  %s3130_s21 = sld [smem:[#allocation3 + $0x29]] }
 0x142   : > { %622 = vrot.lane.b32.xlu0 %v620_v54, %s3820_s20  ;;  %v876_v58 = vmul.f32 %v3112_v4, %v2693_v20  ;;  %v877_v28 = vstv %s3090_s27  ;;  %v824_v38 = vmul.f32 %v2828_v51, %v2693_v20  ;;  %v3127_v27 = vsel %vm3827_vm2, %v940_v62, %v2964_v59  ;;  %s3148_s27 = sld [smem:[#allocation3 + $0x2a]]  ;;  %s3864_s20 = smov 82  }
 0x143   : > { %v758_v30 = vmul.f32 %v757_v41, %v756_v9  ;;  %v944_v51 = vmul.f32 %v3127_v27, %v2693_v20  ;;  %v893_v59 = vmul.f32 %v2849_v12, %v2693_v20  ;;  %v1077_v13 = vrot.slane %v3013_v29, 7 }
 0x144   : > { %674 = vrot.lane.b32.xlu1 %v672_v53, %s2318_s11  ;;  %v1009_v53 = vrot.slane %v2993_v49, 7  ;;  %v825_v44 = vstv %s3101_s29  ;;  %v878_v7 = vmul.f32 %v877_v28, %v876_v58  ;;  %v894_v1 = vstv %s3117_s10  ;;  %s3160_s29 = sld [smem:[#allocation3 + $0x31]]  ;;  %s3170_s10 = sld [smem:[#allocation3 + $0x35]] }
 0x145   : > { %v945_v54 = vstv %s3107_s23  ;;  %v961_v9 = vmul.f32 %v2881_v34, %v2693_v20  ;;  %v3157_v62 = vsel %vm1078_vm4, %v1077_v13, %v3013_v29  ;;  %s3163_s23 = sld [smem:[#allocation3 + $0x2e]]  ;;  %v367_v28 = vrot.slane %v2765_v6, 7 }
 0x146   : > { %692 = vrot.lane.b32.xlu0 %v690_v32, %s2318_s11  ;;  %s1905_s11 = sld [smem:[#allocation3 + $0x26]]  ;;  %v3141_v60 = vsel %vm1010_vm3, %v1009_v53, %v2993_v49  ;;  %v946_v49 = vmul.f32 %v945_v54, %v944_v51  ;;  %v895_v32 = vmul.f32 %v894_v1, %v893_v59  ;;  %v1143_v53 = vld [vmem:[#allocation2 + $0x1] ss:$2 sm:$0x3]  ;;  %v1098_v54 = vmul.f32 %v2903_v5, %v2693_v20 }
 0x147   : > { %v1013_v12 = vmul.f32 %v3141_v60, %v2693_v20  ;;  %v1014_v41 = vstv %s3130_s21  ;;  %s3816_s21 = smov 43   ;;  %v2121_v51 = vld [vmem:[#allocation7] ss:$8 sm:$0x3]  ;;  %v3180_v59 = vsel %vm368_vm5, %v367_v28, %v2765_v6  ;;  %v509_v6 = vrot.slane %v2817_v40, 7 }
 0x148   : > { %743 = vrot.lane.b32.xlu1 %v741_v42, %s3818_s18  ;;  %v826_v42 = vmul.f32 %v825_v44, %v824_v38  ;;  %v1082_v38 = vstv %s3144_s9  ;;  %s3182_s9 = sld [smem:[#allocation3 + $0x39]]  ;;  %v1157_v5 = vmul.f32 %v2681_v10, %v3054_v46  ;;  %vm677_vm14 = vcmask 662528  }
 0x149   : > { %v1015_v34 = vmul.f32 %v1014_v41, %v1013_v12  ;;  %v1191_v12 = vmul.f32 %v2681_v10, %v3180_v59  ;;  %v3206_v46 = vsel %vm510_vm6, %v509_v6, %v2817_v40  ;;  %vm3825_vm15 = vcmask 801792  }
 0x14a   : > { %760 = vrot.lane.b32.xlu0 %v758_v30, %s3818_s18  ;;  %v1031_v30 = vstv %s3148_s27  ;;  %s1921_s27 = sld [smem:[#allocation3 + $0x36]]  ;;  %s3821_s18 = smov 91   ;;  %vm356_vm1 = vcmask 23552   ;;  %vm433_vm3 = vcmask 941056   ;;  %vm451_vm5 = vcmask 908288  }
 0x14b   : > { %v1032_v13 = vmul.f32 %v1031_v30, %v2729_v43  ;;  %v1099_v1 = vstv %s3163_s23  ;;  %s3860_s23 = smov 1   ;;  %vm590_vm6 = vcmask 769024  }
 0x14c   : > { %811 = vrot.lane.b32.xlu1 %v809_v31, %s2314_s5  ;;  %v962_v58 = vstv %s1905_s11  ;;  %v1081_v31 = vmul.f32 %v3157_v62, %v2693_v20  ;;  %s3174_s11 = sld [smem:[#allocation3 + $0x32]]  ;;  %v1100_v43 = vmul.f32 %v1099_v1, %v1098_v54 }
 0x14d   : > { %v963_v29 = vmul.f32 %v962_v58, %v961_v9  ;;  %v1202_v58 = vmul.f32 %v2681_v10, %v2957_v61  ;;  %v1247_v61 = vmul.f32 %v2681_v10, %v2988_v45  ;;  %v1292_v45 = vmul.f32 %v2681_v10, %v3006_v56 }
 0x14e   : > { %828 = vrot.lane.b32.xlu0 %v826_v42, %s2314_s5  ;;  %v1083_v44 = vmul.f32 %v1082_v38, %v1081_v31  ;;  %v1146_v42 = vstv %s3160_s29  ;;  %s1925_s29 = sld [smem:[#allocation3 + $0x3a]]  ;;  %v1237_v31 = vstv %s3182_s9  ;;  %s3217_s9 = sld [smem:[#allocation3 + $0x45]] }
 0x150   : > { %880 = vrot.lane.b32.xlu1 %v878_v7, %s3817_s22  ;;  %v1145_v7 = vmul.f32 %v2121_v51, %v1143_v53  ;;  %v1203_v28 = vstv %s1921_s27  ;;  %v648_v53 = vrot.slane %v2871_v25, 7  ;;  %s1933_s27 = sld [smem:[#allocation3 + $0x42]]  ;;  %v1326_v51 = vmul.f32 %v2681_v10, %v2854_v19 }
 0x151   : > { %v1204_v38 = vmul.f32 %v1203_v28, %v1202_v58  ;;  %v923_v28 = vrot.slane %v2973_v22, 7 }
 0x152   : > { %897 = vrot.lane.b32.xlu0 %v895_v32, %s3817_s22  ;;  %v1147_v20 = vmul.f32 %v1146_v42, %v1145_v7  ;;  %v1158_v9 = vstv %s3174_s11  ;;  %v1236_v32 = vmul.f32 %v2681_v10, %v2800_v36  ;;  %s3861_s11 = smov 125   ;;  %v1281_v36 = vmul.f32 %v2681_v10, %v3206_v46  ;;  %s3862_s22 = smov 112  }
 0x154   : > { %948 = vrot.lane.b32.xlu1 %v946_v49, %s2335_s4  ;;  %v1192_v49 = vstv %s3170_s10  ;;  %s1929_s10 = sld [smem:[#allocation3 + $0x3e]]  ;;  %v1248_v30 = vstv %s1925_s29 }
 0x155   : > { %v1193_v41 = vmul.f32 %v1192_v49, %v1191_v12  ;;  %v1249_v7 = vmul.f32 %v1248_v30, %v1247_v61  ;;  %s3232_s29 = sld [smem:[#allocation3 + $0x46]]  ;;  %v1372_v12 = vstv %s3217_s9  ;;  %v1382_v49 = vmul.f32 %v2681_v10, %v3050_v33  ;;  %s3257_s9 = sld [smem:[#allocation3 + $0x51]] }
 0x156   : > { %965 = vrot.lane.b32.xlu0 %v963_v29, %s2335_s4  ;;  %v1238_v29 = vmul.f32 %v1237_v31, %v1236_v32  ;;  %v1338_v6 = vstv %s1933_s27  ;;  %s3260_s27 = sld [smem:[#allocation3 + $0x4e]] }
 0x158   : > { %1017 = vrot.lane.b32.xlu1 %v1015_v34, %s3816_s21  ;;  %s3191_s21 = sld [smem:[#allocation3 + $0x3d]]  ;;  %v1159_v34 = vmul.f32 %v1158_v9, %v1157_v5 }
 0x15a   : > { %1034 = vrot.lane.b32.xlu0 %v1032_v13, %s2309_s25  ;;  %s3208_s25 = sld [smem:[#allocation3 + $0x41]]  ;;  %v3228_v13 = vsel %vm649_vm7, %v648_v53, %v2871_v25  ;;  %v1293_v42 = vstv %s1929_s10  ;;  %v1337_v25 = vmul.f32 %v2681_v10, %v3033_v50  ;;  %s3244_s10 = sld [smem:[#allocation3 + $0x4a]]  ;;  %v3286_v53 = vsel %vm677_vm14, %v923_v28, %v2973_v22 }
 0x15b   : > { %v1371_v19 = vmul.f32 %v2681_v10, %v3228_v13  ;;  %v1294_v56 = vmul.f32 %v1293_v42, %v1292_v45  ;;  %vm728_vm7 = vcmask 629760  }
 0x15c   : > { %1085 = vrot.lane.b32.xlu1 %v1083_v44, %s2337_s28  ;;  %v1339_v50 = vmul.f32 %v1338_v6, %v1337_v25 }
 0x15d   : > { %v1373_v5 = vmul.f32 %v1372_v12, %v1371_v19 }
 0x15e   : > { %1102 = vrot.lane.b32.xlu0 %v1100_v43, %s2337_s28  ;;  %v1282_v40 = vstv %s3191_s21  ;;  %s3230_s21 = sld [smem:[#allocation3 + $0x49]]  ;;  %v1416_v43 = vmul.f32 %v2681_v10, %v2907_v8 }
 0x15f   : > { %v1283_v44 = vmul.f32 %v1282_v40, %v1281_v36  ;;  %v1507_v40 = vstv %s3257_s9  ;;  %s3306_s9 = sld [smem:[#allocation3 + $0x5d]] }
 0x160   : > { %1149 = vrot.lane.b32.xlu1 %v1147_v20, %s3860_s23  ;;  %v1327_v54 = vstv %s3208_s25  ;;  %s3241_s25 = sld [smem:[#allocation3 + $0x4d]]  ;;  %v786_v20 = vrot.slane %v2924_v15, 7 }
 0x161   : > { %v1328_v1 = vmul.f32 %v1327_v54, %v1326_v51  ;;  %v3297_v51 = vld [vmem:[#allocation2 + $0x1] ss:$2 sm:$0x7]  ;;  %v1060_v54 = vrot.slane %v3022_v37, 7 }
 0x162   : > { %1161 = vrot.lane.b32.xlu0 %v1159_v34, %s3860_s23  ;;  %s3822_s23 = smov 108   ;;  %v3255_v32 = vsel %vm3830_vm9, %v786_v20, %v2924_v15  ;;  %v1427_v15 = vmul.f32 %v2681_v10, %v3079_v48  ;;  %v1472_v48 = vmul.f32 %v2681_v10, %v3096_v63  ;;  %v1561_v12 = vmul.f32 %v3297_v51, %v3127_v27 }
 0x163   : > { %v1461_v33 = vmul.f32 %v2681_v10, %v3255_v32  ;;  %v3323_v6 = vsel %vm3825_vm15, %v1060_v54, %v3022_v37  ;;  %v1651_v28 = vmul.f32 %v3297_v51, %v3157_v62 }
 0x164   : > { %1195 = vrot.lane.b32.xlu1 %v1193_v41, %s3861_s11  ;;  %v1417_v9 = vstv %s3230_s21  ;;  %v1383_v41 = vstv %s3232_s29  ;;  %s3271_s21 = sld [smem:[#allocation3 + $0x55]]  ;;  %s3275_s29 = sld [smem:[#allocation3 + $0x52]]  ;;  %v1640_v27 = vmul.f32 %v3297_v51, %v3323_v6 }
 0x165   : > { %v1418_v58 = vmul.f32 %v1417_v9, %v1416_v43  ;;  %v1384_v31 = vmul.f32 %v1383_v41, %v1382_v49  ;;  %v1606_v49 = vmul.f32 %v3297_v51, %v3141_v60  ;;  %v1641_v9 = vstv %s3306_s9  ;;  %s3351_s9 = sld [smem:[#allocation3 + $0xc]] }
 0x166   : > { %1206 = vrot.lane.b32.xlu0 %v1204_v38, %s3861_s11  ;;  %v1462_v34 = vstv %s3241_s25  ;;  %v1506_v38 = vmul.f32 %v2681_v10, %v2961_v2  ;;  %s3288_s25 = sld [smem:[#allocation3 + $0x59]]  ;;  %v1550_v10 = vmul.f32 %v3297_v51, %v3286_v53  ;;  %v1685_v60 = vmul.f32 %v3297_v51, %v3061_v57  ;;  %v3364_v57 = vld [vmem:[#allocation2] ss:$2 sm:$0x7] }
 0x167   : > { %v1463_v36 = vmul.f32 %v1462_v34, %v1461_v33  ;;  %v355_v33 = vrot.slane %v2779_v16, 7  ;;  %v513_v54 = vmul.f32 %v3364_v57, %v3206_v46  ;;  %v652_v46 = vmul.f32 %v3364_v57, %v3228_v13 }
 0x168   : > { %1240 = vrot.lane.b32.xlu1 %v1238_v29, %s3862_s22  ;;  %v1428_v29 = vstv %s3244_s10  ;;  %s3865_s10 = smov 65   ;;  %v1508_v2 = vmul.f32 %v1507_v40, %v1506_v38  ;;  %v790_v13 = vmul.f32 %v3364_v57, %v3255_v32  ;;  %v926_v32 = vmul.f32 %v3364_v57, %v3286_v53 }
 0x169   : > { %v1429_v61 = vmul.f32 %v1428_v29, %v1427_v15  ;;  %v1063_v53 = vmul.f32 %v3364_v57, %v3323_v6 }
 0x16a   : > { %1251 = vrot.lane.b32.xlu0 %v1249_v7, %s3862_s22  ;;  %v1517_v7 = vmul.f32 %v3297_v51, %v3112_v4  ;;  %v1551_v45 = vstv %s3271_s21  ;;  %v1595_v4 = vmul.f32 %v3297_v51, %v3010_v23  ;;  %s3325_s21 = sld [smem:[#allocation3 + $0x61]] }
 0x16b   : > { %v1552_v19 = vmul.f32 %v1551_v45, %v1550_v10 }
 0x16c   : > { %1285 = vrot.lane.b32.xlu1 %v1283_v44, %s3822_s23  ;;  %v1473_v44 = vstv %s3260_s27  ;;  %s3312_s27 = sld [smem:[#allocation3 + $0x5a]]  ;;  %v1596_v20 = vstv %s3288_s25  ;;  %s3336_s25 = sld [smem:[#allocation3 + $0x4]] }
 0x16d   : > { %v1474_v63 = vmul.f32 %v1473_v44, %v1472_v48  ;;  %v1597_v23 = vmul.f32 %v1596_v20, %v1595_v4  ;;  %v371_v48 = vmul.f32 %v3364_v57, %v3180_v59 }
 0x16e   : > { %1296 = vrot.lane.b32.xlu0 %v1294_v56, %s3822_s23  ;;  %s3347_s23 = sld [smem:[#allocation3 + $0x3]] }
 0x16f   : > { %v3264_v8 = vpop.permute.xlu0 %1172 }
 0x170   : > { %1330 = vrot.lane.b32.xlu1 %v1328_v1, %s3819_s30  ;;  %v1518_v1 = vstv %s3275_s29  ;;  %s3330_s29 = sld [smem:[#allocation3 + $0x5e]]  ;;  %v1686_v29 = vstv %s3325_s21  ;;  %s3369_s21 = sld [smem:[#allocation3 + $0x14]] }
 0x171   : > { %v1519_v25 = vmul.f32 %v1518_v1, %v1517_v7  ;;  %v1687_v40 = vmul.f32 %v1686_v29, %v1685_v60 }
 0x172   : > { %1341 = vrot.lane.b32.xlu0 %v1339_v50, %s3819_s30  ;;  %s3863_s30 = smov 78   ;;  %v372_v62 = vstv %s3336_s25  ;;  %s3381_s25 = sld [smem:[#allocation3 + $0x1c]] }
 0x173   : > { %v3290_v30 = vpop.permute.xlu0 %1217  ;;  %v373_v59 = vmul.f32 %v372_v62, %v371_v48 }
 0x174   : > { %1375 = vrot.lane.b32.xlu1 %v1373_v5, %s3821_s18  ;;  %s3866_s18 = smov 61   ;;  %v360_v7 = vstv %s3347_s23  ;;  %s3390_s23 = sld [smem:[#allocation3 + $0x24]] }
 0x176   : > { %1386 = vrot.lane.b32.xlu0 %v1384_v31, %s3864_s20  ;;  %s3293_s20 = sld [smem:[#allocation3 + $0x56]]  ;;  %v1642_v31 = vmul.f32 %v1641_v9, %v1640_v27  ;;  %v1652_v38 = vstv %s3330_s29  ;;  %s3823_s29 = smov 27   ;;  %v653_v9 = vstv %s3369_s21 }
 0x177   : > { %v3309_v42 = vpop.permute.xlu0 %1262  ;;  %s3408_s21 = sld [smem:[#allocation3 + $0x34]] }
 0x178   : > { %1420 = vrot.lane.b32.xlu1 %v1418_v58, %s3863_s30  ;;  %v1607_v58 = vstv %s3312_s27  ;;  %s3868_s27 = smov 31  }
 0x179   : > { %v1608_v34 = vmul.f32 %v1607_v58, %v1606_v49 }
 0x17a   : > { %1431 = vrot.lane.b32.xlu0 %v1429_v61, %s3863_s30  ;;  %v3361_v61 = vsel %vm356_vm1, %v355_v33, %v2779_v16  ;;  %vm933_vm1 = vcmask 384000  }
 0x17b   : > { %v3327_v5 = vpop.permute.xlu0 %1307  ;;  %v359_v16 = vmul.f32 %v3364_v57, %v3361_v61 }
 0x17c   : > { %1465 = vrot.lane.b32.xlu1 %v1463_v36, %s3865_s10  ;;  %v1562_v43 = vstv %s3293_s20  ;;  %s2343_s20 = smov 44  }
 0x17d   : > { %v1563_v37 = vmul.f32 %v1562_v43, %v1561_v12  ;;  %v361_v20 = vmul.f32 %v360_v7, %v359_v16  ;;  %v927_v7 = vstv %s3390_s23  ;;  %s3871_s23 = smov 91  }
 0x17e   : > { %v3301_v22 = vpop.permute.xlu1 %1621  ;;  %1476 = vrot.lane.b32.xlu0 %v1474_v63, %s3865_s10  ;;  %s3867_s10 = smov 48  }
 0x17f   : > { %v3341_v41 = vpop.permute.xlu0 %1352 }
 0x180   : > { %1510 = vrot.lane.b32.xlu1 %v1508_v2, %s3866_s18  ;;  %v1653_v2 = vmul.f32 %v1652_v38, %v1651_v28  ;;  %v791_v38 = vstv %s3381_s25  ;;  %s3472_s25 = sld [smem:[#allocation3 + $0x5c]] }
 0x182   : > { %v431_v56 = vpop.permute.xlu1 %430  ;;  %1521 = vrot.lane.b32.xlu0 %v1519_v25, %s3866_s18 }
 0x183   : > { %v3356_v36 = vpop.permute.xlu0 %1397  ;;  %v432_v10 = vrot.slane %v431_v56, 1 }
 0x184   : > { %1554 = vrot.lane.b32.xlu1 %v1552_v19, %s3867_s10  ;;  %v514_v19 = vstv %s3351_s9  ;;  %s3400_s9 = sld [smem:[#allocation3 + $0x2c]] }
 0x185   : > { %v434_v4 = vsel %vm433_vm3, %v431_v56, %v432_v10  ;;  %v515_v27 = vmul.f32 %v514_v19, %v513_v54  ;;  %vm3833_vm3 = vcmask 1022976  }
 0x186   : > { %v501_v50 = vpop.permute.xlu1 %500  ;;  %1565 = vrot.lane.b32.xlu0 %v1563_v37, %s3867_s10  ;;  %v436_v37 = vadd.f32 %v434_v4, %v361_v20  ;;  %v928_v4 = vmul.f32 %v927_v7, %v926_v32 }
 0x187   : > { %v3371_v63 = vpop.permute.xlu0 %1442  ;;  %v502_v45 = vrot.slane %v501_v50, 1 }
 0x188   : > { %1599 = vrot.lane.b32.xlu1 %v1597_v23, %s2343_s20 }
 0x189   : > { %v503_v43 = vsel %vm451_vm5, %v501_v50, %v502_v45 }
 0x18a   : > { %v571_v15 = vpop.permute.xlu1 %570  ;;  %1610 = vrot.lane.b32.xlu0 %v1608_v34, %s2343_s20  ;;  %v654_v34 = vmul.f32 %v653_v9, %v652_v46  ;;  %v1179_v9 = vmul.f32 %v3297_v51, %v3361_v61  ;;  %v1269_v61 = vmul.f32 %v3297_v51, %v2761_v3  ;;  %v1264_v3 = vrot.slane %v3309_v42, 1 }
 0x18b   : > { %v572_v25 = vrot.slane %v571_v15, 1  ;;  %v3383_v12 = vpop.permute.xlu0 %1487 }
 0x18c   : > { %1644 = vrot.lane.b32.xlu1 %v1642_v31, %s3868_s27  ;;  %v505_v31 = vadd.f32 %v503_v43, %v436_v37  ;;  %v1064_v43 = vstv %s3400_s9  ;;  %s2346_s9 = smov 74  }
 0x18d   : > { %v573_v56 = vsel %vm3825_vm15, %v571_v15, %v572_v25  ;;  %vm1321_vm15 = vcmask 777216  }
 0x18e   : > { %v640_v44 = vpop.permute.xlu1 %639  ;;  %1655 = vrot.lane.b32.xlu0 %v1653_v2, %s3868_s27  ;;  %v575_v28 = vadd.f32 %v573_v56, %v505_v31  ;;  %v792_v2 = vmul.f32 %v791_v38, %v790_v13  ;;  %v1065_v56 = vmul.f32 %v1064_v43, %v1063_v53  ;;  %v1399_v43 = vrot.slane %v3356_v36, 1 }
 0x18f   : > { %v641_v23 = vrot.slane %v640_v44, 1 }
 0x190   : > { %1689 = vrot.lane.b32.xlu1 %v1687_v40, %s3823_s29  ;;  %s3869_s29 = smov 124  }
 0x191   : > { %v642_v50 = vsel %vm590_vm6, %v640_v44, %v641_v23 }
 0x192   : > { %v710_v1 = vpop.permute.xlu1 %709  ;;  %v644_v62 = vadd.f32 %v642_v50, %v575_v28 }
 0x193   : > { %v3393_v58 = vpop.permute.xlu0 %1532  ;;  %v711_v33 = vrot.slane %v710_v1, 1 }
 0x194   : > { %375 = vrot.lane.b32.xlu1 %v373_v59, %s3869_s29  ;;  %s3418_s29 = sld [smem:[#allocation3 + $0x3c]] }
 0x195   : > { %v712_v15 = vsel %vm677_vm14, %v710_v1, %v711_v33  ;;  %v1180_v33 = vstv %s3408_s21  ;;  %s1883_s21 = sld [smem:[#allocation3 + $0x10]] }
 0x196   : > { %v778_v49 = vpop.permute.xlu1 %777  ;;  %v714_v10 = vadd.f32 %v712_v15, %v644_v62  ;;  %v1181_v28 = vmul.f32 %v1180_v33, %v1179_v9  ;;  %v1400_v9 = vsel %vm3827_vm2, %v3356_v36, %v1399_v43  ;;  %v1628_v36 = vmul.f32 %v3297_v51, %v2944_v55 }
 0x197   : > { %v779_v60 = vrot.slane %v778_v49, 1  ;;  %v3403_v48 = vpop.permute.xlu0 %1576  ;;  %vm3828_vm2 = vcmask 252928  }
 0x198   : > { %517 = vrot.lane.b32.xlu1 %v515_v27, %s2338_s6  ;;  %s2345_s6 = smov 90  }
 0x199   : > { %v780_v44 = vsel %vm728_vm7, %v778_v49, %v779_v60  ;;  %v1174_v60 = vrot.slane %v3264_v8, 7 }
 0x19a   : > { %v846_v29 = vpop.permute.xlu1 %845  ;;  %v782_v1 = vadd.f32 %v780_v44, %v714_v10  ;;  %v1359_v10 = vmul.f32 %v3297_v51, %v2810_v14 }
 0x19b   : > { %v847_v40 = vrot.slane %v846_v29, 1  ;;  %v3411_v45 = vpop.permute.xlu0 %1666 }
 0x19c   : > { %656 = vrot.lane.b32.xlu1 %v654_v34, %s2345_s6  ;;  %s1875_s6 = sld [smem:[#allocation3 + $0x8]] }
 0x19d   : > { %v848_v59 = vsel %vm3830_vm9, %v846_v29, %v847_v40  ;;  %v1219_v29 = vrot.slane %v3290_v30, 1  ;;  %v1270_v40 = vstv %s3418_s29  ;;  %s2347_s29 = smov 127  }
 0x19e   : > { %v915_v16 = vpop.permute.xlu1 %914  ;;  %v850_v25 = vadd.f32 %v848_v59, %v782_v1  ;;  %v1309_v59 = vrot.slane %v3327_v5, 1 }
 0x19f   : > { %v916_v54 = vrot.slane %v915_v16, 1  ;;  %v1220_v7 = vsel %vm3833_vm3, %v3290_v30, %v1219_v29  ;;  %v1449_v30 = vmul.f32 %v3297_v51, %v2864_v18  ;;  %v1629_v29 = vstv %s3472_s25  ;;  %s1915_s25 = sld [smem:[#allocation3 + $0x30]] }
 0x1a0   : > { %794 = vrot.lane.b32.xlu1 %v792_v2, %s2314_s5  ;;  %v1052_v23 = vpop.permute.xlu0 %1051  ;;  %s3427_s5 = sld [smem:[#allocation3 + $0x44]]  ;;  %v1175_v2 = vsel %vm3832_vm13, %v1174_v60, %v3264_v8  ;;  %v1534_v60 = vrot.slane %v3393_v58, 1 }
 0x1a1   : > { %v917_v19 = vsel %vm275_vm8, %v915_v16, %v916_v54  ;;  %v1053_v46 = vrot.slane %v1052_v23, 1  ;;  %vm1070_vm8 = vcmask 244736   ;;  %v1271_v16 = vmul.f32 %v1270_v40, %v1269_v61 }
 0x1a2   : > { %v983_v20 = vpop.permute.xlu1 %982  ;;  %v919_v37 = vadd.f32 %v917_v19, %v850_v25  ;;  %v1578_v61 = vrot.slane %v3403_v48, 1 }
 0x1a3   : > { %v984_v27 = vrot.slane %v983_v20, 1  ;;  %v1054_v31 = vsel %vm3824_vm11, %v1052_v23, %v1053_v46  ;;  %vm3826_vm11 = vcmask 916480  }
 0x1a4   : > { %930 = vrot.lane.b32.xlu1 %v928_v4, %s2335_s4  ;;  %v1120_v50 = vpop.permute.xlu0 %1119  ;;  %s3440_s4 = sld [smem:[#allocation3 + $0x4c]]  ;;  %v1265_v19 = vsel %vm3826_vm11, %v3309_v42, %v1264_v3  ;;  %v1354_v4 = vrot.slane %v3341_v41, 1  ;;  %vm1411_vm11 = vcmask 637952   ;;  %v1668_v3 = vrot.slane %v3411_v45, 1 }
 0x1a5   : > { %v985_v49 = vsel %vm933_vm1, %v983_v20, %v984_v27  ;;  %v1121_v34 = vrot.slane %v1120_v50, 1  ;;  %v1310_v20 = vsel %vm1078_vm4, %v3327_v5, %v1309_v59  ;;  %v1539_v5 = vmul.f32 %v3297_v51, %v2915_v11 }
 0x1a6   : > { %v987_v6 = vadd.f32 %v985_v49, %v919_v37  ;;  %v3425_v57 = vpop.permute.xlu1 %394  ;;  %v1360_v1 = vstv %s3427_s5  ;;  %v1355_v46 = vsel %vm1321_vm15, %v3341_v41, %v1354_v4  ;;  %v1444_v37 = vrot.slane %v3371_v63, 1  ;;  %s3872_s5 = smov 111  }
 0x1a7   : > { %v1122_v38 = vsel %vm1070_vm8, %v1120_v50, %v1121_v34  ;;  %v1361_v25 = vmul.f32 %v1360_v1, %v1359_v10  ;;  %vm1501_vm4 = vcmask 498688   ;;  %v584_v4 = vstv %s1883_s21  ;;  %s3556_s21 = sld [smem:[#allocation3 + $0x40]] }
 0x1a8   : > { %v1056_v13 = vadd.f32 %v1054_v31, %v987_v6  ;;  %1067 = vrot.lane.b32.xlu1 %v1065_v56, %s2337_s28  ;;  %v3442_v44 = vpop.permute.xlu0 %412  ;;  %s3456_s28 = sld [smem:[#allocation3 + $0x54]]  ;;  %v1489_v56 = vrot.slane %v3383_v12, 1  ;;  %v1445_v50 = vsel %vm1411_vm11, %v3371_v63, %v1444_v37  ;;  %v1623_v63 = vrot.slane %v3301_v22, 1 }
 0x1a9   : > { %v1535_v40 = vsel %vm1501_vm4, %v3393_v58, %v1534_v60 }
 0x1aa   : > { %v3437_v15 = vpop.permute.xlu1 %466  ;;  %v1124_v62 = vadd.f32 %v1122_v38, %v1056_v13  ;;  %v1450_v42 = vstv %s3440_s4  ;;  %v1490_v13 = vsel %vm3835_vm0, %v3383_v12, %v1489_v56  ;;  %v1579_v12 = vsel %vm667_vm12, %v3403_v48, %v1578_v61  ;;  %s1868_s4 = sld [smem:[#allocation3 + $0x1]] }
 0x1ab   : > { %v1451_v49 = vmul.f32 %v1450_v42, %v1449_v30  ;;  %v585_v30 = vmul.f32 %v584_v4, %v2869_v24 }
 0x1ac   : > { %1183 = vrot.lane.b32.xlu1 %v1181_v28, %s3861_s11  ;;  %v1177_v32 = vadd.f32 %v1175_v2, %v1124_v62  ;;  %s3870_s11 = smov 108   ;;  %v3462_v53 = vpop.permute.xlu0 %483  ;;  %v1630_v2 = vmul.f32 %v1629_v29, %v1628_v36 }
 0x1ae   : > { %v3453_v54 = vpop.permute.xlu1 %535  ;;  %v1222_v8 = vadd.f32 %v1220_v7, %v1177_v32  ;;  %v1540_v33 = vstv %s3456_s28  ;;  %v1669_v7 = vsel %vm3828_vm2, %v3411_v45, %v1668_v3  ;;  %s1907_s28 = sld [smem:[#allocation3 + $0x28]]  ;;  %vm3829_vm2 = vcmask 875520  }
 0x1af   : > { %v1541_v34 = vmul.f32 %v1540_v33, %v1539_v5  ;;  %v1315_v3 = vstv %s3556_s21 }
 0x1b0   : > { %1273 = vrot.lane.b32.xlu1 %v1271_v16, %s3870_s11  ;;  %v1267_v14 = vadd.f32 %v1265_v19, %v1222_v8  ;;  %v3486_v31 = vpop.permute.xlu0 %552  ;;  %v1624_v16 = vsel %vm598_vm10, %v3301_v22, %v1623_v63  ;;  %v445_v8 = vstv %s1875_s6  ;;  %s3873_s11 = smov 94   ;;  %v336_v37 = vstv %s1868_s4  ;;  %s3875_s6 = smov 60  }
 0x1b1   : > { %v446_v22 = vmul.f32 %v445_v8, %v2815_v39  ;;  %vm378_vm10 = vcmask 1014784   ;;  %v337_v56 = vmul.f32 %v336_v37, %v3059_v0  ;;  %s3584_s4 = sld [smem:[#allocation3 + $0x50]] }
 0x1b2   : > { %v3469_v23 = vpop.permute.xlu1 %605  ;;  %v1312_v27 = vadd.f32 %v1310_v20, %v1267_v14 }
 0x1b4   : > { %1363 = vrot.lane.b32.xlu1 %v1361_v25, %s3871_s23  ;;  %v1357_v18 = vadd.f32 %v1355_v46, %v1312_v27  ;;  %v3503_v62 = vpop.permute.xlu0 %622  ;;  %v396_v27 = vrot.slane %v3425_v57, 1  ;;  %s3874_s23 = smov 77   ;;  %v996_v5 = vstv %s1907_s28  ;;  %s3598_s28 = sld [smem:[#allocation3 + $0x58]] }
 0x1b5   : > { %v997_v33 = vmul.f32 %v996_v5, %v3020_v26  ;;  %v1224_v26 = vmul.f32 %v3297_v51, %v2738_v47 }
 0x1b6   : > { %v3483_v6 = vpop.permute.xlu1 %674  ;;  %v1402_v41 = vadd.f32 %v1400_v9, %v1357_v18  ;;  %v468_v18 = vrot.slane %v3437_v15, 1 }
 0x1b7   : > { %v676_v0 = vrot.slane %v3483_v6, 1 }
 0x1b8   : > { %1453 = vrot.lane.b32.xlu1 %v1451_v49, %s2346_s9  ;;  %v1447_v11 = vadd.f32 %v1445_v50, %v1402_v41  ;;  %v3517_v1 = vpop.permute.xlu0 %692  ;;  %s3541_s9 = sld [smem:[#allocation3 + $0x38]]  ;;  %v537_v49 = vrot.slane %v3453_v54, 1  ;;  %v469_v41 = vsel %vm451_vm5, %v3437_v15, %v468_v18  ;;  %v607_v50 = vrot.slane %v3469_v23, 1 }
 0x1b9   : > { %v678_v63 = vsel %vm677_vm14, %v3483_v6, %v676_v0 }
 0x1ba   : > { %v3496_v28 = vpop.permute.xlu1 %743  ;;  %v1492_v38 = vadd.f32 %v1490_v13, %v1447_v11  ;;  %v538_v11 = vsel %vm3829_vm2, %v3453_v54, %v537_v49  ;;  %v608_v13 = vsel %vm590_vm6, %v3469_v23, %v607_v50  ;;  %v1314_v23 = vmul.f32 %v3297_v51, %v2784_v17 }
 0x1bb   : > { %v745_v61 = vrot.slane %v3496_v28, 1  ;;  %vm865_vm2 = vcmask 490496   ;;  %v1495_v49 = vstv %s3584_s4 }
 0x1bc   : > { %1543 = vrot.lane.b32.xlu1 %v1541_v34, %s3867_s10  ;;  %v1537_v55 = vadd.f32 %v1535_v40, %v1492_v38  ;;  %s1891_s10 = sld [smem:[#allocation3 + $0x18]]  ;;  %v3523_v14 = vpop.permute.xlu0 %760  ;;  %v1316_v8 = vmul.f32 %v1315_v3, %v1314_v23 }
 0x1be   : > { %v3508_v32 = vpop.permute.xlu1 %811  ;;  %v1581_v10 = vadd.f32 %v1579_v12, %v1537_v55  ;;  %v1225_v54 = vstv %s3541_s9 }
 0x1bf   : > { %v813_v40 = vrot.slane %v3508_v32, 1  ;;  %v1226_v55 = vmul.f32 %v1225_v54, %v1224_v26 }
 0x1c0   : > { %1632 = vrot.lane.b32.xlu1 %v1630_v2, %s3868_s27  ;;  %v1626_v58 = vadd.f32 %v1624_v16, %v1581_v10  ;;  %s1899_s27 = sld [smem:[#allocation3 + $0x20]]  ;;  %v3533_v39 = vpop.permute.xlu0 %828  ;;  %v746_v2 = vsel %vm728_vm7, %v3496_v28, %v745_v61  ;;  %v3877_v28 = vld [vmem:[#allocation17_spill] sm:$0xff] }
 0x1c1   : > { %v814_v10 = vsel %vm3830_vm9, %v3508_v32, %v813_v40  ;;  %vm3831_vm9 = vcmask 351232  }
 0x1c2   : > { %v3515_v59 = vpop.permute.xlu1 %880  ;;  %v1671_v48 = vadd.f32 %v1669_v7, %v1626_v58  ;;  %v722_v25 = vstv %s1891_s10  ;;  %s3876_s10 = smov 43  }
 0x1c3   : > { %v723_v43 = vmul.f32 %v722_v25, %v2922_v52  ;;  %v397_v52 = vsel %vm378_vm10, %v3425_v57, %v396_v27  ;;  %v1133_v57 = vstv %s1915_s25  ;;  %v882_v12 = vrot.slane %v3515_v59, 1  ;;  %s1972_s25 = sshll.u32 %s2392_s16, 7  ;;  %s2350_s16 = smov [#allocation10]  }
 0x1c4   : > { %1704 = vrot.lane.b32.xlu0 %v1671_v48, %s2347_s29  ;;  %v3546_v9 = vpop.permute.xlu0 %897  ;;  %v399_v60 = vadd.f32 %v397_v52, %v337_v56  ;;  %v1134_v15 = vmul.f32 %v1133_v57, %v3069_v21  ;;  %v1404_v48 = vmul.f32 %v3297_v51, %v3877_v28  ;;  %v3880_v57 = vld [vmem:[#allocation19_spill] sm:$0xff]  ;;  %s2200_s4 = sshll.u32 %s2350_s16, 4  ;;  %s2201_s4 = int_to_ptr.vmem [resolvable:$false] %s2200_s4 }
 0x1c6   : > { %v3520_v19 = vpop.permute.xlu1 %948  ;;  %v859_v42 = vstv %s1899_s27  ;;  %v471_v36 = vadd.f32 %v469_v41, %v399_v60  ;;  %s3573_s27 = sld [smem:[#allocation3 + $0x48]] }
 0x1c7   : > { %v860_v24 = vmul.f32 %v859_v42, %v2971_v35  ;;  %v950_v16 = vrot.slane %v3520_v19, 1 }
 0x1c8   : > { %448 = vrot.lane.b32.xlu0 %v446_v22, %s3872_s5  ;;  %v3570_v29 = vpop.permute.xlu0 %965  ;;  %v540_v38 = vadd.f32 %v538_v11, %v471_v36  ;;  %s2348_s5 = smov 26   ;;  %v883_v22 = vsel %vm865_vm2, %v3515_v59, %v882_v12  ;;  %v1584_v36 = vstv %s3598_s28  ;;  %s2202_s28 = scalar_lea.vmem %s2201_s4, 256 }
 0x1c9   : > { %v951_v25 = vsel %vm933_vm1, %v3520_v19, %v950_v16 }
 0x1ca   : > { %v3526_v45 = vpop.permute.xlu1 %1017  ;;  %v610_v47 = vadd.f32 %v608_v13, %v540_v38 }
 0x1cb   : > { %v1019_v4 = vrot.slane %v3526_v45, 1 }
 0x1cc   : > { %587 = vrot.lane.b32.xlu0 %v585_v30, %s3873_s11  ;;  %v680_v6 = vadd.f32 %v678_v63, %v610_v47  ;;  %v3589_v58 = vpop.permute.xlu0 %1034  ;;  %v1405_v32 = vstv %s3573_s27  ;;  %s3612_s11 = sld [smem:[#allocation3 + $0x60]]  ;;  %v3881_v63 = vld [vmem:[#allocation20_spill] sm:$0xff]  ;;  %s1747_s27 = scalar_lea.sflag [#allocation5], %s2546_s17 }
 0x1cd   : > { %v1406_v37 = vmul.f32 %v1405_v32, %v1404_v48  ;;  %v1020_v18 = vsel %vm3831_vm9, %v3526_v45, %v1019_v4  ;;  %v1583_v45 = vmul.f32 %v3297_v51, %v3880_v57  ;;  %v1673_v40 = vmul.f32 %v3297_v51, %v3881_v63 }
 0x1ce   : > { %v3530_v20 = vpop.permute.xlu1 %1085  ;;  %v748_v17 = vadd.f32 %v746_v2, %v680_v6  ;;  %vm3882_vm9 = vcmask 916480  }
 0x1cf   : > { %v1585_v38 = vmul.f32 %v1584_v36, %v1583_v45 }
 0x1d0   : > { %725 = vrot.lane.b32.xlu0 %v723_v43, %s3874_s23  ;;  %v816_v30 = vadd.f32 %v814_v10, %v748_v17  ;;  %v1087_v43 = vrot.slane %v3530_v20, 1  ;;  %v3608_v5 = vpop.permute.xlu0 %1102  ;;  %s3904_s23 = sshll.u32 %s2546_s17, 3 }
 0x1d1   : > { %s211_s9 = scalar_lea.vmem [#allocation10], %s3904_s23 }
 0x1d2   : > { %v3537_v46 = vpop.permute.xlu1 %1149  ;;  %v885_v42 = vadd.f32 %v883_v22, %v816_v30  ;;  %v1088_v56 = vsel %vm1070_vm8, %v3530_v20, %v1087_v43  ;;  %v1674_v23 = vstv %s3612_s11 }
 0x1d3   : > { %v1151_v52 = vrot.slane %v3537_v46, 7  ;;  %v1675_v6 = vmul.f32 %v1674_v23, %v1673_v40 }
 0x1d4   : > { %862 = vrot.lane.b32.xlu0 %v860_v24, %s3875_s6  ;;  %v3879_v24 = vld [vmem:[#allocation18_spill] sm:$0xff]  ;;  %v953_v19 = vadd.f32 %v951_v25, %v885_v42  ;;  %s1761_s6 = sshll.u32 %s211_s9, 4  ;;  %s3741_s6 = int_to_ptr.vmem [resolvable:$true] %s1761_s6 }
 0x1d5   : > { %v1494_v59 = vmul.f32 %v3297_v51, %v3879_v24  ;;  %v1152_v11 = vsel %vm3832_vm13, %v1151_v52, %v3537_v46  ;;  %vm1276_vm13 = vcmask 883712   ;;  %p2203_p12 = scmp.lt.s32.totalorder %s3741_s6, %s2201_s4 }
 0x1d6   : > { %v3550_v35 = vpop.permute.xlu1 %1195  ;;  %v1022_v41 = vadd.f32 %v1020_v18, %v953_v19 }
 0x1d7   : > { %v1496_v60 = vmul.f32 %v1495_v49, %v1494_v59 }
 0x1d8   : > { %999 = vrot.lane.b32.xlu0 %v997_v33, %s3876_s10  ;;  %v1197_v33 = vrot.slane %v3550_v35, 1  ;;  %v1090_v26 = vadd.f32 %v1088_v56, %v1022_v41 }
 0x1da   : > { %v3562_v34 = vpop.permute.xlu1 %1240  ;;  %v1198_v20 = vsel %vm3833_vm3, %v3550_v35, %v1197_v33  ;;  %v1154_v61 = vadd.f32 %v1152_v11, %v1090_v26  ;;  %vm3834_vm3 = vcmask 744448  }
 0x1db   : > { %v1242_v0 = vrot.slane %v3562_v34, 1 }
 0x1dc   : > { %1136 = vrot.lane.b32.xlu0 %v1134_v15, %s2348_s5  ;;  %v3624_v15 = vpop.permute.xlu0 %1161  ;;  %s2196_s5 = scalar_lea.vmem %s3741_s6, 128 }
 0x1dd   : > { %v1243_v46 = vsel %vm3882_vm9, %v3562_v34, %v1242_v0  ;;  %vm1590_vm9 = vcmask 359424   ;;  %v414_v0 = vrot.slane %v3442_v44, 1  ;;  %p2197_p11 = scmp.ne.s32.totalorder %s3741_s6, %s2196_s5  ;;  %p2204_p7 = scmp.lt.s32.totalorder %s2202_s28, %s2196_s5 }
 0x1de   : > { %v1286_v21 = vpop.permute.xlu1 %1285 }
 0x1df   : > { %v1287_v13 = vrot.slane %v1286_v21, 1  ;;  %p2198_p6 = pnand %p2197_p11, %p3905_p4  ;;  %p2205_p13 = por %p2204_p7, %p2203_p12 }
 0x1e0   : > { %1228 = vrot.lane.b32.xlu0 %v1226_v55, %s3862_s22  ;;  %s3878_s22 = smov 95   ;;  %v1200_v55 = vadd.f32 %v1198_v20, %v1154_v61  ;;  %v3636_v10 = vpop.permute.xlu0 %1206  ;;  %v485_v20 = vrot.slane %v3462_v53, 1  ;;  %v554_v61 = vrot.slane %v3486_v31, 1 }
 0x1e1   : > { %v1288_v2 = vsel %vm1276_vm13, %v1286_v21, %v1287_v13  ;;  %v415_v13 = vsel %vm378_vm10, %v3442_v44, %v414_v0  ;;  %p2199_p9 = pneg %p2198_p6 }
 0x1e2   : > { %v1331_v7 = vpop.permute.xlu1 %1330  ;;  %v1245_v35 = vadd.f32 %v1243_v46, %v1200_v55  ;;  %v486_v40 = vsel %vm451_vm5, %v3462_v53, %v485_v20  ;;  %v624_v46 = vrot.slane %v3503_v62, 1  ;;  %v694_v55 = vrot.slane %v3517_v1, 1 }
 0x1e3   : > { %v1332_v47 = vrot.slane %v1331_v7, 1  ;;  %v830_v53 = vrot.slane %v3533_v39, 1  ;;  %p2206_p3 = pnand %p2205_p13, %p2199_p9 }
 0x1e4   : > { %1318 = vrot.lane.b32.xlu0 %v1316_v8, %s3878_s22  ;;  %v1290_v17 = vadd.f32 %v1288_v2, %v1245_v35  ;;  %v3642_v32 = vpop.permute.xlu0 %1251  ;;  %v625_v44 = vsel %vm590_vm6, %v3503_v62, %v624_v46  ;;  %v967_v62 = vrot.slane %v3570_v29, 1 }
 0x1e5   : > { %v1333_v51 = vsel %vm1321_vm15, %v1331_v7, %v1332_v47 }
 0x1e6   : > { %v1376_v27 = vpop.permute.xlu1 %1375  ;;  %v1335_v48 = vadd.f32 %v1333_v51, %v1290_v17 }
 0x1e7   : > { %v1377_v12 = vrot.slane %v1376_v27, 1 }
 0x1e8   : > { %1408 = vrot.lane.b32.xlu0 %v1406_v37, %s3863_s30  ;;  %s3883_s30 = smov 27   ;;  %v3647_v52 = vpop.permute.xlu0 %1296 }
 0x1e9   : > { %v1378_v34 = vsel %vm3834_vm3, %v1376_v27, %v1377_v12  ;;  %vm3884_vm3 = vcmask 252928   ;;  %v762_v12 = vrot.slane %v3523_v14, 1 }
 0x1ea   : > { %v1421_v50 = vpop.permute.xlu1 %1420  ;;  %v1380_v4 = vadd.f32 %v1378_v34, %v1335_v48 }
 0x1eb   : > { %v1422_v16 = vrot.slane %v1421_v50, 1 }
 0x1ec   : > { %1498 = vrot.lane.b32.xlu0 %v1496_v60, %s3866_s18  ;;  %s1869_s18 = sld [smem:[#allocation3 + $0x2]]  ;;  %v1342_v60 = vpop.permute.xlu0 %1341 }
 0x1ed   : > { %v1423_v8 = vsel %vm1411_vm11, %v1421_v50, %v1422_v16  ;;  %v763_v16 = vsel %vm728_vm7, %v3523_v14, %v762_v12  ;;  %v1104_v14 = vrot.slane %v3608_v5, 1 }
 0x1ee   : > { %v1466_v54 = vpop.permute.xlu1 %1465  ;;  %v1425_v43 = vadd.f32 %v1423_v8, %v1380_v4 }
 0x1ef   : > { %v1467_v28 = vrot.slane %v1466_v54, 1 }
 0x1f0   : > { %1587 = vrot.lane.b32.xlu0 %v1585_v38, %s2343_s20  ;;  %v1387_v63 = vpop.permute.xlu0 %1386  ;;  %s2349_s20 = smov 126  }
 0x1f1   : > { %v1468_v30 = vsel %vm3835_vm0, %v1466_v54, %v1467_v28  ;;  %vm3836_vm0 = vcmask 220160   ;;  %v3885_v54 = vld [vmem:[#allocation16_spill] sm:$0xff] }
 0x1f2   : > { %v1511_v3 = vpop.permute.xlu1 %1510  ;;  %v1470_v27 = vadd.f32 %v1468_v30, %v1425_v43  ;;  %v348_v26 = vstv %s1869_s18 }
 0x1f3   : > { %v1512_v22 = vrot.slane %v1511_v3, 1  ;;  %v349_v38 = vmul.f32 %v348_v26, %v3885_v54 }
 0x1f4   : > { %1677 = vrot.lane.b32.xlu0 %v1675_v6, %s3883_s30  ;;  %v695_v6 = vsel %vm677_vm14, %v3517_v1, %v694_v55  ;;  %v1036_v1 = vrot.slane %v3589_v58, 1  ;;  %vm3888_vm14 = vcmask 277504  }
 0x1f5   : > { %v1513_v42 = vsel %vm1501_vm4, %v1511_v3, %v1512_v22  ;;  %v417_v47 = vadd.f32 %v415_v13, %v349_v38  ;;  %v1432_v3 = vpop.permute.xlu0 %1431  ;;  %v968_v22 = vsel %vm933_vm1, %v3570_v29, %v967_v62  ;;  %v1253_v29 = vrot.slane %v3642_v32, 1 }
 0x1f6   : > { %v1555_v21 = vpop.permute.xlu1 %1554  ;;  %v1515_v37 = vadd.f32 %v1513_v42, %v1470_v27  ;;  %v1037_v30 = vsel %vm3888_vm14, %v3589_v58, %v1036_v1  ;;  %v1298_v58 = vrot.slane %v3647_v52, 1  ;;  %vm3891_vm14 = vcmask 916480  }
 0x1f7   : > { %v1556_v25 = vrot.slane %v1555_v21, 1  ;;  %v488_v2 = vadd.f32 %v486_v40, %v417_v47 }
 0x1f9   : > { %v1557_v59 = vsel %vm667_vm12, %v1555_v21, %v1556_v25  ;;  %v1477_v48 = vpop.permute.xlu0 %1476 }
 0x1fa   : > { %v1600_v7 = vpop.permute.xlu1 %1599  ;;  %v1559_v56 = vadd.f32 %v1557_v59, %v1515_v37 }
 0x1fb   : > { %v1601_v24 = vrot.slane %v1600_v7, 1 }
 0x1fd   : > { %v1602_v49 = vsel %vm1590_vm9, %v1600_v7, %v1601_v24  ;;  %v1522_v43 = vpop.permute.xlu0 %1521  ;;  %v1105_v7 = vsel %vm1070_vm8, %v3608_v5, %v1104_v14  ;;  %v1343_v5 = vrot.slane %v1342_v60, 1 }
 0x1fe   : > { %v1645_v18 = vpop.permute.xlu1 %1644  ;;  %v1604_v41 = vadd.f32 %v1602_v49, %v1559_v56  ;;  %v1254_v49 = vsel %vm3891_vm14, %v3642_v32, %v1253_v29  ;;  %v1299_v56 = vsel %vm1276_vm13, %v3647_v52, %v1298_v58  ;;  %v1523_v26 = vrot.slane %v1522_v43, 1 }
 0x1ff   : > { %v1646_v19 = vrot.slane %v1645_v18, 1  ;;  %vm3894_vm14 = vcmask 252928  }
 0x200   : > { %v1524_v54 = vsel %vm1501_vm4, %v1522_v43, %v1523_v26 }
 0x201   : > { %v1647_v33 = vsel %vm3884_vm3, %v1645_v18, %v1646_v19  ;;  %vm3886_vm3 = vcmask 801792   ;;  %v1566_v18 = vpop.permute.xlu0 %1565 }
 0x202   : > { %v1690_v50 = vpop.permute.xlu1 %1689  ;;  %v1649_v45 = vadd.f32 %v1647_v33, %v1604_v41  ;;  %v556_v23 = vsel %vm3886_vm3, %v3486_v31, %v554_v61  ;;  %v899_v31 = vrot.slane %v3546_v9, 1  ;;  %vm3887_vm3 = vcmask 523264  }
 0x203   : > { %v1691_v57 = vrot.slane %v1690_v50, 1  ;;  %v558_v35 = vadd.f32 %v556_v23, %v488_v2  ;;  %v831_v34 = vsel %vm3887_vm3, %v3533_v39, %v830_v53  ;;  %v1163_v39 = vrot.slane %v3624_v15, 7 }
 0x204   : > { %v900_v21 = vsel %vm865_vm2, %v3546_v9, %v899_v31  ;;  %v1208_v9 = vrot.slane %v3636_v10, 1  ;;  %vm3889_vm3 = vcmask 7168   ;;  %v1388_v33 = vrot.slane %v1387_v63, 1 }
 0x205   : > { %v1692_v11 = vsel %vm3836_vm0, %v1690_v50, %v1691_v57  ;;  %v627_v51 = vadd.f32 %v625_v44, %v558_v35  ;;  %v1164_v24 = vsel %vm3889_vm3, %v1163_v39, %v3624_v15  ;;  %vm3890_vm0 = vcmask 1022976  }
 0x206   : > { %v1694_v36 = vadd.f32 %v1692_v11, %v1649_v45  ;;  %v1209_v59 = vsel %vm3890_vm0, %v3636_v10, %v1208_v9  ;;  %v1344_v41 = vsel %vm1321_vm15, %v1342_v60, %v1343_v5  ;;  %v1433_v50 = vrot.slane %v1432_v3, 1  ;;  %v1611_v45 = vpop.permute.xlu0 %1610  ;;  %v376_v53 = vpop.permute.xlu1 %375 }
 0x207   : > { %v697_v17 = vadd.f32 %v695_v6, %v627_v51  ;;  %vm3892_vm0 = vcmask 670720   ;;  %v1478_v11 = vrot.slane %v1477_v48, 1  ;;  %vm3893_vm3 = vcmask 531456   ;;  %v320_v51 = vld [vmem:[#allocation2] ss:$2 sm:$0x3] }
 0x208   : > { %1696 = vrot.lane.b32.xlu1 %v1694_v36, %s2347_s29  ;;  %v1389_v10 = vsel %vm3892_vm0, %v1387_v63, %v1388_v33  ;;  %v1434_v36 = vsel %vm1411_vm11, %v1432_v3, %v1433_v50  ;;  %v1567_v13 = vrot.slane %v1566_v18, 1  ;;  %v1612_v38 = vrot.slane %v1611_v45, 1  ;;  %s321_s29 = sld [smem:[#allocation3]] }
 0x209   : > { %v765_v28 = vadd.f32 %v763_v16, %v697_v17  ;;  %v1479_v20 = vsel %vm3893_vm3, %v1477_v48, %v1478_v11  ;;  %vm1699_vm0 = vcmask 1039360   ;;  %v377_v31 = vrot.slane %v376_v53, 1  ;;  %v2124_v17 = vld [vmem:[#allocation7] ss:$8 sm:$0x3] }
 0x20a   : > { %v1656_v52 = vpop.permute.xlu0 %1655  ;;  %v1568_v40 = vsel %vm667_vm12, %v1566_v18, %v1567_v13  ;;  %v1613_v63 = vsel %vm1590_vm9, %v1611_v45, %v1612_v38  ;;  %v518_v1 = vpop.permute.xlu1 %517  ;;  %vm3895_vm3 = vcmask 875520  }
 0x20b   : > { %v833_v8 = vadd.f32 %v831_v34, %v765_v28  ;;  %v1657_v46 = vrot.slane %v1656_v52, 1  ;;  %v322_v34 = vmul.f32 %v2124_v17, %v320_v51  ;;  %v379_v48 = vsel %vm378_vm10, %v376_v53, %v377_v31 }
 0x20c   : > { %vm1456_vm10 = vcmask 605184  }
 0x20d   : > { %v902_v4 = vadd.f32 %v900_v21, %v833_v8  ;;  %v1658_v55 = vsel %vm3894_vm14, %v1656_v52, %v1657_v46  ;;  %vm659_vm14 = vcmask 736256  }
 0x20e   : > { %v323_v62 = vstv %s321_s29  ;;  %v657_v43 = vpop.permute.xlu1 %656 }
 0x20f   : > { %v970_v25 = vadd.f32 %v968_v22, %v902_v4  ;;  %v324_v21 = vmul.f32 %v323_v62, %v322_v34  ;;  %v519_v4 = vrot.slane %v518_v1, 1 }
 0x211   : > { %v1039_v42 = vadd.f32 %v1037_v30, %v970_v25  ;;  %v381_v22 = vadd.f32 %v379_v48, %v324_v21  ;;  %v521_v25 = vsel %vm3895_vm3, %v518_v1, %v519_v4 }
 0x212   : > { %v795_v58 = vpop.permute.xlu1 %794 }
 0x213   : > { %v1107_v27 = vadd.f32 %v1105_v7, %v1039_v42  ;;  %v796_v5 = vrot.slane %v795_v58, 1 }
 0x215   : > { %v1166_v37 = vadd.f32 %v1164_v24, %v1107_v27  ;;  %v658_v24 = vrot.slane %v657_v43, 1 }
 0x217   : > { %v1211_v19 = vadd.f32 %v1209_v59, %v1166_v37  ;;  %v660_v59 = vsel %vm659_vm14, %v657_v43, %v658_v24 }
 0x219   : > { %v1256_v15 = vadd.f32 %v1254_v49, %v1211_v19 }
 0x21b   : > { %v1301_v57 = vadd.f32 %v1299_v56, %v1256_v15  ;;  %v931_v15 = vpop.permute.xlu1 %930 }
 0x21c   : > { %v932_v45 = vrot.slane %v931_v15, 1 }
 0x21d   : > { %v1346_v0 = vadd.f32 %v1344_v41, %v1301_v57 }
 0x21f   : > { %v1391_v32 = vadd.f32 %v1389_v10, %v1346_v0  ;;  %v934_v0 = vsel %vm933_vm1, %v931_v15, %v932_v45  ;;  %vm3899_vm1 = vcmask 916480  }
 0x221   : > { %v1436_v61 = vadd.f32 %v1434_v36, %v1391_v32  ;;  %v1068_v36 = vpop.permute.xlu1 %1067 }
 0x222   : > { %v1069_v13 = vrot.slane %v1068_v36, 1 }
 0x223   : > { %v1481_v60 = vadd.f32 %v1479_v20, %v1436_v61 }
 0x225   : > { %v1526_v47 = vadd.f32 %v1524_v54, %v1481_v60  ;;  %v1071_v54 = vsel %vm1070_vm8, %v1068_v36, %v1069_v13  ;;  %v1184_v38 = vpop.permute.xlu1 %1183  ;;  %vm3900_vm8 = vcmask 744448  }
 0x227   : > { %v1570_v23 = vadd.f32 %v1568_v40, %v1526_v47  ;;  %v1185_v47 = vrot.slane %v1184_v38, 1 }
 0x229   : > { %v1615_v2 = vadd.f32 %v1613_v63, %v1570_v23 }
 0x22b   : > { %v1660_v35 = vadd.f32 %v1658_v55, %v1615_v2  ;;  %v1274_v2 = vpop.permute.xlu1 %1273 }
 0x236   : > { %v1705_v44 = vpop.permute.xlu0 %1704 }
 0x237   : > { %v1706_v12 = vrot.slane %v1705_v44, 1 }
 0x239   : > { %v1707_v3 = vsel %vm1699_vm0, %v1705_v44, %v1706_v12 }
 0x23a   : > { %v1709_v6 = vadd.f32 %v1707_v3, %v1660_v35  ;;  %v449_v16 = vpop.permute.xlu0 %448  ;;  %v1275_v3 = vrot.slane %v1274_v2, 1 }
 0x23b   : > { %v450_v28 = vrot.slane %v449_v16, 1 }
 0x23c   : > { %1711 = vrot.lane.b32.xlu0 %v1709_v6, %s2349_s20  ;;  %v1277_v51 = vsel %vm1276_vm13, %v1274_v2, %v1275_v3  ;;  %vm3902_vm13 = vcmask 220160  }
 0x23d   : > { %v452_v8 = vsel %vm451_vm5, %v449_v16, %v450_v28  ;;  %vm3896_vm5 = vcmask 523264   ;;  %v1364_v16 = vpop.permute.xlu1 %1363 }
 0x23e   : > { %v588_v14 = vpop.permute.xlu0 %587  ;;  %v454_v30 = vadd.f32 %v452_v8, %v381_v22  ;;  %v797_v33 = vsel %vm3896_vm5, %v795_v58, %v796_v5  ;;  %v1365_v62 = vrot.slane %v1364_v16, 1 }
 0x23f   : > { %v589_v39 = vrot.slane %v588_v14, 1 }
 0x240   : > { %v523_v7 = vadd.f32 %v521_v25, %v454_v30  ;;  %v1367_v21 = vsel %vm3900_vm8, %v1364_v16, %v1365_v62 }
 0x241   : > { %v591_v9 = vsel %vm590_vm6, %v588_v14, %v589_v39  ;;  %vm3897_vm6 = vcmask 351232   ;;  %v1454_v1 = vpop.permute.xlu1 %1453 }
 0x242   : > { %v726_v42 = vpop.permute.xlu0 %725  ;;  %v593_v29 = vadd.f32 %v591_v9, %v523_v7  ;;  %v1455_v4 = vrot.slane %v1454_v1, 1 }
 0x243   : > { %v727_v27 = vrot.slane %v726_v42, 1 }
 0x244   : > { %v662_v37 = vadd.f32 %v660_v59, %v593_v29  ;;  %v1457_v25 = vsel %vm1456_vm10, %v1454_v1, %v1455_v4 }
 0x245   : > { %v729_v18 = vsel %vm728_vm7, %v726_v42, %v727_v27  ;;  %vm1139_vm7 = vcmask 211968   ;;  %v1544_v43 = vpop.permute.xlu1 %1543 }
 0x246   : > { %v863_v49 = vpop.permute.xlu0 %862  ;;  %v731_v19 = vadd.f32 %v729_v18, %v662_v37  ;;  %v1545_v24 = vrot.slane %v1544_v43, 1 }
 0x247   : > { %v864_v56 = vrot.slane %v863_v49, 1 }
 0x248   : > { %v799_v41 = vadd.f32 %v797_v33, %v731_v19  ;;  %v1546_v59 = vsel %vm667_vm12, %v1544_v43, %v1545_v24  ;;  %vm1714_vm12 = vcmask 1031168  }
 0x249   : > { %v866_v50 = vsel %vm865_vm2, %v863_v49, %v864_v56  ;;  %vm3898_vm2 = vcmask 1022976   ;;  %v1633_v58 = vpop.permute.xlu1 %1632 }
 0x24a   : > { %v1000_v57 = vpop.permute.xlu0 %999  ;;  %v868_v10 = vadd.f32 %v866_v50, %v799_v41  ;;  %v1187_v55 = vsel %vm3898_vm2, %v1184_v38, %v1185_v47  ;;  %v1634_v5 = vrot.slane %v1633_v58, 1 }
 0x24b   : > { %v1001_v11 = vrot.slane %v1000_v57, 1 }
 0x24c   : > { %v936_v26 = vadd.f32 %v934_v0, %v868_v10 }
 0x24d   : > { %v1003_v32 = vsel %vm3897_vm6, %v1000_v57, %v1001_v11 }
 0x24e   : > { %v1137_v20 = vpop.permute.xlu0 %1136  ;;  %v1005_v61 = vadd.f32 %v1003_v32, %v936_v26 }
 0x24f   : > { %v1138_v52 = vrot.slane %v1137_v20, 1 }
 0x250   : > { %v1073_v60 = vadd.f32 %v1071_v54, %v1005_v61  ;;  %v3903_v54 = vld [vmem:[#allocation15_spill] sm:$0xff] }
 0x251   : > { %v1140_v40 = vsel %vm1139_vm7, %v1137_v20, %v1138_v52  ;;  %v1724_v52 = vld [vmem:[%s2552_s26] sm:$0xff]  ;;  %v1728_v38 = vsub.s32 0, %v3903_v54  ;;  %s3739_s26 = scalar_lea.hbm %s3786_s3, %s1972_s25 }
 0x252   : > { %v1229_v46 = vpop.permute.xlu0 %1228  ;;  %v1142_v63 = vadd.f32 %v1140_v40, %v1073_v60  ;;  %v1732_v60 = vsub.s32 1, %v3903_v54  ;;  %v1737_v40 = vcombine.high %v1724_v52, %v1724_v52 }
 0x253   : > { %v1230_v23 = vrot.slane %v1229_v46, 1 }
 0x254   : > { %v1189_v44 = vadd.f32 %v1187_v55, %v1142_v63 }
 0x255   : > { %v1232_v12 = vsel %vm3899_vm1, %v1229_v46, %v1230_v23 }
 0x256   : > { %v1319_v35 = vpop.permute.xlu0 %1318  ;;  %v1234_v6 = vadd.f32 %v1232_v12, %v1189_v44 }
 0x257   : > { %v1320_v53 = vrot.slane %v1319_v35, 1 }
 0x258   : > { %v1279_v31 = vadd.f32 %v1277_v51, %v1234_v6 }
 0x259   : > { %v1322_v17 = vsel %vm1321_vm15, %v1319_v35, %v1320_v53 }
 0x25a   : > { %v1409_v34 = vpop.permute.xlu0 %1408  ;;  %v1324_v28 = vadd.f32 %v1322_v17, %v1279_v31 }
 0x25b   : > { %v1410_v48 = vrot.slane %v1409_v34, 1 }
 0x25c   : > { %v1369_v8 = vadd.f32 %v1367_v21, %v1324_v28 }
 0x25d   : > { %v1412_v22 = vsel %vm1411_vm11, %v1409_v34, %v1410_v48  ;;  %vm3901_vm11 = vcmask 252928  }
 0x25e   : > { %v1499_v14 = vpop.permute.xlu0 %1498  ;;  %v1414_v30 = vadd.f32 %v1412_v22, %v1369_v8  ;;  %v1636_v15 = vsel %vm3901_vm11, %v1633_v58, %v1634_v5 }
 0x25f   : > { %v1500_v39 = vrot.slane %v1499_v14, 1 }
 0x260   : > { %v1459_v7 = vadd.f32 %v1457_v25, %v1414_v30 }
 0x261   : > { %v1502_v9 = vsel %vm1501_vm4, %v1499_v14, %v1500_v39 }
 0x262   : > { %v1588_v42 = vpop.permute.xlu0 %1587  ;;  %v1504_v29 = vadd.f32 %v1502_v9, %v1459_v7 }
 0x263   : > { %v1589_v27 = vrot.slane %v1588_v42, 1 }
 0x264   : > { %v1548_v37 = vadd.f32 %v1546_v59, %v1504_v29 }
 0x265   : > { %v1591_v18 = vsel %vm1590_vm9, %v1588_v42, %v1589_v27 }
 0x266   : > { %v1678_v49 = vpop.permute.xlu0 %1677  ;;  %v1593_v19 = vadd.f32 %v1591_v18, %v1548_v37 }
 0x267   : > { %v1679_v33 = vrot.slane %v1678_v49, 1 }
 0x268   : > { %v1638_v50 = vadd.f32 %v1636_v15, %v1593_v19 }
 0x269   : > { %v1681_v57 = vsel %vm3902_vm13, %v1678_v49, %v1679_v33 }
 0x26a   : > { %v1683_v10 = vadd.f32 %v1681_v57, %v1638_v50 }
 0x27a   : > { %v1697_v56 = vpop.permute.xlu1 %1696 }
 0x27b   : > { %v1698_v41 = vrot.slane %v1697_v56, 1 }
 0x27d   : > { %v1700_v45 = vsel %vm1699_vm0, %v1697_v56, %v1698_v41 }
 0x27e   : > { %v1702_v36 = vadd.f32 %v1700_v45, %v1683_v10 }
 0x2ae   : > { %v1712_v11 = vpop.permute.xlu0 %1711 }
 0x2af   : > { %v1713_v0 = vrot.slane %v1712_v11, 1 }
 0x2b1   : > { %v1715_v26 = vsel %vm1714_vm12, %v1712_v11, %v1713_v0 }
 0x2b2   : > { %v1717_v32 = vadd.f32 %v1715_v26, %v1702_v36 }
 0x2b4   : > { %v1965_v20 = vmul.f32 -1.442695, %v1717_v32 }
 0x2b6   : > { %2117 = vpow2.f32 %v1965_v20 }
 0x2c0   : > { %v2118_v13 = vpop.eup %2117 }
 0x2c1   : > { %v1721_v61 = vadd.f32 1.0, %v2118_v13 }
 0x2c3   : > { %2119 = vrcp.f32 %v1721_v61 }
 0x2cd   : > { %v2120_v46 = vpop.eup %2119 }
 0x2ce   : > { %v1729_v47 = vrot.slane %v2120_v46, %v1728_v38  ;;  %v1733_v63 = vrot.slane %v2120_v46, %v1732_v60 }
 0x2d0   : > { %v1739_v23 = vmul.f32 %v1729_v47, %v1724_v52  ;;  %v1740_v55 = vmul.f32 %v1737_v40, %v1733_v63 }
 0x2d2   : > { %v1743_v2 = vcombine.low %v1739_v23, %v1740_v55 }
 0x2d4   : > { %1745 = vst [vmem:[%s211_s9] sm:$0xff] %v1743_v2 }
 0x2d5   : > { %2209 = shalt.err (!%p2206_p3)
}
 0x2d6   : > { %s2210_s17 = scalar_lea.hbm %s3739_s26, 128  ;;  %s2214_s30 = scalar_lea.hbm %s3786_s3, 256 }
 0x2d7   : > { %p2211_p1 = scmp.ne.s32.totalorder %s3739_s26, %s2210_s17  ;;  %p2215_p2 = scmp.lt.u32.totalorder %s3739_s26, %s3786_s3 }
 0x2d8   : > { %p2216_p0 = scmp.lt.u32.totalorder %s2214_s30, %s2210_s17  ;;  %p2218_p11 = scmp.lt.u32.totalorder %s2210_s17, %s3739_s26 }
 0x2d9   : > { %p2212_p5 = pnand %p2211_p1, %p3905_p4 }
 0x2da   : > { %p2217_p8 = por %p2216_p0, %p2215_p2 }
 0x2db   : > { %p2213_p10 = pneg %p2212_p5 }
 0x2dc   : > { %p2219_p6 = por %p2218_p11, %p2217_p8 }
 0x2de   : > { %p2220_p9 = pnand %p2219_p6, %p2213_p10 }
 0x2e0   : > { %2223 = shalt.err (!%p2220_p9)
}
 0x2e1   : > { %1983 = dma.vmem_to_hbm [thread:$0]  (%p3905_p4), %s3741_s6, 128, %s3739_s26, %s1747_s27  }
 0x2e2 PF: > { %s1773_s29 = sand.u32 1, %s2258_s12   ;;  %p3906_p12 = scmp.ne.s32.totalorder %s3838_s19, 0 }
 0x2e3   : > { %p3907_p7 = scmp.ge.s32.totalorder %s2270_s15, 2  ;;  %s1774_s25 = scalar_lea.sflag [#allocation5], %s1773_s29 }
 0x2e5   : > { %p1997_p13 = pnand %p3907_p7, %p3906_p12 }
 0x2e7   : > { %2253 = dma.done.wait (!%p1997_p13), %s1774_s25, 128  }
 0x2e8   : > { %2255 = vsyncadd (!%p1997_p13), %s1774_s25, 4294967168  ;;  %p18_p3 = scmp.ge.s32.totalorder %s2427_s24, 4   ;;  %s3908_s12 = smov %s2262_s13 }
 0x2e9   : > { %s3909_s13 = smov %s2266_s14  ;;  %s3910_s14 = smov %s2485_s7 }
 0x2ea   : > { %s3911_s15 = smov %s2427_s24  ;;  %20 = sbr.rel (!%p18_p3) target bundleno = 7 (0x7), region = 94 }
 0x2f1   :  { %1779 = vsyncpa [#allocation4], 1 }
 0x2f2   :  { %1781 = vsyncpa [#allocation4 + $0x1], 1 }
 0x2f3   :  { %1782 = vsyncpa [#allocation9], 1 }
 0x2f4   :  { %1784 = vsyncpa [#allocation9 + $0x1], 1 }
 0x2f5   :  { %1785 = vsyncpa [#allocation5], 1 }
 0x2f6   :  { %1787 = vsyncpa [#allocation5 + $0x1], 1 }
 0x2f7   :  { %1788 = vsyncpa [#allocation6], 1 }
 0x2f8   :  { %1790 = vsyncpa [#allocation6 + $0x1], 1 }

</bundles_post_ra>
